<compile_context>
chip_gen: v5e
topology: v5e:2x2
jax: 0.10.0
libtpu: 0.0.40
codegen_flags: <defaults>
</compile_context>

<pallas_src>
import numpy as np
import jax
import jax.numpy as jnp
from jax.experimental import pallas as pl
from jax.experimental.pallas import tpu as pltpu


# ----------------------------------------------------------------------------
# Fused Bottleneck kernel
# ----------------------------------------------------------------------------
def _make_bottleneck_kernel(H, W, P):
    """Builds the fused kernel for one (H, W) image with `planes = P`."""
    M = H * W

    def kernel(x_ref, w1_ref, s1_ref, b1_ref,
               w2_ref, s2_ref, b2_ref,
               w3_ref, s3_ref, b3_ref,
               o_ref, ypad_ref):
        # x_ref: (1, H*W, Cin) f32   o_ref: (1, H*W, Cout) f32   (Cin == Cout)
        x = x_ref[0]                                               # (M, Cin) f32, residual

        # ---- conv1 (1x1) + BN1 + ReLU ------------------------------------
        y1 = jnp.dot(x.astype(jnp.bfloat16), w1_ref[...],
                     preferred_element_type=jnp.float32)           # (M, P)
        y1 = jnp.maximum(y1 * s1_ref[...] + b1_ref[...], 0.0)

        # ---- conv2 (3x3, pad=1, stride=1) + BN2 + ReLU ---------------------
        # zero-padded conv2 input kept entirely in VMEM (halo never hits HBM)
        ypad_ref[...] = jnp.zeros_like(ypad_ref)
        ypad_ref[1:H + 1, 1:W + 1, :] = y1.astype(jnp.bfloat16).reshape(H, W, P)
        # gather the 9 shifted taps into one (M, 9*P) matrix -> single matmul, K = 9*P
        taps = jnp.concatenate(
            [ypad_ref[dy:dy + H, dx:dx + W, :].reshape(M, P)
             for dy in range(3) for dx in range(3)],
            axis=-1)                                               # (M, 9*P) bf16
        y2 = jnp.dot(taps, w2_ref[...],
                     preferred_element_type=jnp.float32)           # (M, P)
        y2 = jnp.maximum(y2 * s2_ref[...] + b2_ref[...], 0.0)

        # ---- conv3 (1x1) + BN3 + residual add (no_relu=True -> no final ReLU)
        y3 = jnp.dot(y2.astype(jnp.bfloat16), w3_ref[...],
                     preferred_element_type=jnp.float32)           # (M, Cout)
        y3 = y3 * s3_ref[...] + b3_ref[...]
        o_ref[0] = y3 + x                                          # residual (Cin == Cout)

    return kernel


def bottleneck_forward(x_nchw, p):
    """Bottleneck forward, PyTorch-facing NCHW I/O."""
    N, Cin, H, W = x_nchw.shape
    P = p["w1"].shape[1]
    Cout = p["w3"].shape[1]
    assert Cin == Cout, "downsample=None requires inplanes == planes * expansion"
    M = H * W

    # NCHW -> NHWC -> (N, H*W, C): channels on lanes, lane-dense loads/stores.
    x = jnp.transpose(x_nchw, (0, 2, 3, 1)).astype(jnp.float32).reshape(N, M, Cin)

    kernel = _make_bottleneck_kernel(H, W, P)

    def const_spec(shape):
        return pl.BlockSpec(shape, lambda n, _s=shape: (0,) * len(_s))

    # TODO(synk): for large H*W add spatial row-tiling with a halo (manual
    #             make_async_copy) instead of one full image per grid step.
    out = pl.pallas_call(
        kernel,
        out_shape=jax.ShapeDtypeStruct((N, M, Cout), jnp.float32),
        grid=(N,),
        in_specs=[
            pl.BlockSpec((1, M, Cin), lambda n: (n, 0, 0)),   # x (residual + conv1 input)
            const_spec((Cin, P)),        # w1  (bf16)
            const_spec((1, P)),          # bn1 scale
            const_spec((1, P)),          # bn1 bias
            const_spec((9 * P, P)),      # w2 flattened (dy,dx,cin)-major (bf16)
            const_spec((1, P)),          # bn2 scale
            const_spec((1, P)),          # bn2 bias
            const_spec((P, Cout)),       # w3  (bf16)
            const_spec((1, Cout)),       # bn3 scale
            const_spec((1, Cout)),       # bn3 bias
        ],
        out_specs=pl.BlockSpec((1, M, Cout), lambda n: (n, 0, 0)),
        scratch_shapes=[
            pltpu.VMEM((H + 2, W + 2, P), jnp.bfloat16),      # zero-padded conv2 input
        ],
        compiler_params=pltpu.CompilerParams(
            dimension_semantics=("parallel",),                # shard images across TCs (v7x)
            vmem_limit_bytes=32 * 1024 * 1024,
        ),
    )(x, p["w1"], p["s1"], p["b1"], p["w2"], p["s2"], p["b2"],
      p["w3"], p["s3"], p["b3"])

    return jnp.transpose(out.reshape(N, H, W, Cout), (0, 3, 1, 2))  # back to NCHW


# ----------------------------------------------------------------------------
# Parameters (deterministic, synthetic; BN folded for eval mode)
# ----------------------------------------------------------------------------
def init_params(key, inplanes, planes):
    eps = 1e-5
    expansion = 2
    outplanes = planes * expansion
    keys = iter(jax.random.split(key, 32))

    def bn(c):
        gamma = 1.0 + 0.1 * jax.random.normal(next(keys), (c,), jnp.float32)
        beta = 0.1 * jax.random.normal(next(keys), (c,), jnp.float32)
        mean = 0.1 * jax.random.normal(next(keys), (c,), jnp.float32)
        var = 1.0 + 0.5 * jax.random.uniform(next(keys), (c,), jnp.float32)
        scale = gamma / jnp.sqrt(var + eps)
        bias = beta - mean * scale
        return scale.reshape(1, c), bias.reshape(1, c)

    w1 = jax.random.normal(next(keys), (inplanes, planes), jnp.float32) / np.sqrt(inplanes)
    w2 = jax.random.normal(next(keys), (3, 3, planes, planes), jnp.float32) / np.sqrt(9 * planes)
    w3 = jax.random.normal(next(keys), (planes, outplanes), jnp.float32) / np.sqrt(planes)
    s1, b1 = bn(planes)
    s2, b2 = bn(planes)
    s3, b3 = bn(outplanes)

    return {
        "w1": w1.astype(jnp.bfloat16),
        "w2": w2.reshape(9 * planes, planes).astype(jnp.bfloat16),
        "w3": w3.astype(jnp.bfloat16),
        "s1": s1, "b1": b1, "s2": s2, "b2": b2, "s3": s3, "b3": b3,
    }


# ----------------------------------------------------------------------------
# Pure-JAX reference (f32) for a numerical sanity check
# ----------------------------------------------------------------------------
def bottleneck_reference(x_nchw, p):
    N, Cin, H, W = x_nchw.shape
    P = p["w1"].shape[1]
    x = jnp.transpose(x_nchw, (0, 2, 3, 1)).astype(jnp.float32)
    w1 = p["w1"].astype(jnp.float32)
    w2 = p["w2"].astype(jnp.float32).reshape(3, 3, P, P)
    w3 = p["w3"].astype(jnp.float32)

    y1 = jnp.maximum(jnp.einsum("nhwc,cp->nhwp", x, w1) * p["s1"][0] + p["b1"][0], 0.0)
    y1p = jnp.pad(y1, ((0, 0), (1, 1), (1, 1), (0, 0)))
    y2 = sum(jnp.einsum("nhwc,cp->nhwp", y1p[:, dy:dy + H, dx:dx + W, :], w2[dy, dx])
             for dy in range(3) for dx in range(3))
    y2 = jnp.maximum(y2 * p["s2"][0] + p["b2"][0], 0.0)
    y3 = jnp.einsum("nhwp,pq->nhwq", y2, w3) * p["s3"][0] + p["b3"][0]
    out = y3 + x                                       # no_relu=True -> no final ReLU
    return jnp.transpose(out, (0, 3, 1, 2))


# ----------------------------------------------------------------------------
if __name__ == "__main__":
    key = jax.random.PRNGKey(0)
    k_x, k_p = jax.random.split(key)

    # TODO(synk): stride>1 / downsample branch of Bottleneck is not exercised
    #             (module defaults: stride=1, downsample=None, no_relu=True).
    N, planes, H, W = 2, 64, 16, 16
    inplanes = planes * 2            # expansion = 2 -> residual add needs inplanes == 2*planes

    x = jax.random.normal(k_x, (N, inplanes, H, W), jnp.float32)   # NCHW, like PyTorch
    params = init_params(k_p, inplanes, planes)

    out = jax.block_until_ready(bottleneck_forward(x, params))
    assert out.shape == (N, inplanes, H, W), out.shape
    assert jnp.all(jnp.isfinite(out))

    ref = bottleneck_reference(x, params)
    err = float(jnp.max(jnp.abs(out - ref)))
    scale = float(jnp.max(jnp.abs(ref)))
    assert err <= 5e-2 + 2e-2 * scale, (err, scale)    # loose: bf16 MXU inputs vs f32 reference

    print("KERNEL_OK")
</pallas_src>

<mosaic_0001>
module attributes {stable_mosaic.version = 11 : i64} {
  func.func @kernel(%arg0: i32, %arg1: memref<1x256x128xf32, #tpu.memory_space<vmem>>, %arg2: memref<128x64xbf16, #tpu.memory_space<vmem>>, %arg3: memref<1x64xf32, #tpu.memory_space<vmem>>, %arg4: memref<1x64xf32, #tpu.memory_space<vmem>>, %arg5: memref<576x64xbf16, #tpu.memory_space<vmem>>, %arg6: memref<1x64xf32, #tpu.memory_space<vmem>>, %arg7: memref<1x64xf32, #tpu.memory_space<vmem>>, %arg8: memref<64x128xbf16, #tpu.memory_space<vmem>>, %arg9: memref<1x128xf32, #tpu.memory_space<vmem>>, %arg10: memref<1x128xf32, #tpu.memory_space<vmem>>, %arg11: memref<1x256x128xf32, #tpu.memory_space<vmem>>, %arg12: memref<18x18x64xbf16, #tpu.memory_space<vmem>>) attributes {dimension_semantics = [#tpu.dimension_semantics<parallel>], iteration_bounds = array<i64: 2>, scalar_prefetch = 0 : i64, scratch_operands = 1 : i64, tpu.core_type = #tpu.core_type<tc>, window_params = [{transform_indices = @transform_0, window_bounds = array<i64: 1, 256, 128>}, {pipeline_mode = #tpu.pipeline_mode<synchronous>, transform_indices = @transform_1, window_bounds = array<i64: 128, 64>}, {pipeline_mode = #tpu.pipeline_mode<synchronous>, transform_indices = @transform_2, window_bounds = array<i64: 1, 64>}, {pipeline_mode = #tpu.pipeline_mode<synchronous>, transform_indices = @transform_3, window_bounds = array<i64: 1, 64>}, {pipeline_mode = #tpu.pipeline_mode<synchronous>, transform_indices = @transform_4, window_bounds = array<i64: 576, 64>}, {pipeline_mode = #tpu.pipeline_mode<synchronous>, transform_indices = @transform_5, window_bounds = array<i64: 1, 64>}, {pipeline_mode = #tpu.pipeline_mode<synchronous>, transform_indices = @transform_6, window_bounds = array<i64: 1, 64>}, {pipeline_mode = #tpu.pipeline_mode<synchronous>, transform_indices = @transform_7, window_bounds = array<i64: 64, 128>}, {pipeline_mode = #tpu.pipeline_mode<synchronous>, transform_indices = @transform_8, window_bounds = array<i64: 1, 128>}, {pipeline_mode = #tpu.pipeline_mode<synchronous>, transform_indices = @transform_9, window_bounds = array<i64: 1, 128>}, {transform_indices = @transform_10, window_bounds = array<i64: 1, 256, 128>}]} {
    %c0 = arith.constant 0 : index
    %c0_0 = arith.constant 0 : index
    %c0_1 = arith.constant 0 : index
    %0 = vector.load %arg1[%c0, %c0_0, %c0_1] : memref<1x256x128xf32, #tpu.memory_space<vmem>>, vector<1x256x128xf32>
    %1 = vector.shape_cast %0 : vector<1x256x128xf32> to vector<256x128xf32>
    %2 = arith.truncf %1 : vector<256x128xf32> to vector<256x128xbf16>
    %c0_2 = arith.constant 0 : index
    %c0_3 = arith.constant 0 : index
    %3 = vector.load %arg2[%c0_2, %c0_3] : memref<128x64xbf16, #tpu.memory_space<vmem>>, vector<128x64xbf16>
    %cst = arith.constant dense<0.000000e+00> : vector<256x64xf32>
    %4 = tpu.matmul %2, %3, %cst {dimension_numbers = #tpu.dot_dimension_numbers<[1], [0], [0], [1], [0, 0, 1, 1], [], []>} : vector<256x128xbf16>, vector<128x64xbf16>, vector<256x64xf32> -> vector<256x64xf32>
    %c0_4 = arith.constant 0 : index
    %c0_5 = arith.constant 0 : index
    %5 = vector.load %arg3[%c0_4, %c0_5] : memref<1x64xf32, #tpu.memory_space<vmem>>, vector<1x64xf32>
    %6 = vector.broadcast %5 : vector<1x64xf32> to vector<256x64xf32>
    %7 = arith.mulf %4, %6 : vector<256x64xf32>
    %c0_6 = arith.constant 0 : index
    %c0_7 = arith.constant 0 : index
    %8 = vector.load %arg4[%c0_6, %c0_7] : memref<1x64xf32, #tpu.memory_space<vmem>>, vector<1x64xf32>
    %9 = vector.broadcast %8 : vector<1x64xf32> to vector<256x64xf32>
    %10 = arith.addf %7, %9 : vector<256x64xf32>
    %cst_8 = arith.constant 0.000000e+00 : f32
    %11 = vector.broadcast %cst_8 : f32 to vector<256x64xf32>
    %12 = arith.maximumf %10, %11 : vector<256x64xf32>
    %cst_9 = arith.constant 0.000000e+00 : bf16
    %13 = vector.broadcast %cst_9 : bf16 to vector<18x18x64xbf16>
    %c0_10 = arith.constant 0 : index
    %c0_11 = arith.constant 0 : index
    %c0_12 = arith.constant 0 : index
    %14 = vector.load %arg12[%c0_10, %c0_11, %c0_12] : memref<18x18x64xbf16, #tpu.memory_space<vmem>>, vector<18x18x64xbf16>
    tpu.vector_store %arg12[%c0_10, %c0_11, %c0_12], %13 {strides = array<i32>} : memref<18x18x64xbf16, #tpu.memory_space<vmem>>, vector<18x18x64xbf16>,
    %15 = arith.truncf %12 : vector<256x64xf32> to vector<256x64xbf16>
    %16 = vector.shape_cast %15 : vector<256x64xbf16> to vector<16x16x64xbf16>
    %c1 = arith.constant 1 : index
    %c1_13 = arith.constant 1 : index
    %c0_14 = arith.constant 0 : index
    %17 = vector.load %arg12[%c1, %c1_13, %c0_14] : memref<18x18x64xbf16, #tpu.memory_space<vmem>>, vector<16x16x64xbf16>
    tpu.vector_store %arg12[%c1, %c1_13, %c0_14], %16 {strides = array<i32>} : memref<18x18x64xbf16, #tpu.memory_space<vmem>>, vector<16x16x64xbf16>,
    %c0_15 = arith.constant 0 : index
    %c0_16 = arith.constant 0 : index
    %c0_17 = arith.constant 0 : index
    %18 = vector.load %arg12[%c0_15, %c0_16, %c0_17] : memref<18x18x64xbf16, #tpu.memory_space<vmem>>, vector<16x16x64xbf16>
    %19 = vector.shape_cast %18 : vector<16x16x64xbf16> to vector<256x64xbf16>
    %c0_18 = arith.constant 0 : index
    %c1_19 = arith.constant 1 : index
    %c0_20 = arith.constant 0 : index
    %20 = vector.load %arg12[%c0_18, %c1_19, %c0_20] : memref<18x18x64xbf16, #tpu.memory_space<vmem>>, vector<16x16x64xbf16>
    %21 = vector.shape_cast %20 : vector<16x16x64xbf16> to vector<256x64xbf16>
    %c0_21 = arith.constant 0 : index
    %c2 = arith.constant 2 : index
    %c0_22 = arith.constant 0 : index
    %22 = vector.load %arg12[%c0_21, %c2, %c0_22] : memref<18x18x64xbf16, #tpu.memory_space<vmem>>, vector<16x16x64xbf16>
    %23 = vector.shape_cast %22 : vector<16x16x64xbf16> to vector<256x64xbf16>
    %c1_23 = arith.constant 1 : index
    %c0_24 = arith.constant 0 : index
    %c0_25 = arith.constant 0 : index
    %24 = vector.load %arg12[%c1_23, %c0_24, %c0_25] : memref<18x18x64xbf16, #tpu.memory_space<vmem>>, vector<16x16x64xbf16>
    %25 = vector.shape_cast %24 : vector<16x16x64xbf16> to vector<256x64xbf16>
    %c1_26 = arith.constant 1 : index
    %c1_27 = arith.constant 1 : index
    %c0_28 = arith.constant 0 : index
    %26 = vector.load %arg12[%c1_26, %c1_27, %c0_28] : memref<18x18x64xbf16, #tpu.memory_space<vmem>>, vector<16x16x64xbf16>
    %27 = vector.shape_cast %26 : vector<16x16x64xbf16> to vector<256x64xbf16>
    %c1_29 = arith.constant 1 : index
    %c2_30 = arith.constant 2 : index
    %c0_31 = arith.constant 0 : index
    %28 = vector.load %arg12[%c1_29, %c2_30, %c0_31] : memref<18x18x64xbf16, #tpu.memory_space<vmem>>, vector<16x16x64xbf16>
    %29 = vector.shape_cast %28 : vector<16x16x64xbf16> to vector<256x64xbf16>
    %c2_32 = arith.constant 2 : index
    %c0_33 = arith.constant 0 : index
    %c0_34 = arith.constant 0 : index
    %30 = vector.load %arg12[%c2_32, %c0_33, %c0_34] : memref<18x18x64xbf16, #tpu.memory_space<vmem>>, vector<16x16x64xbf16>
    %31 = vector.shape_cast %30 : vector<16x16x64xbf16> to vector<256x64xbf16>
    %c2_35 = arith.constant 2 : index
    %c1_36 = arith.constant 1 : index
    %c0_37 = arith.constant 0 : index
    %32 = vector.load %arg12[%c2_35, %c1_36, %c0_37] : memref<18x18x64xbf16, #tpu.memory_space<vmem>>, vector<16x16x64xbf16>
    %33 = vector.shape_cast %32 : vector<16x16x64xbf16> to vector<256x64xbf16>
    %c2_38 = arith.constant 2 : index
    %c2_39 = arith.constant 2 : index
    %c0_40 = arith.constant 0 : index
    %34 = vector.load %arg12[%c2_38, %c2_39, %c0_40] : memref<18x18x64xbf16, #tpu.memory_space<vmem>>, vector<16x16x64xbf16>
    %35 = vector.shape_cast %34 : vector<16x16x64xbf16> to vector<256x64xbf16>
    %36 = tpu.concatenate %19, %21, %23, %25, %27, %29, %31, %33, %35 in 1 : vector<256x64xbf16>, vector<256x64xbf16>, vector<256x64xbf16>, vector<256x64xbf16>, vector<256x64xbf16>, vector<256x64xbf16>, vector<256x64xbf16>, vector<256x64xbf16>, vector<256x64xbf16> -> vector<256x576xbf16>
    %c0_41 = arith.constant 0 : index
    %c0_42 = arith.constant 0 : index
    %37 = vector.load %arg5[%c0_41, %c0_42] : memref<576x64xbf16, #tpu.memory_space<vmem>>, vector<576x64xbf16>
    %cst_43 = arith.constant dense<0.000000e+00> : vector<256x64xf32>
    %38 = tpu.matmul %36, %37, %cst_43 {dimension_numbers = #tpu.dot_dimension_numbers<[1], [0], [0], [1], [0, 0, 1, 1], [], []>} : vector<256x576xbf16>, vector<576x64xbf16>, vector<256x64xf32> -> vector<256x64xf32>
    %c0_44 = arith.constant 0 : index
    %c0_45 = arith.constant 0 : index
    %39 = vector.load %arg6[%c0_44, %c0_45] : memref<1x64xf32, #tpu.memory_space<vmem>>, vector<1x64xf32>
    %40 = vector.broadcast %39 : vector<1x64xf32> to vector<256x64xf32>
    %41 = arith.mulf %38, %40 : vector<256x64xf32>
    %c0_46 = arith.constant 0 : index
    %c0_47 = arith.constant 0 : index
    %42 = vector.load %arg7[%c0_46, %c0_47] : memref<1x64xf32, #tpu.memory_space<vmem>>, vector<1x64xf32>
    %43 = vector.broadcast %42 : vector<1x64xf32> to vector<256x64xf32>
    %44 = arith.addf %41, %43 : vector<256x64xf32>
    %cst_48 = arith.constant 0.000000e+00 : f32
    %45 = vector.broadcast %cst_48 : f32 to vector<256x64xf32>
    %46 = arith.maximumf %44, %45 : vector<256x64xf32>
    %47 = arith.truncf %46 : vector<256x64xf32> to vector<256x64xbf16>
    %c0_49 = arith.constant 0 : index
    %c0_50 = arith.constant 0 : index
    %48 = vector.load %arg8[%c0_49, %c0_50] : memref<64x128xbf16, #tpu.memory_space<vmem>>, vector<64x128xbf16>
    %cst_51 = arith.constant dense<0.000000e+00> : vector<256x128xf32>
    %49 = tpu.matmul %47, %48, %cst_51 {dimension_numbers = #tpu.dot_dimension_numbers<[1], [0], [0], [1], [0, 0, 1, 1], [], []>} : vector<256x64xbf16>, vector<64x128xbf16>, vector<256x128xf32> -> vector<256x128xf32>
    %c0_52 = arith.constant 0 : index
    %c0_53 = arith.constant 0 : index
    %50 = vector.load %arg9[%c0_52, %c0_53] : memref<1x128xf32, #tpu.memory_space<vmem>>, vector<1x128xf32>
    %51 = vector.broadcast %50 : vector<1x128xf32> to vector<256x128xf32>
    %52 = arith.mulf %49, %51 : vector<256x128xf32>
    %c0_54 = arith.constant 0 : index
    %c0_55 = arith.constant 0 : index
    %53 = vector.load %arg10[%c0_54, %c0_55] : memref<1x128xf32, #tpu.memory_space<vmem>>, vector<1x128xf32>
    %54 = vector.broadcast %53 : vector<1x128xf32> to vector<256x128xf32>
    %55 = arith.addf %52, %54 : vector<256x128xf32>
    %56 = arith.addf %55, %1 : vector<256x128xf32>
    %c0_56 = arith.constant 0 : index
    %c0_57 = arith.constant 0 : index
    %c0_58 = arith.constant 0 : index
    %57 = vector.load %arg11[%c0_56, %c0_57, %c0_58] : memref<1x256x128xf32, #tpu.memory_space<vmem>>, vector<1x256x128xf32>
    %58 = vector.shape_cast %57 : vector<1x256x128xf32> to vector<256x128xf32>
    %59 = vector.shape_cast %56 : vector<256x128xf32> to vector<1x256x128xf32>
    tpu.vector_store %arg11[%c0_56, %c0_57, %c0_58], %59 {strides = array<i32>} : memref<1x256x128xf32, #tpu.memory_space<vmem>>, vector<1x256x128xf32>,
    return
  }
  func.func @transform_0(%arg0: i32) -> (i32, i32, i32) {
    %c0_i32 = arith.constant 0 : i32
    %c0_i32_0 = arith.constant 0 : i32
    %c0_i32_1 = arith.constant 0 : i32
    return %arg0, %c0_i32, %c0_i32_0 : i32, i32, i32
  }
  func.func @transform_1(%arg0: i32) -> (i32, i32) {
    %c0_i32 = arith.constant 0 : i32
    %c0_i32_0 = arith.constant 0 : i32
    %c0_i32_1 = arith.constant 0 : i32
    return %c0_i32, %c0_i32_0 : i32, i32
  }
  func.func @transform_2(%arg0: i32) -> (i32, i32) {
    %c0_i32 = arith.constant 0 : i32
    %c0_i32_0 = arith.constant 0 : i32
    %c0_i32_1 = arith.constant 0 : i32
    return %c0_i32, %c0_i32_0 : i32, i32
  }
  func.func @transform_3(%arg0: i32) -> (i32, i32) {
    %c0_i32 = arith.constant 0 : i32
    %c0_i32_0 = arith.constant 0 : i32
    %c0_i32_1 = arith.constant 0 : i32
    return %c0_i32, %c0_i32_0 : i32, i32
  }
  func.func @transform_4(%arg0: i32) -> (i32, i32) {
    %c0_i32 = arith.constant 0 : i32
    %c0_i32_0 = arith.constant 0 : i32
    %c0_i32_1 = arith.constant 0 : i32
    return %c0_i32, %c0_i32_0 : i32, i32
  }
  func.func @transform_5(%arg0: i32) -> (i32, i32) {
    %c0_i32 = arith.constant 0 : i32
    %c0_i32_0 = arith.constant 0 : i32
    %c0_i32_1 = arith.constant 0 : i32
    return %c0_i32, %c0_i32_0 : i32, i32
  }
  func.func @transform_6(%arg0: i32) -> (i32, i32) {
    %c0_i32 = arith.constant 0 : i32
    %c0_i32_0 = arith.constant 0 : i32
    %c0_i32_1 = arith.constant 0 : i32
    return %c0_i32, %c0_i32_0 : i32, i32
  }
  func.func @transform_7(%arg0: i32) -> (i32, i32) {
    %c0_i32 = arith.constant 0 : i32
    %c0_i32_0 = arith.constant 0 : i32
    %c0_i32_1 = arith.constant 0 : i32
    return %c0_i32, %c0_i32_0 : i32, i32
  }
  func.func @transform_8(%arg0: i32) -> (i32, i32) {
    %c0_i32 = arith.constant 0 : i32
    %c0_i32_0 = arith.constant 0 : i32
    %c0_i32_1 = arith.constant 0 : i32
    return %c0_i32, %c0_i32_0 : i32, i32
  }
  func.func @transform_9(%arg0: i32) -> (i32, i32) {
    %c0_i32 = arith.constant 0 : i32
    %c0_i32_0 = arith.constant 0 : i32
    %c0_i32_1 = arith.constant 0 : i32
    return %c0_i32, %c0_i32_0 : i32, i32
  }
  func.func @transform_10(%arg0: i32) -> (i32, i32, i32) {
    %c0_i32 = arith.constant 0 : i32
    %c0_i32_0 = arith.constant 0 : i32
    %c0_i32_1 = arith.constant 0 : i32
    return %arg0, %c0_i32, %c0_i32_0 : i32, i32, i32
  }
}

</mosaic_0001>

<bundles_post_ra>
// kernel: tpu_custom_call.1
= control target key start
LH: loop header
LB: loop body
LE: loop exit
PB: predicated region body
PF: predicated region fallthrough
CT: control target
= control target key end

     0   :  { %s8333_s0 = inlined_call_operand.vmem [shape: f32[2,256,128], index: 0, kind: input, shape index: {}]   ;;  %s8334_s1 = inlined_call_operand.vmem [shape: bf16[128,64], index: 1, kind: input, shape index: {}]   ;;  %s8335_s2 = inlined_call_operand.hbm [shape: f32[1,64], index: 2, kind: input, shape index: {}]   ;;  %s8336_s3 = inlined_call_operand.hbm [shape: f32[1,64], index: 3, kind: input, shape index: {}]   ;;  %s8337_s4 = inlined_call_operand.vmem [shape: bf16[576,64], index: 4, kind: input, shape index: {}]   ;;  %s8338_s5 = inlined_call_operand.hbm [shape: f32[1,64], index: 5, kind: input, shape index: {}]   ;;  %s8339_s6 = inlined_call_operand.vmem [shape: f32[1,64], index: 6, kind: input, shape index: {}]   ;;  %s8340_s7 = inlined_call_operand.vmem [shape: bf16[64,128], index: 7, kind: input, shape index: {}]   ;;  %s8341_s8 = inlined_call_operand.vmem [shape: f32[1,128], index: 8, kind: input, shape index: {}]   ;;  %s8342_s9 = inlined_call_operand.vmem [shape: f32[1,128], index: 9, kind: input, shape index: {}]   ;;  %s8343_s10 = inlined_call_operand.hbm [shape: f32[2,256,128], index: 10, kind: output, shape index: {}]  }
   0x1   :  { %8346 = sst [smem:[#allocation30_spill]] %s8336_s3 }
   0x2   :  { %15 = vsyncpa [#allocation4], 0 }
   0x3   :  { %16 = vsyncpa [#allocation7], 0 }
   0x4   :  { %17 = vsyncpa [#allocation5], 0 }
   0x5   :  { %19 = vsyncpa [#allocation5 + $0x1], 0  ;;  %s6283_s13 = smov 0   ;;  %s6285_s14 = smov 0  }
   0x6   :  { %s6287_s15 = smov 0   ;;  %s6289_s16 = smov 0  }
   0x7 LB: > { %s6304_s17 = sadd.s32 4294967295, %s6219_s16   ;;  %s5248_s18 = sadd.s32 4294967294, %s6219_s16   ;;  %s6219_s16 = sphi %s6289_s16, %s8398_s16   ;;  %s6215_s15 = sphi %s6287_s15, %s8397_s15   ;;  %s6211_s14 = sphi %s6285_s14, %s8396_s14   ;;  %s6207_s13 = sphi %s6283_s13, %s8395_s13  }
   0x8   : > { %s6308_s19 = sadd.s32 1, %s6219_s16   ;;  %s247_s20 = sadd.s32 1, %s6215_s15 }
   0x9   : > { %s244_s21 = ssub.s32 %s6219_s16, %s6308_s19  ;;  %p257_p0 = scmp.ne.s32.totalorder %s6215_s15, %s6211_s14 }
   0xa   : > { %p245_p1 = scmp.eq.s32.totalorder %s244_s21, 0  ;;  %p258_p2 = scmp.eq.s32.totalorder %s6304_s17, 1 }
   0xb   : > { %p263_p3 = scmp.ne.s32.totalorder %s6211_s14, %s6207_s13  ;;  %p264_p4 = scmp.eq.s32.totalorder %s5248_s18, 1 }
   0xc   : > { %s6319_s22 = scalar_select %p245_p1, %s6215_s15, %s247_s20  }
   0xd   : > { %p6321_p5 = por %p258_p2, %p257_p0  ;;  %p6325_p6 = por %p264_p4, %p263_p3 }
   0xe   : > { %8347 = sst [smem:[#allocation13_spill]] %s6319_s22  ;;  %p5249_p7 = scmp.ge.s32.totalorder %s6219_s16, 1 }
   0xf   : > { %p271_p8 = scmp.lt.s32.totalorder %s6219_s16, 3  ;;  %p5880_p9 = scmp.eq.s32.totalorder %s6304_s17, 0 }
  0x10   : > { %s8351_s3 = sld [smem:[#allocation30_spill]]  ;;  %s6221_s29 = smov [#allocation6]  }
  0x11   : > { %p6332_p10 = pnand %p5249_p7, %p271_p8  ;;  %s300_s30 = sshll.u32 %s6221_s29, 4  ;;  %s301_s30 = int_to_ptr.vmem [resolvable:$true] %s300_s30 }
  0x12   : > { %s286_s18 = sshll.u32 %s8335_s2, 4  ;;  %s313_s22 = sshll.u32 %s8338_s5, 4  ;;  %s287_s18 = int_to_ptr.hbm [resolvable:$true] %s286_s18  ;;  %s314_s22 = int_to_ptr.hbm [resolvable:$true] %s313_s22 }
  0x13   : > { %p5866_p11 = pneg %p6332_p10  ;;  %s6222_s26 = smov [#allocation3]  }
  0x14   : > { %s288_s27 = sshll.u32 %s6222_s26, 4  ;;  %s289_s27 = int_to_ptr.vmem [resolvable:$true] %s288_s27 }
  0x15   : > { %p5867_p12 = pnand %p5880_p9, %p5866_p11 }
  0x16   : > { %s298_s28 = sshll.u32 %s8351_s3, 4  ;;  %s6223_s3 = smov [#allocation8]   ;;  %s299_s28 = int_to_ptr.hbm [resolvable:$true] %s298_s28 }
  0x17   : > { %5872 = dma.hbm_to_vmem [thread:$0]  (!%p5867_p12), %s299_s28, 16, %s301_s30, [#allocation7]  }
  0x18   : > { %5869 = dma.hbm_to_vmem [thread:$0]  (!%p5867_p12), %s287_s18, 16, %s289_s27, [#allocation4]  }
  0x19   : > { %s315_s29 = sshll.u32 %s6223_s3, 4  ;;  %348 = sbr.rel (%p6332_p10) target bundleno = 1176 (0x498), region = 60  ;;  %s316_s29 = int_to_ptr.vmem [resolvable:$true] %s315_s29 }
  0x1a   : > { %5875 = dma.hbm_to_vmem [thread:$0]  (!%p5867_p12), %s314_s22, 16, %s316_s29, [#allocation7]  }
  0x1e   : > { %6194 = dma.done.wait (%p5880_p9), [#allocation4], 16  }
  0x1f   : > { %6196 = vsyncadd (%p5880_p9), [#allocation4], 4294967280 }
  0x20   : > { %6198 = dma.done.wait (%p5880_p9), [#allocation7], 32  }
  0x21   : > { %6200 = vsyncadd (%p5880_p9), [#allocation7], 4294967264  ;;  %v5738_v0 = vld [vmem:[%s8334_s1 + $0x38] sm:$0xff]  ;;  %v5737_v1 = vld [vmem:[%s8334_s1 + $0x30] sm:$0xff]  ;;  %p397_p13 = scmp.lt.s32.totalorder %s6304_s17, 1  ;;  %vm708_vm0 = vcmask 519168  }
  0x22   : > { %515 = vmatpush.bf16.msra.mxu0 %v5738_v0  ;;  %5828 = vmatpush.bf16.msra.mxu3 %v5738_v0  ;;  %v5736_v2 = vld [vmem:[%s8334_s1 + $0x28] sm:$0xff]  ;;  %v5735_v3 = vld [vmem:[%s8334_s1 + $0x20] sm:$0xff]  ;;  %v5734_v4 = vld [vmem:[%s8334_s1 + $0x18] sm:$0xff]  ;;  %v6224_v38 = vmov 0   ;;  %vm1121_vm1 = vsmask.f32 7938 }
  0x23   : > { %s398_s26 = scalar_select %p397_p13, %s6304_s17, 1  ;;  %v5733_v5 = vld [vmem:[%s8334_s1 + $0x10] sm:$0xff]  ;;  %v5732_v6 = vld [vmem:[%s8334_s1 + $0x8] sm:$0xff]  ;;  %v5731_v7 = vld [vmem:[%s8334_s1] sm:$0xff]  ;;  %713 = vst.msk [vmem:[#allocation2 + $0xc] sm:$0xf] %vm708_vm0, %v6224_v38 }
  0x24   : > { %709 = vst.msk [vmem:[#allocation2] sm:$0xf] %vm708_vm0, %v6224_v38  ;;  %v6460_v44 = vld [vmem:[#allocation3] ss:$0 sm:$0xff]  ;;  %v6466_v45 = vld [vmem:[#allocation6] ss:$0 sm:$0xff]  ;;  %vm6508_vm3 = vmand %vm708_vm0, %vm1121_vm1 }
  0x25   : > { %s5730_s28 = sshll.u32 %s398_s26, 8  ;;  %710 = vst.msk [vmem:[#allocation2 + $0x4] sm:$0xf] %vm708_vm0, %v6224_v38  ;;  %vm711_vm2 = vcmask 516096   ;;  %vm1285_vm4 = vsmask.f32 3328 }
  0x26   : > { %516 = vmatpush.bf16.msra.mxu0 %v5737_v1  ;;  %5829 = vmatpush.bf16.msra.mxu3 %v5737_v1  ;;  %s6385_s11 = scalar_lea.vmem %s8333_s0, %s5730_s28  ;;  %714 = vst.msk [vmem:[#allocation2 + $0x10] sm:$0xf] %vm708_vm0, %v6224_v38  ;;  %vm1286_vm5 = vsmask.f32 7440  ;;  %vm796_vm6 = vsmask.f32 256 }
  0x27   : > { %v403_v8 = vld [vmem:[%s6385_s11] sm:$0xff]  ;;  %v404_v9 = vld [vmem:[%s6385_s11 + $0x8] sm:$0xff]  ;;  %v405_v14 = vld [vmem:[%s6385_s11 + $0x10] sm:$0xff]  ;;  %716 = vst.msk [vmem:[#allocation2 + $0x18] sm:$0xf] %vm708_vm0, %v6224_v38  ;;  %s6225_s20 = smov 64  }
  0x28   : > { %v427_v10 = vld [vmem:[%s6385_s11 + $0xc0] sm:$0xff]  ;;  %v428_v11 = vld [vmem:[%s6385_s11 + $0xc8] sm:$0xff]  ;;  %v435_v12 = vpack.c.bf16 %v404_v9, %v403_v8  ;;  %v406_v15 = vld [vmem:[%s6385_s11 + $0x18] sm:$0xff]  ;;  %717 = vst.msk [vmem:[#allocation2 + $0x1c] sm:$0xf] %vm708_vm0, %v6224_v38  ;;  %vm3676_vm11 = vcmask 523264  }
  0x29   : > { %v447_v13 = vpack.c.bf16 %v428_v11, %v427_v10  ;;  %v436_v16 = vpack.c.bf16 %v406_v15, %v405_v14  ;;  %v429_v17 = vld [vmem:[%s6385_s11 + $0xd0] sm:$0xff]  ;;  %v430_v18 = vld [vmem:[%s6385_s11 + $0xd8] sm:$0xff]  ;;  %v407_v20 = vld [vmem:[%s6385_s11 + $0x20] sm:$0xff]  ;;  %719 = vst.msk [vmem:[#allocation2 + $0x24] sm:$0xf] %vm708_vm0, %v6224_v38  ;;  %vm1736_vm12 = vcmask 1042432  }
  0x2a   : > { %517 = vmatpush.bf16.msra.mxu0 %v5736_v2  ;;  %5830 = vmatpush.bf16.msra.mxu3 %v5736_v2  ;;  %v448_v19 = vpack.c.bf16 %v430_v18, %v429_v17  ;;  %v408_v21 = vld [vmem:[%s6385_s11 + $0x28] sm:$0xff]  ;;  %v431_v23 = vld [vmem:[%s6385_s11 + $0xe0] sm:$0xff]  ;;  %v409_v26 = vld [vmem:[%s6385_s11 + $0x30] sm:$0xff]  ;;  %720 = vst.msk [vmem:[#allocation2 + $0x28] sm:$0xf] %vm708_vm0, %v6224_v38  ;;  %vm1737_vm13 = vcmask 1046532  }
  0x2b   : > { %v437_v22 = vpack.c.bf16 %v408_v21, %v407_v20  ;;  %v432_v24 = vld [vmem:[%s6385_s11 + $0xe8] sm:$0xff]  ;;  %v410_v27 = vld [vmem:[%s6385_s11 + $0x38] sm:$0xff]  ;;  %v411_v29 = vld [vmem:[%s6385_s11 + $0x40] sm:$0xff]  ;;  %722 = vst.msk [vmem:[#allocation2 + $0x30] sm:$0xf] %vm708_vm0, %v6224_v38  ;;  %s394_s3 = sand.u32 1, %s6211_s14  }
  0x2c   : > { %v449_v25 = vpack.c.bf16 %v432_v24, %v431_v23  ;;  %v438_v28 = vpack.c.bf16 %v410_v27, %v409_v26  ;;  %v412_v30 = vld [vmem:[%s6385_s11 + $0x48] sm:$0xff]  ;;  %v413_v32 = vld [vmem:[%s6385_s11 + $0x50] sm:$0xff]  ;;  %v414_v33 = vld [vmem:[%s6385_s11 + $0x58] sm:$0xff]  ;;  %723 = vst.msk [vmem:[#allocation2 + $0x34] sm:$0xf] %vm708_vm0, %v6224_v38  ;;  %s5258_s12 = sshll.u32 %s394_s3, 8 }
  0x2d   : > { %v439_v31 = vpack.c.bf16 %v412_v30, %v411_v29  ;;  %v440_v34 = vpack.c.bf16 %v414_v33, %v413_v32  ;;  %v415_v35 = vld [vmem:[%s6385_s11 + $0x60] sm:$0xff]  ;;  %v416_v36 = vld [vmem:[%s6385_s11 + $0x68] sm:$0xff]  ;;  %v417_v39 = vld [vmem:[%s6385_s11 + $0x70] sm:$0xff]  ;;  %725 = vst.msk [vmem:[#allocation2 + $0x3c] sm:$0xf] %vm708_vm0, %v6224_v38  ;;  %s8120_s18 = scalar_lea.vmem [#allocation9], %s5258_s12 }
  0x2e   : > { %518 = vmatpush.bf16.msra.mxu0 %v5735_v3  ;;  %5831 = vmatpush.bf16.msra.mxu3 %v5735_v3  ;;  %v441_v37 = vpack.c.bf16 %v416_v36, %v415_v35  ;;  %v418_v40 = vld [vmem:[%s6385_s11 + $0x78] sm:$0xff]  ;;  %726 = vst.msk [vmem:[#allocation2 + $0x40] sm:$0xf] %vm708_vm0, %v6224_v38  ;;  %v419_v42 = vld [vmem:[%s6385_s11 + $0x80] sm:$0xff]  ;;  %v420_v43 = vld [vmem:[%s6385_s11 + $0x88] sm:$0xff]  ;;  %s5827_s27 = sshll.u32 %s6304_s17, 8 }
  0x2f   : > { %v442_v41 = vpack.c.bf16 %v418_v40, %v417_v39  ;;  %728 = vst.msk [vmem:[#allocation2 + $0x48] sm:$0xf] %vm708_vm0, %v6224_v38  ;;  %v443_v46 = vpack.c.bf16 %v420_v43, %v419_v42  ;;  %v1237_v47 = vld [vmem:[#allocation2] sm:$0xf]  ;;  %v1238_v50 = vld [vmem:[#allocation2 + $0x4] sm:$0xf]  ;;  %vm6527_vm8 = vmor %vm1285_vm4, %vm1286_vm5  ;;  %s5151_s28 = scalar_lea.hbm %s8343_s10, %s5827_s27 }
  0x30   : > { %729 = vst.msk [vmem:[#allocation2 + $0x4c] sm:$0xf] %vm708_vm0, %v6224_v38  ;;  %v1289_v51 = vshrl.u32 %v1237_v47, 16  ;;  %v1292_v52 = vshll.u32 %v1237_v47, 16  ;;  %v1298_v54 = vshll.u32 %v1238_v50, 16  ;;  %v1302_v56 = vshrl.u32 %v1238_v50, 16  ;;  %vm6551_vm10 = vmand %vm711_vm2, %vm796_vm6 }
  0x31   : > { %731 = vst.msk [vmem:[#allocation2 + $0x54] sm:$0xf] %vm708_vm0, %v6224_v38  ;;  %v422_v8 = vld [vmem:[%s6385_s11 + $0x98] sm:$0xff]  ;;  %v1123_v11 = vld [vmem:[#allocation2 + $0xc] sm:$0xf]  ;;  %vm7004_vm14 = vmor %vm1736_vm12, %vm1737_vm13  ;;  %s5152_s30 = sshll.u32 %s8120_s18, 4  ;;  %s5153_s30 = int_to_ptr.vmem [resolvable:$true] %s5152_s30 }
  0x32   : > { %519 = vmatpush.bf16.msra.mxu0 %v5734_v4  ;;  %5832 = vmatpush.bf16.msra.mxu3 %v5734_v4  ;;  %732 = vst.msk [vmem:[#allocation2 + $0x58] sm:$0xf] %vm708_vm0, %v6224_v38  ;;  %v1291_v57 = vrot.slane %v1289_v51, 4  ;;  %v1294_v58 = vrot.slane %v1292_v52, 5  ;;  %v6490_v62 = vrot.slane %v1298_v54, 5  ;;  %v1304_v1 = vrot.slane %v1302_v56, 4 }
  0x33   : > { %734 = vst.msk [vmem:[#allocation2 + $0x60] sm:$0xf] %vm708_vm0, %v6224_v38  ;;  %vm797_vm7 = vsmask.f32 4368  ;;  %s5154_s22 = sshll.u32 %s5151_s28, 4  ;;  %s5140_s17 = scalar_lea.sflag [#allocation5], %s394_s3  ;;  %s5155_s22 = int_to_ptr.hbm [resolvable:$true] %s5154_s22 }
  0x34   : > { %735 = vst.msk [vmem:[#allocation2 + $0x64] sm:$0xf] %vm708_vm0, %v6224_v38  ;;  %v1295_v3 = vor.u32 %v1294_v58, %v1291_v57  ;;  %v1305_v14 = vor.u32 %v1304_v1, %v6490_v62  ;;  %vm6538_vm9 = vmor %vm796_vm6, %vm797_vm7  ;;  %s6163_s25 = sshra.s32 %s5155_s22, 4  ;;  %s6169_s27 = scalar_lea.hbm %s8343_s10, 512  ;;  %s6164_s25 = int_to_ptr.hbm [resolvable:$true] %s6163_s25 }
  0x35   : > { %737 = vst.msk [vmem:[#allocation2 + $0x6c] sm:$0xf] %vm708_vm0, %v6224_v38  ;;  %s6165_s12 = scalar_lea.hbm %s6164_s25, 256  ;;  %p6170_p3 = scmp.lt.s32.totalorder %s6164_s25, %s8343_s10 }
  0x36   : > { %520 = vmatpush.bf16.msra.mxu0 %v5733_v5  ;;  %5833 = vmatpush.bf16.msra.mxu3 %v5733_v5  ;;  %738 = vst.msk [vmem:[#allocation2 + $0x70] sm:$0xf] %vm708_vm0, %v6224_v38  ;;  %v1296_v20 = vrot.slane %v1295_v3, 4  ;;  %v1306_v27 = vrot.slane %v1305_v14, 4  ;;  %v424_v14 = vld [vmem:[%s6385_s11 + $0xa8] sm:$0xff]  ;;  %p6166_p0 = scmp.ne.s32.totalorder %s6164_s25, %s6165_s12  ;;  %p6171_p4 = scmp.lt.s32.totalorder %s6169_s27, %s6165_s12 }
  0x37   : > { %740 = vst.msk [vmem:[#allocation2 + $0x78] sm:$0xf] %vm708_vm0, %v6224_v38 }
  0x38   : > { %741 = vst.msk [vmem:[#allocation2 + $0x7c] sm:$0xf] %vm708_vm0, %v6224_v38  ;;  %v1301_v36 = vsel %vm6527_vm8, %v1296_v20, %v6490_v62  ;;  %p6167_p1 = pnand %p6166_p0, %p6321_p5  ;;  %p6172_p7 = por %p6171_p4, %p6170_p3 }
  0x39   : > { %743 = vst.msk [vmem:[#allocation2 + $0x84] sm:$0xf] %vm708_vm0, %v6224_v38  ;;  %v3132_v50 = vunpack.c.l.b16 %v1301_v36 }
  0x3a   : > { %521 = vmatpush.bf16.msra.mxu0 %v5732_v6  ;;  %5834 = vmatpush.bf16.msra.mxu3 %v5732_v6  ;;  %744 = vst.msk [vmem:[#allocation2 + $0x88] sm:$0xf] %vm708_vm0, %v6224_v38  ;;  %p6168_p2 = pneg %p6167_p1 }
  0x3b   : > { %746 = vst.msk [vmem:[#allocation2 + $0x90] sm:$0xf] %vm708_vm0, %v6224_v38 }
  0x3c   : > { %747 = vst.msk [vmem:[#allocation2 + $0x94] sm:$0xf] %vm708_vm0, %v6224_v38  ;;  %p6173_p8 = pnand %p6172_p7, %p6168_p2 }
  0x3d   : > { %749 = vst.msk [vmem:[#allocation2 + $0x9c] sm:$0xf] %vm708_vm0, %v6224_v38 }
  0x3e   : > { %522 = vmatpush.bf16.msra.mxu0 %v5731_v7  ;;  %5835 = vmatpush.bf16.msra.mxu3 %v5731_v7  ;;  %750 = vst.msk [vmem:[#allocation2 + $0xa0] sm:$0xf] %vm708_vm0, %v6224_v38  ;;  %v421_v7 = vld [vmem:[%s6385_s11 + $0x90] sm:$0xff] }
  0x3f   : > { %752 = vst.msk [vmem:[#allocation2 + $0xa8] sm:$0xf] %vm708_vm0, %v6224_v38  ;;  %v444_v15 = vpack.c.bf16 %v422_v8, %v421_v7 }
  0x40   : > { %753 = vst.msk [vmem:[#allocation2 + $0xac] sm:$0xf] %vm708_vm0, %v6224_v38 }
  0x41   : > { %523 = vmatmul.bf16.vlgmr.msra.gmra.mxu0 %v435_v12  ;;  %583 = vmatmul.bf16.vlgmr.msra.gmra.mxu3 %v447_v13  ;;  %755 = vst.msk [vmem:[#allocation2 + $0xb4] sm:$0xf] %vm708_vm0, %v6224_v38 }
  0x42   : > { %756 = vst.msk [vmem:[#allocation2 + $0xb8] sm:$0xf] %vm708_vm0, %v6224_v38 }
  0x43   : > { %758 = vst.msk [vmem:[#allocation2 + $0xc0] sm:$0xf] %vm708_vm0, %v6224_v38 }
  0x44   : > { %759 = vst.msk [vmem:[#allocation2 + $0xc4] sm:$0xf] %vm708_vm0, %v6224_v38 }
  0x45   : > { %761 = vst.msk [vmem:[#allocation2 + $0xcc] sm:$0xf] %vm708_vm0, %v6224_v38 }
  0x46   : > { %762 = vst.msk [vmem:[#allocation2 + $0xd0] sm:$0xf] %vm708_vm0, %v6224_v38 }
  0x47   : > { %715 = vst.msk [vmem:[#allocation2 + $0x14] sm:$0x1] %vm711_vm2, %v6224_v38 }
  0x48   : > { %712 = vst.msk [vmem:[#allocation2 + $0x8] sm:$0x1] %vm711_vm2, %v6224_v38 }
  0x49   : > { %718 = vst.msk [vmem:[#allocation2 + $0x20] sm:$0x1] %vm711_vm2, %v6224_v38 }
  0x4a   : > { %721 = vst.msk [vmem:[#allocation2 + $0x2c] sm:$0x1] %vm711_vm2, %v6224_v38 }
  0x4b   : > { %724 = vst.msk [vmem:[#allocation2 + $0x38] sm:$0x1] %vm711_vm2, %v6224_v38 }
  0x4c   : > { %727 = vst.msk [vmem:[#allocation2 + $0x44] sm:$0x1] %vm711_vm2, %v6224_v38 }
  0x4d   : > { %730 = vst.msk [vmem:[#allocation2 + $0x50] sm:$0x1] %vm711_vm2, %v6224_v38 }
  0x4e   : > { %733 = vst.msk [vmem:[#allocation2 + $0x5c] sm:$0x1] %vm711_vm2, %v6224_v38 }
  0x4f   : > { %v1269_v30 = vld [vmem:[#allocation2 + $0x8] sm:$0x1]  ;;  %736 = vst.msk [vmem:[#allocation2 + $0x68] sm:$0x1] %vm711_vm2, %v6224_v38 }
  0x50   : > { %739 = vst.msk [vmem:[#allocation2 + $0x74] sm:$0x1] %vm711_vm2, %v6224_v38 }
  0x51   : > { %528 = vmatmul.bf16.gmra.mxu0 %v436_v16  ;;  %588 = vmatmul.bf16.gmra.mxu3 %v448_v19  ;;  %742 = vst.msk [vmem:[#allocation2 + $0x80] sm:$0x1] %vm711_vm2, %v6224_v38 }
  0x52   : > { %745 = vst.msk [vmem:[#allocation2 + $0x8c] sm:$0x1] %vm711_vm2, %v6224_v38 }
  0x53   : > { %748 = vst.msk [vmem:[#allocation2 + $0x98] sm:$0x1] %vm711_vm2, %v6224_v38 }
  0x54   : > { %751 = vst.msk [vmem:[#allocation2 + $0xa4] sm:$0x1] %vm711_vm2, %v6224_v38 }
  0x55   : > { %754 = vst.msk [vmem:[#allocation2 + $0xb0] sm:$0x1] %vm711_vm2, %v6224_v38 }
  0x56   : > { %757 = vst.msk [vmem:[#allocation2 + $0xbc] sm:$0x1] %vm711_vm2, %v6224_v38 }
  0x57   : > { %760 = vst.msk [vmem:[#allocation2 + $0xc8] sm:$0x1] %vm711_vm2, %v6224_v38 }
  0x58   : > { %763 = vst.msk [vmem:[#allocation2 + $0xd4] sm:$0x1] %vm711_vm2, %v6224_v38 }
  0x5b   : > { %v1213_v38 = vld [vmem:[#allocation2 + $0xa4] sm:$0x1] }
  0x61   : > { %533 = vmatmul.bf16.gmra.mxu0 %v437_v22  ;;  %593 = vmatmul.bf16.gmra.mxu3 %v449_v25 }
  0x71   : > { %538 = vmatmul.bf16.gmra.mxu0 %v438_v28 }
  0x81   : > { %543 = vmatmul.bf16.gmra.mxu0 %v439_v31 }
  0x91   : > { %548 = vmatmul.bf16.gmra.mxu0 %v440_v34  ;;  %v1129_v34 = vld [vmem:[#allocation2 + $0x14] sm:$0x1] }
  0xa1   : > { %553 = vmatmul.bf16.gmra.mxu0 %v441_v37  ;;  %v1308_v37 = vshll.u32 %v1269_v30, 16 }
  0xb1   : > { %558 = vmatmul.bf16.gmra.mxu0 %v442_v41 }
  0xbe   : > { %v524_v48 = vpop.f32.mrf.mxu0 }
  0xbf   : > { %v608_v49 = vmul.f32 %v6460_v44, %v524_v48 }
  0xc1   : > { %v644_v53 = vadd.f32 %v6466_v45, %v608_v49  ;;  %563 = vmatmul.bf16.gmra.mxu0 %v443_v46  ;;  %v1310_v49 = vrot.slane %v1308_v37, 5 }
  0xc3   : > { %v676_v55 = vmax.f32 %v644_v53, 0.0 }
  0xc4   : > { %v584_v59 = vpop.f32.mrf.mxu3 }
  0xc5   : > { %v764_v60 = vpack.c.bf16 %v676_v55, %v676_v55  ;;  %v632_v2 = vmul.f32 %v6460_v44, %v584_v59  ;;  %v1311_v55 = vsel %vm6527_vm8, %v1306_v27, %v1310_v49 }
  0xc6   : > { %v526_v61 = vpop.f32.mrf.mxu0  ;;  %v3133_v58 = vunpack.c.l.b16 %v1311_v55 }
  0xc7   : > { %v800_v63 = vshrl.u32 %v764_v60, 16  ;;  %v609_v0 = vmul.f32 %v6460_v44, %v526_v61  ;;  %v803_v5 = vshll.u32 %v764_v60, 16  ;;  %v668_v9 = vadd.f32 %v6466_v45, %v632_v2  ;;  %v1132_v2 = vld [vmem:[#allocation2 + $0x18] sm:$0xf] }
  0xc8   : > { %v3164_v3 = vpack.c.b16 %v3133_v58, %v3132_v50 }
  0xc9   : > { %v6498_v4 = vrot.slane %v800_v63, 7  ;;  %v645_v6 = vadd.f32 %v6466_v45, %v609_v0  ;;  %v700_v16 = vmax.f32 %v668_v9, 0.0  ;;  %v1209_v0 = vld [vmem:[#allocation2 + $0x9c] sm:$0xf] }
  0xca   : > { %3180 = vrot.lane.b32.xlu0 %v3164_v3, %s6225_s20 }
  0xcb   : > { %v805_v12 = vor.u32 %v803_v5, %v6498_v4  ;;  %v677_v13 = vmax.f32 %v645_v6, 0.0  ;;  %v788_v24 = vpack.c.bf16 %v700_v16, %v700_v16  ;;  %v806_v39 = vrot.slane %v6498_v4, 4 }
  0xcc   : > { %v586_v17 = vpop.f32.mrf.mxu3 }
  0xcd   : > { %v1124_v18 = vsel %vm6508_vm3, %v805_v12, %v1123_v11  ;;  %v765_v19 = vpack.c.bf16 %v677_v13, %v677_v13  ;;  %v633_v21 = vmul.f32 %v6460_v44, %v586_v17  ;;  %v1004_v31 = vshrl.u32 %v788_v24, 16  ;;  %v423_v13 = vld [vmem:[%s6385_s11 + $0xa0] sm:$0xff] }
  0xce   : > { %1125 = vst [vmem:[#allocation2 + $0xc] sm:$0xf] %v1124_v18  ;;  %v529_v22 = vpop.f32.mrf.mxu0  ;;  %v1007_v42 = vshll.u32 %v788_v24, 16  ;;  %v445_v24 = vpack.c.bf16 %v424_v14, %v423_v13 }
  0xcf   : > { %v808_v25 = vshrl.u32 %v765_v19, 16  ;;  %v610_v26 = vmul.f32 %v6460_v44, %v529_v22  ;;  %v669_v28 = vadd.f32 %v6466_v45, %v633_v21  ;;  %v811_v29 = vshll.u32 %v765_v19, 16 }
  0xd0   : > { %v1006_v41 = vrot.slane %v1004_v31, 7 }
  0xd1   : > { %v810_v33 = vrot.slane %v808_v25, 7  ;;  %v646_v35 = vadd.f32 %v6466_v45, %v610_v26  ;;  %568 = vmatmul.bf16.gmra.mxu0 %v444_v15  ;;  %v701_v43 = vmax.f32 %v669_v28, 0.0 }
  0xd2   : > { %v1009_v59 = vor.u32 %v1007_v42, %v1006_v41  ;;  %v1010_v4 = vrot.slane %v1006_v41, 4 }
  0xd3   : > { %v813_v46 = vor.u32 %v811_v29, %v810_v33  ;;  %v815_v47 = vrot.slane %v810_v33, 4  ;;  %v678_v48 = vmax.f32 %v646_v35, 0.0  ;;  %v789_v51 = vpack.c.bf16 %v701_v43, %v701_v43 }
  0xd4   : > { %v1210_v12 = vsel %vm6508_vm3, %v1009_v59, %v1209_v0  ;;  %v589_v42 = vpop.f32.mrf.mxu3 }
  0xd5   : > { %v814_v52 = vsel %vm6538_vm9, %v806_v39, %v813_v46  ;;  %v1130_v53 = vsel %vm6551_vm10, %v815_v47, %v1129_v34  ;;  %v766_v54 = vpack.c.bf16 %v678_v48, %v678_v48  ;;  %v1239_v56 = vld [vmem:[#allocation2 + $0xc] sm:$0xf]  ;;  %v1012_v60 = vshrl.u32 %v789_v51, 16  ;;  %1211 = vst [vmem:[#allocation2 + $0x9c] sm:$0xf] %v1210_v12 }
  0xd6   : > { %1126 = vst.msk [vmem:[#allocation2 + $0x10] sm:$0xf] %vm708_vm0, %v814_v52  ;;  %v531_v57 = vpop.f32.mrf.mxu0  ;;  %v1015_v61 = vshll.u32 %v789_v51, 16  ;;  %v1313_v1 = vshrl.u32 %v1239_v56, 16  ;;  %v1316_v6 = vshll.u32 %v1239_v56, 16  ;;  %v634_v3 = vmul.f32 %v6460_v44, %v589_v42 }
  0xd7   : > { %1131 = vst [vmem:[#allocation2 + $0x14] sm:$0x1] %v1130_v53  ;;  %v817_v62 = vshrl.u32 %v766_v54, 16  ;;  %v611_v63 = vmul.f32 %v6460_v44, %v531_v57  ;;  %v1014_v5 = vrot.slane %v1012_v60, 7  ;;  %v820_v8 = vshll.u32 %v766_v54, 16 }
  0xd8   : > { %v1315_v11 = vrot.slane %v1313_v1, 4  ;;  %v1318_v16 = vrot.slane %v1316_v6, 5  ;;  %v1136_v46 = vld [vmem:[#allocation2 + $0x20] sm:$0x1] }
  0xd9   : > { %v819_v7 = vrot.slane %v817_v62, 7  ;;  %v647_v9 = vadd.f32 %v6466_v45, %v611_v63  ;;  %v1017_v15 = vor.u32 %v1015_v61, %v1014_v5  ;;  %v1019_v20 = vrot.slane %v1014_v5, 4 }
  0xda   : > { %v1319_v26 = vor.u32 %v1318_v16, %v1315_v11  ;;  %v1139_v16 = vld [vmem:[#allocation2 + $0x24] sm:$0xf] }
  0xdb   : > { %v822_v17 = vor.u32 %v820_v8, %v819_v7  ;;  %v679_v18 = vmax.f32 %v647_v9, 0.0  ;;  %v1018_v19 = vsel %vm6538_vm9, %v1010_v4, %v1017_v15  ;;  %v1214_v33 = vsel %vm6551_vm10, %v1019_v20, %v1213_v38 }
  0xdc   : > { %1212 = vst.msk [vmem:[#allocation2 + $0xa0] sm:$0xf] %vm708_vm0, %v1018_v19  ;;  %v1320_v41 = vrot.slane %v1319_v26, 4  ;;  %v823_v43 = vrot.slane %v819_v7, 4  ;;  %v1263_v54 = vld [vmem:[#allocation2 + $0x9c] sm:$0xf]  ;;  %v670_v15 = vadd.f32 %v6466_v45, %v634_v3 }
  0xdd   : > { %v1133_v21 = vsel %vm6508_vm3, %v822_v17, %v1132_v2  ;;  %v767_v22 = vpack.c.bf16 %v679_v18, %v679_v18  ;;  %v1240_v25 = vld [vmem:[#allocation2 + $0x10] sm:$0xf]  ;;  %1215 = vst [vmem:[#allocation2 + $0xa4] sm:$0x1] %v1214_v33  ;;  %v1601_v4 = vshrl.u32 %v1263_v54, 16  ;;  %v426_v7 = vld [vmem:[%s6385_s11 + $0xb8] sm:$0xff] }
  0xde   : > { %1134 = vst [vmem:[#allocation2 + $0x18] sm:$0xf] %v1133_v21  ;;  %v534_v27 = vpop.f32.mrf.mxu0  ;;  %v1270_v28 = vld [vmem:[#allocation2 + $0x14] sm:$0x1]  ;;  %v1322_v29 = vshll.u32 %v1240_v25, 16  ;;  %v1326_v35 = vshrl.u32 %v1240_v25, 16  ;;  %v591_v25 = vpop.f32.mrf.mxu3 }
  0xdf   : > { %v825_v30 = vshrl.u32 %v767_v22, 16  ;;  %v612_v31 = vmul.f32 %v6460_v44, %v534_v27  ;;  %v828_v37 = vshll.u32 %v767_v22, 16  ;;  %v1332_v48 = vshll.u32 %v1270_v28, 16  ;;  %v425_v2 = vld [vmem:[%s6385_s11 + $0xb0] sm:$0xff] }
  0xe0   : > { %v1324_v34 = vrot.slane %v1322_v29, 5  ;;  %v1328_v47 = vrot.slane %v1326_v35, 4  ;;  %v1604_v18 = vshll.u32 %v1263_v54, 16  ;;  %v702_v27 = vmax.f32 %v670_v15, 0.0 }
  0xe1   : > { %v827_v36 = vrot.slane %v825_v30, 7  ;;  %v648_v39 = vadd.f32 %v6466_v45, %v612_v31  ;;  %573 = vmatmul.bf16.gmra.mxu0 %v445_v24  ;;  %v1334_v61 = vrot.slane %v1332_v48, 5  ;;  %v446_v24 = vpack.c.bf16 %v426_v7, %v425_v2  ;;  %v1216_v2 = vld [vmem:[#allocation2 + $0xa8] sm:$0xf] }
  0xe2   : > { %v1325_v52 = vsel %vm6527_vm8, %v1320_v41, %v1324_v34  ;;  %v1329_v53 = vor.u32 %v1328_v47, %v1324_v34  ;;  %v6614_v29 = vrot.slane %v1601_v4, 4  ;;  %v1606_v33 = vrot.slane %v1604_v18, 5 }
  0xe3   : > { %v830_v49 = vor.u32 %v828_v37, %v827_v36  ;;  %v832_v50 = vrot.slane %v827_v36, 4  ;;  %v680_v51 = vmax.f32 %v648_v39, 0.0  ;;  %v3134_v62 = vunpack.c.l.b16 %v1325_v52  ;;  %v6609_v11 = vld [vmem:[#allocation2 + $0xa0] sm:$0xf] }
  0xe4   : > { %v1330_v60 = vrot.slane %v1329_v53, 4  ;;  %v1610_v19 = vshll.u32 %v6609_v11, 16  ;;  %v790_v36 = vpack.c.bf16 %v702_v27, %v702_v27  ;;  %v635_v41 = vmul.f32 %v6460_v44, %v591_v25 }
  0xe5   : > { %v831_v55 = vsel %vm6538_vm9, %v823_v43, %v830_v49  ;;  %v1137_v56 = vsel %vm6551_vm10, %v832_v50, %v1136_v46  ;;  %v768_v57 = vpack.c.bf16 %v680_v51, %v680_v51  ;;  %v1241_v58 = vld [vmem:[#allocation2 + $0x18] sm:$0xf]  ;;  %v1614_v42 = vshrl.u32 %v6609_v11, 16  ;;  %v1282_v49 = vld [vmem:[#allocation2 + $0xa4] sm:$0x1] }
  0xe6   : > { %1135 = vst.msk [vmem:[#allocation2 + $0x1c] sm:$0xf] %vm708_vm0, %v831_v55  ;;  %v536_v59 = vpop.f32.mrf.mxu0  ;;  %v1337_v63 = vshrl.u32 %v1241_v58, 16  ;;  %v1335_v6 = vsel %vm6527_vm8, %v1330_v60, %v1334_v61  ;;  %v1340_v9 = vshll.u32 %v1241_v58, 16  ;;  %v6619_v34 = vrot.slane %v1610_v19, 5 }
  0xe7   : > { %1138 = vst [vmem:[#allocation2 + $0x20] sm:$0x1] %v1137_v56  ;;  %v834_v0 = vshrl.u32 %v768_v57, 16  ;;  %v613_v1 = vmul.f32 %v6460_v44, %v536_v59  ;;  %v837_v5 = vshll.u32 %v768_v57, 16  ;;  %v3135_v14 = vunpack.c.l.b16 %v1335_v6  ;;  %v1143_v58 = vld [vmem:[#allocation2 + $0x2c] sm:$0x1] }
  0xe8   : > { %v1339_v8 = vrot.slane %v1337_v63, 4  ;;  %v1342_v17 = vrot.slane %v1340_v9, 5  ;;  %v1021_v50 = vshrl.u32 %v790_v36, 16  ;;  %v1024_v51 = vshll.u32 %v790_v36, 16 }
  0xe9   : > { %v836_v12 = vrot.slane %v834_v0, 7  ;;  %v649_v13 = vadd.f32 %v6466_v45, %v613_v1  ;;  %v3165_v22 = vpack.c.b16 %v3135_v14, %v3134_v62  ;;  %v671_v61 = vadd.f32 %v6466_v45, %v635_v41 }
  0xea   : > { %v1343_v28 = vor.u32 %v1342_v17, %v1339_v8  ;;  %v6625_v59 = vrot.slane %v1021_v50, 7  ;;  %v1620_v62 = vshll.u32 %v1282_v49, 16  ;;  %v1607_v18 = vor.u32 %v1606_v33, %v6614_v29 }
  0xeb   : > { %v839_v20 = vor.u32 %v837_v5, %v836_v12  ;;  %v681_v21 = vmax.f32 %v649_v13, 0.0  ;;  %v840_v26 = vrot.slane %v836_v12, 4  ;;  %3182 = vrot.lane.b32.xlu0 %v3165_v22, %s6225_s20  ;;  %v703_v7 = vmax.f32 %v671_v61, 0.0  ;;  %v594_v13 = vpop.f32.mrf.mxu3 }
  0xec   : > { %v1344_v47 = vrot.slane %v1343_v28, 4  ;;  %v1026_v4 = vor.u32 %v1024_v51, %v6625_v59  ;;  %v636_v17 = vmul.f32 %v6460_v44, %v594_v13  ;;  %v1608_v29 = vrot.slane %v1607_v18, 4 }
  0xed   : > { %v1140_v30 = vsel %vm6508_vm3, %v839_v20, %v1139_v16  ;;  %v769_v31 = vpack.c.bf16 %v681_v21, %v681_v21  ;;  %v1242_v38 = vld [vmem:[#allocation2 + $0x1c] sm:$0xf]  ;;  %v791_v16 = vpack.c.bf16 %v703_v7, %v703_v7  ;;  %v1027_v33 = vrot.slane %v6625_v59, 4  ;;  %v1223_v7 = vld [vmem:[#allocation2 + $0xb4] sm:$0xf] }
  0xee   : > { %1141 = vst [vmem:[#allocation2 + $0x24] sm:$0xf] %v1140_v30  ;;  %v539_v35 = vpop.f32.mrf.mxu0  ;;  %v1271_v37 = vld [vmem:[#allocation2 + $0x20] sm:$0x1]  ;;  %v1346_v39 = vshll.u32 %v1242_v38, 16  ;;  %v1350_v48 = vshrl.u32 %v1242_v38, 16  ;;  %v1217_v15 = vsel %vm6508_vm3, %v1026_v4, %v1216_v2  ;;  %v672_v27 = vadd.f32 %v6466_v45, %v636_v17 }
  0xef   : > { %v842_v43 = vshrl.u32 %v769_v31, 16  ;;  %v614_v46 = vmul.f32 %v6460_v44, %v539_v35  ;;  %v1356_v53 = vshll.u32 %v1271_v37, 16  ;;  %v845_v55 = vshll.u32 %v769_v31, 16  ;;  %1218 = vst [vmem:[#allocation2 + $0xa8] sm:$0xf] %v1217_v15 }
  0xf0   : > { %v1348_v52 = vrot.slane %v1346_v39, 5  ;;  %v1352_v57 = vrot.slane %v1350_v48, 4  ;;  %v1029_v25 = vshrl.u32 %v791_v16, 16  ;;  %v1146_v30 = vld [vmem:[#allocation2 + $0x30] sm:$0xf]  ;;  %v1616_v38 = vrot.slane %v1614_v42, 4 }
  0xf1   : > { %v844_v54 = vrot.slane %v842_v43, 7  ;;  %v650_v56 = vadd.f32 %v6466_v45, %v614_v46  ;;  %578 = vmatmul.bf16.gmra.mxu0 %v446_v24  ;;  %v1358_v5 = vrot.slane %v1356_v53, 5  ;;  %v704_v37 = vmax.f32 %v672_v27, 0.0  ;;  %v1220_v46 = vld [vmem:[#allocation2 + $0xb0] sm:$0x1] }
  0xf2   : > { %v1349_v60 = vsel %vm6527_vm8, %v1344_v47, %v1348_v52  ;;  %v1353_v3 = vor.u32 %v1352_v57, %v1348_v52  ;;  %v1031_v36 = vrot.slane %v1029_v25, 7  ;;  %v1613_v47 = vsel %vm6527_vm8, %v1608_v29, %v6619_v34 }
  0xf3   : > { %v847_v63 = vor.u32 %v845_v55, %v844_v54  ;;  %v849_v0 = vrot.slane %v844_v54, 4  ;;  %v682_v1 = vmax.f32 %v650_v56, 0.0  ;;  %v3136_v6 = vunpack.c.l.b16 %v1349_v60 }
  0xf4   : > { %v1354_v12 = vrot.slane %v1353_v3, 4  ;;  %v1622_v48 = vrot.slane %v1620_v62, 5  ;;  %v1036_v50 = vrot.slane %v1031_v36, 4  ;;  %v792_v42 = vpack.c.bf16 %v704_v37, %v704_v37 }
  0xf5   : > { %v848_v8 = vsel %vm6538_vm9, %v840_v26, %v847_v63  ;;  %v1144_v9 = vsel %vm6551_vm10, %v849_v0, %v1143_v58  ;;  %v770_v11 = vpack.c.bf16 %v682_v1, %v682_v1  ;;  %v1032_v26 = vshll.u32 %v791_v16, 16  ;;  %v1243_v39 = vld [vmem:[#allocation2 + $0x24] sm:$0xf] }
  0xf6   : > { %1142 = vst.msk [vmem:[#allocation2 + $0x28] sm:$0xf] %vm708_vm0, %v848_v8  ;;  %v541_v14 = vpop.f32.mrf.mxu0  ;;  %v1359_v22 = vsel %vm6527_vm8, %v1354_v12, %v1358_v5  ;;  %v1617_v51 = vor.u32 %v1616_v38, %v6619_v34  ;;  %v3158_v54 = vunpack.c.l.b16 %v1613_v47  ;;  %v1361_v56 = vshrl.u32 %v1243_v39, 16  ;;  %v1150_v12 = vld [vmem:[#allocation2 + $0x38] sm:$0x1] }
  0xf7   : > { %1145 = vst [vmem:[#allocation2 + $0x2c] sm:$0x1] %v1144_v9  ;;  %v851_v19 = vshrl.u32 %v770_v11, 16  ;;  %v854_v20 = vshll.u32 %v770_v11, 16  ;;  %v615_v21 = vmul.f32 %v6460_v44, %v541_v14  ;;  %v3137_v24 = vunpack.c.l.b16 %v1359_v22 }
  0xf8   : > { %v1034_v49 = vor.u32 %v1032_v26, %v1031_v36  ;;  %v1221_v59 = vsel %vm6551_vm10, %v1036_v50, %v1220_v46  ;;  %v1038_v60 = vshrl.u32 %v792_v42, 16  ;;  %v1041_v61 = vshll.u32 %v792_v42, 16  ;;  %v1153_v50 = vld [vmem:[#allocation2 + $0x3c] sm:$0xf] }
  0xf9   : > { %v6644_v28 = vrot.slane %v851_v19, 7  ;;  %v651_v31 = vadd.f32 %v6466_v45, %v615_v21  ;;  %v3166_v35 = vpack.c.b16 %v3137_v24, %v3136_v6  ;;  %v1618_v0 = vrot.slane %v1617_v51, 4  ;;  %1222 = vst [vmem:[#allocation2 + $0xb0] sm:$0x1] %v1221_v59  ;;  %v596_v21 = vpop.f32.mrf.mxu3 }
  0xfa   : > { %v1035_v58 = vsel %vm6538_vm9, %v1027_v33, %v1034_v49  ;;  %v6662_v1 = vrot.slane %v1038_v60, 7  ;;  %v1363_v2 = vrot.slane %v1361_v56, 4  ;;  %v1364_v3 = vshll.u32 %v1243_v39, 16 }
  0xfb   : > { %v856_v41 = vor.u32 %v854_v20, %v6644_v28  ;;  %v683_v43 = vmax.f32 %v651_v31, 0.0  ;;  %3184 = vrot.lane.b32.xlu1 %v3166_v35, %s6225_s20  ;;  %1219 = vst.msk [vmem:[#allocation2 + $0xac] sm:$0xf] %vm708_vm0, %v1035_v58  ;;  %v1623_v8 = vsel %vm6527_vm8, %v1618_v0, %v1622_v48  ;;  %v857_v11 = vrot.slane %v6644_v28, 4 }
  0xfc   : > { %v1043_v13 = vor.u32 %v1041_v61, %v6662_v1  ;;  %v3159_v14 = vunpack.c.l.b16 %v1623_v8  ;;  %v1366_v16 = vrot.slane %v1364_v3, 5  ;;  %v637_v35 = vmul.f32 %v6460_v44, %v596_v21 }
  0xfd   : > { %v1147_v52 = vsel %vm6508_vm3, %v856_v41, %v1146_v30  ;;  %v771_v53 = vpack.c.bf16 %v683_v43, %v683_v43  ;;  %v1244_v55 = vld [vmem:[#allocation2 + $0x28] sm:$0xf] }
  0xfe   : > { %1148 = vst [vmem:[#allocation2 + $0x30] sm:$0xf] %v1147_v52  ;;  %v544_v57 = vpop.f32.mrf.mxu0  ;;  %v1370_v4 = vshll.u32 %v1244_v55, 16  ;;  %v1374_v9 = vshrl.u32 %v1244_v55, 16  ;;  %v1272_v15 = vld [vmem:[#allocation2 + $0x2c] sm:$0x1]  ;;  %v1224_v22 = vsel %vm6508_vm3, %v1043_v13, %v1223_v7  ;;  %v3177_v24 = vpack.c.b16 %v3159_v14, %v3158_v54 }
  0xff   : > { %v859_v62 = vshrl.u32 %v771_v53, 16  ;;  %v862_v63 = vshll.u32 %v771_v53, 16  ;;  %v616_v34 = vmul.f32 %v6460_v44, %v544_v57  ;;  %v1367_v25 = vor.u32 %v1366_v16, %v1363_v2  ;;  %1225 = vst [vmem:[#allocation2 + $0xb4] sm:$0xf] %v1224_v22 }
 0x100   : > { %v1372_v20 = vrot.slane %v1370_v4, 5  ;;  %v1376_v26 = vrot.slane %v1374_v9, 4  ;;  %v1380_v31 = vshll.u32 %v1272_v15, 16  ;;  %3206 = vrot.lane.b32.xlu0 %v3177_v24, %s6225_s20  ;;  %v673_v46 = vadd.f32 %v6466_v45, %v637_v35  ;;  %v1157_v9 = vld [vmem:[#allocation2 + $0x44] sm:$0x1]  ;;  %v5794_v35 = vld [vmem:[%s8337_s4 + $0x38] sm:$0xff] }
 0x101   : > { %v861_v5 = vrot.slane %v859_v62, 7  ;;  %v652_v6 = vadd.f32 %v6466_v45, %v616_v34  ;;  %v1368_v38 = vrot.slane %v1367_v25, 4  ;;  %v434_v34 = vld [vmem:[%s6385_s11 + $0xf8] sm:$0xff]  ;;  %4269 = vmatpush.bf16.msra.mxu1 %v5794_v35  ;;  %5836 = vmatpush.bf16.msrb.mxu3 %v5794_v35 }
 0x102   : > { %v1377_v33 = vor.u32 %v1376_v26, %v1372_v20  ;;  %v1382_v43 = vrot.slane %v1380_v31, 5  ;;  %v705_v51 = vmax.f32 %v673_v46, 0.0  ;;  %v1227_v15 = vld [vmem:[#allocation2 + $0xbc] sm:$0x1] }
 0x103   : > { %v864_v17 = vor.u32 %v862_v63, %v861_v5  ;;  %v866_v18 = vrot.slane %v861_v5, 4  ;;  %v684_v19 = vmax.f32 %v652_v6, 0.0  ;;  %v1373_v39 = vsel %vm6527_vm8, %v1368_v38, %v1372_v20  ;;  %v433_v63 = vld [vmem:[%s6385_s11 + $0xf0] sm:$0xff] }
 0x104   : > { %v1378_v41 = vrot.slane %v1377_v33, 4  ;;  %v3138_v54 = vunpack.c.l.b16 %v1373_v39  ;;  %v793_v56 = vpack.c.bf16 %v705_v51, %v705_v51  ;;  %v450_v3 = vpack.c.bf16 %v434_v34, %v433_v63 }
 0x105   : > { %v865_v27 = vsel %vm6538_vm9, %v857_v11, %v864_v17  ;;  %v1151_v28 = vsel %vm6551_vm10, %v866_v18, %v1150_v12  ;;  %v772_v30 = vpack.c.bf16 %v684_v19, %v684_v19  ;;  %v1044_v5 = vrot.slane %v6662_v1, 4 }
 0x106   : > { %1149 = vst.msk [vmem:[#allocation2 + $0x34] sm:$0xf] %vm708_vm0, %v865_v27  ;;  %v546_v29 = vpop.f32.mrf.mxu0  ;;  %v1383_v42 = vsel %vm6527_vm8, %v1378_v41, %v1382_v43  ;;  %v1046_v61 = vshrl.u32 %v793_v56, 16  ;;  %v1049_v62 = vshll.u32 %v793_v56, 16  ;;  %v1267_v4 = vld [vmem:[#allocation2 + $0xb4] sm:$0xf]  ;;  %598 = vmatmul.bf16.gmra.mxu3 %v450_v3 }
 0x107   : > { %1152 = vst [vmem:[#allocation2 + $0x38] sm:$0x1] %v1151_v28  ;;  %v868_v36 = vshrl.u32 %v772_v30, 16  ;;  %v617_v37 = vmul.f32 %v6460_v44, %v546_v29  ;;  %v871_v48 = vshll.u32 %v772_v30, 16  ;;  %v3139_v55 = vunpack.c.l.b16 %v1383_v42  ;;  %v1160_v41 = vld [vmem:[#allocation2 + $0x48] sm:$0xf] }
 0x108   : > { %v1048_v6 = vrot.slane %v1046_v61, 7  ;;  %v1649_v16 = vshrl.u32 %v1267_v4, 16  ;;  %v1652_v20 = vshll.u32 %v1267_v4, 16  ;;  %v5793_v42 = vld [vmem:[%s8337_s4 + $0x30] sm:$0xff] }
 0x109   : > { %v870_v47 = vrot.slane %v868_v36, 7  ;;  %v653_v49 = vadd.f32 %v6466_v45, %v617_v37  ;;  %v3167_v59 = vpack.c.b16 %v3139_v55, %v3138_v54  ;;  %4270 = vmatpush.bf16.msra.mxu1 %v5793_v42  ;;  %5837 = vmatpush.bf16.msrb.mxu3 %v5793_v42  ;;  %v1167_v42 = vld [vmem:[#allocation2 + $0x54] sm:$0xf] }
 0x10a   : > { %v1051_v13 = vor.u32 %v1049_v62, %v1048_v6  ;;  %v1053_v14 = vrot.slane %v1048_v6, 4  ;;  %v1651_v38 = vrot.slane %v1649_v16, 4  ;;  %v1654_v33 = vrot.slane %v1652_v20, 5  ;;  %v5792_v6 = vld [vmem:[%s8337_s4 + $0x28] sm:$0xff] }
 0x10b   : > { %v873_v52 = vor.u32 %v871_v48, %v870_v47  ;;  %v685_v53 = vmax.f32 %v653_v49, 0.0  ;;  %3186 = vrot.lane.b32.xlu1 %v3167_v59, %s6225_s20  ;;  %v874_v12 = vrot.slane %v870_v47, 4 }
 0x10c   : > { %v1052_v21 = vsel %vm6538_vm9, %v1044_v5, %v1051_v13  ;;  %v1228_v25 = vsel %vm6551_vm10, %v1053_v14, %v1227_v15  ;;  %v1655_v49 = vor.u32 %v1654_v33, %v1651_v38  ;;  %v1164_v13 = vld [vmem:[#allocation2 + $0x50] sm:$0x1] }
 0x10d   : > { %v1154_v57 = vsel %vm6508_vm3, %v873_v52, %v1153_v50  ;;  %v773_v58 = vpack.c.bf16 %v685_v53, %v685_v53  ;;  %1226 = vst.msk [vmem:[#allocation2 + $0xb8] sm:$0xf] %vm708_vm0, %v1052_v21  ;;  %4271 = vmatpush.bf16.msra.mxu1 %v5792_v6  ;;  %5838 = vmatpush.bf16.msrb.mxu3 %v5792_v6 }
 0x10e   : > { %1155 = vst [vmem:[#allocation2 + $0x3c] sm:$0xf] %v1154_v57  ;;  %v549_v60 = vpop.f32.mrf.mxu0 }
 0x10f   : > { %v876_v0 = vshrl.u32 %v773_v58, 16  ;;  %v618_v2 = vmul.f32 %v6460_v44, %v549_v60  ;;  %v879_v8 = vshll.u32 %v773_v58, 16  ;;  %1229 = vst [vmem:[#allocation2 + $0xbc] sm:$0x1] %v1228_v25  ;;  %v5791_v25 = vld [vmem:[%s8337_s4 + $0x20] sm:$0xff] }
 0x111   : > { %v878_v7 = vrot.slane %v876_v0, 7  ;;  %v654_v11 = vadd.f32 %v6466_v45, %v618_v2  ;;  %v1656_v0 = vrot.slane %v1655_v49, 4  ;;  %4272 = vmatpush.bf16.msra.mxu1 %v5791_v25  ;;  %5839 = vmatpush.bf16.msrb.mxu3 %v5791_v25 }
 0x113   : > { %v881_v17 = vor.u32 %v879_v8, %v878_v7  ;;  %v883_v18 = vrot.slane %v878_v7, 4  ;;  %v686_v19 = vmax.f32 %v654_v11, 0.0 }
 0x114   : > { %v1268_v50 = vld [vmem:[#allocation2 + $0xb8] sm:$0xf] }
 0x115   : > { %v882_v1 = vsel %vm6538_vm9, %v874_v12, %v881_v17  ;;  %v1158_v22 = vsel %vm6551_vm10, %v883_v18, %v1157_v9  ;;  %v774_v24 = vpack.c.bf16 %v686_v19, %v686_v19  ;;  %v1247_v26 = vld [vmem:[#allocation2 + $0x3c] sm:$0xf]  ;;  %v1658_v54 = vshll.u32 %v1268_v50, 16 }
 0x116   : > { %1156 = vst.msk [vmem:[#allocation2 + $0x40] sm:$0xf] %vm708_vm0, %v882_v1  ;;  %v551_v27 = vpop.f32.mrf.mxu0  ;;  %v1409_v28 = vshrl.u32 %v1247_v26, 16  ;;  %v1412_v30 = vshll.u32 %v1247_v26, 16  ;;  %v1662_v55 = vshrl.u32 %v1268_v50, 16 }
 0x117   : > { %1159 = vst [vmem:[#allocation2 + $0x44] sm:$0x1] %v1158_v22  ;;  %v885_v31 = vshrl.u32 %v774_v24, 16  ;;  %v619_v29 = vmul.f32 %v6460_v44, %v551_v27  ;;  %v888_v37 = vshll.u32 %v774_v24, 16  ;;  %v1284_v34 = vld [vmem:[#allocation2 + $0xbc] sm:$0x1] }
 0x118   : > { %v1411_v43 = vrot.slane %v1409_v28, 4  ;;  %v1414_v46 = vrot.slane %v1412_v30, 5  ;;  %v1660_v4 = vrot.slane %v1658_v54, 5  ;;  %v1664_v5 = vrot.slane %v1662_v55, 4 }
 0x119   : > { %v887_v36 = vrot.slane %v885_v31, 7  ;;  %v655_v39 = vadd.f32 %v6466_v45, %v619_v29  ;;  %v1668_v11 = vshll.u32 %v1284_v34, 16 }
 0x11a   : > { %v1415_v58 = vor.u32 %v1414_v46, %v1411_v43  ;;  %v1665_v16 = vor.u32 %v1664_v5, %v1660_v4  ;;  %v5790_v46 = vld [vmem:[%s8337_s4 + $0x18] sm:$0xff] }
 0x11b   : > { %v890_v47 = vor.u32 %v888_v37, %v887_v36  ;;  %v687_v48 = vmax.f32 %v655_v39, 0.0  ;;  %v891_v12 = vrot.slane %v887_v36, 4  ;;  %v1670_v24 = vrot.slane %v1668_v11, 5  ;;  %4273 = vmatpush.bf16.msra.mxu1 %v5790_v46  ;;  %5840 = vmatpush.bf16.msrb.mxu3 %v5790_v46  ;;  %v6751_v11 = vld [vmem:[#allocation6] ss:$0 sm:$0xff] }
 0x11c   : > { %v1416_v14 = vrot.slane %v1415_v58, 4  ;;  %v1666_v22 = vrot.slane %v1665_v16, 4 }
 0x11d   : > { %v1161_v51 = vsel %vm6508_vm3, %v890_v47, %v1160_v41  ;;  %v775_v52 = vpack.c.bf16 %v687_v48, %v687_v48  ;;  %v1248_v53 = vld [vmem:[#allocation2 + $0x40] sm:$0xf]  ;;  %v1661_v41 = vsel %vm6527_vm8, %v1656_v0, %v1660_v4  ;;  %v6745_v0 = vld [vmem:[#allocation3] ss:$0 sm:$0xff] }
 0x11e   : > { %1162 = vst [vmem:[#allocation2 + $0x48] sm:$0xf] %v1161_v51  ;;  %v554_v56 = vpop.f32.mrf.mxu0  ;;  %v1274_v57 = vld [vmem:[#allocation2 + $0x44] sm:$0x1]  ;;  %v1418_v59 = vshll.u32 %v1248_v53, 16  ;;  %v1422_v60 = vshrl.u32 %v1248_v53, 16  ;;  %v1671_v43 = vsel %vm6527_vm8, %v1666_v22, %v1670_v24  ;;  %v3162_v54 = vunpack.c.l.b16 %v1661_v41 }
 0x11f   : > { %v893_v61 = vshrl.u32 %v775_v52, 16  ;;  %v620_v62 = vmul.f32 %v6460_v44, %v554_v56  ;;  %v1428_v63 = vshll.u32 %v1274_v57, 16  ;;  %v896_v8 = vshll.u32 %v775_v52, 16  ;;  %v5789_v56 = vld [vmem:[%s8337_s4 + $0x10] sm:$0xff]  ;;  %v5787_v22 = vld [vmem:[%s8337_s4] sm:$0xff] }
 0x120   : > { %v1420_v2 = vrot.slane %v1418_v59, 5  ;;  %v1424_v3 = vrot.slane %v1422_v60, 4  ;;  %v3163_v55 = vunpack.c.l.b16 %v1671_v43  ;;  %4274 = vmatpush.bf16.msra.mxu1 %v5789_v56  ;;  %5841 = vmatpush.bf16.msrb.mxu3 %v5789_v56 }
 0x121   : > { %v895_v7 = vrot.slane %v893_v61, 7  ;;  %v656_v9 = vadd.f32 %v6466_v45, %v620_v62  ;;  %v1430_v20 = vrot.slane %v1428_v63, 5 }
 0x122   : > { %v1425_v15 = vor.u32 %v1424_v3, %v1420_v2  ;;  %v1421_v21 = vsel %vm6527_vm8, %v1416_v14, %v1420_v2  ;;  %v3179_v3 = vpack.c.b16 %v3163_v55, %v3162_v54 }
 0x123   : > { %v898_v17 = vor.u32 %v896_v8, %v895_v7  ;;  %v900_v18 = vrot.slane %v895_v7, 4  ;;  %v688_v19 = vmax.f32 %v656_v9, 0.0  ;;  %v3142_v37 = vunpack.c.l.b16 %v1421_v21  ;;  %v5788_v7 = vld [vmem:[%s8337_s4 + $0x8] sm:$0xff] }
 0x124   : > { %v1426_v1 = vrot.slane %v1425_v15, 4  ;;  %4275 = vmatpush.bf16.msra.mxu1 %v5788_v7  ;;  %5842 = vmatpush.bf16.msrb.mxu3 %v5788_v7  ;;  %v5739_v7 = vld [vmem:[#allocation2] sm:$0xff] }
 0x125   : > { %v899_v26 = vsel %vm6538_vm9, %v891_v12, %v898_v17  ;;  %v1165_v27 = vsel %vm6551_vm10, %v900_v18, %v1164_v13  ;;  %v776_v28 = vpack.c.bf16 %v688_v19, %v688_v19  ;;  %v1249_v30 = vld [vmem:[#allocation2 + $0x48] sm:$0xf]  ;;  %v1171_v13 = vld [vmem:[#allocation2 + $0x5c] sm:$0x1] }
 0x126   : > { %1163 = vst.msk [vmem:[#allocation2 + $0x4c] sm:$0xf] %vm708_vm0, %v899_v26  ;;  %v556_v31 = vpop.f32.mrf.mxu0  ;;  %v1431_v29 = vsel %vm6527_vm8, %v1426_v1, %v1430_v20  ;;  %v1433_v38 = vshrl.u32 %v1249_v30, 16  ;;  %v1436_v33 = vshll.u32 %v1249_v30, 16 }
 0x127   : > { %1166 = vst [vmem:[#allocation2 + $0x50] sm:$0x1] %v1165_v27  ;;  %v902_v35 = vshrl.u32 %v776_v28, 16  ;;  %v621_v36 = vmul.f32 %v6460_v44, %v556_v31  ;;  %v3143_v39 = vunpack.c.l.b16 %v1431_v29  ;;  %v905_v48 = vshll.u32 %v776_v28, 16 }
 0x128   : > { %v1435_v44 = vrot.slane %v1433_v38, 4  ;;  %v1438_v51 = vrot.slane %v1436_v33, 5  ;;  %4276 = vmatpush.bf16.msra.mxu1 %v5787_v22  ;;  %5843 = vmatpush.bf16.msrb.mxu3 %v5787_v22 }
 0x129   : > { %v904_v47 = vrot.slane %v902_v35, 7  ;;  %v657_v49 = vadd.f32 %v6466_v45, %v621_v36  ;;  %v3169_v50 = vpack.c.b16 %v3143_v39, %v3142_v37  ;;  %v1174_v39 = vld [vmem:[#allocation2 + $0x60] sm:$0xf] }
 0x12a   : > { %v1439_v61 = vor.u32 %v1438_v51, %v1435_v44 }
 0x12b   : > { %v907_v52 = vor.u32 %v905_v48, %v904_v47  ;;  %v689_v53 = vmax.f32 %v657_v49, 0.0  ;;  %3190 = vrot.lane.b32.xlu1 %v3169_v50, %s6225_s20  ;;  %v908_v16 = vrot.slane %v904_v47, 4 }
 0x12c   : > { %v1440_v14 = vrot.slane %v1439_v61, 4 }
 0x12d   : > { %v1168_v57 = vsel %vm6508_vm3, %v907_v52, %v1167_v42  ;;  %v777_v45 = vpack.c.bf16 %v689_v53, %v689_v53  ;;  %v1250_v58 = vld [vmem:[#allocation2 + $0x4c] sm:$0xf]  ;;  %v5767_v42 = vld [vmem:[#allocation2 + $0x9c] sm:$0xff]  ;;  %v1178_v53 = vld [vmem:[#allocation2 + $0x68] sm:$0x1] }
 0x12e   : > { %1169 = vst [vmem:[#allocation2 + $0x54] sm:$0xf] %v1168_v57  ;;  %v559_v59 = vpop.f32.mrf.mxu0  ;;  %v1275_v60 = vld [vmem:[#allocation2 + $0x50] sm:$0x1]  ;;  %v1442_v62 = vshll.u32 %v1250_v58, 16  ;;  %v1446_v63 = vshrl.u32 %v1250_v58, 16 }
 0x12f   : > { %v910_v34 = vshrl.u32 %v777_v45, 16  ;;  %v622_v2 = vmul.f32 %v6745_v0, %v559_v59  ;;  %v1452_v6 = vshll.u32 %v1275_v60, 16  ;;  %v913_v9 = vshll.u32 %v777_v45, 16 }
 0x130   : > { %v1444_v4 = vrot.slane %v1442_v62, 5  ;;  %v1448_v5 = vrot.slane %v1446_v63, 4 }
 0x131   : > { %v912_v8 = vrot.slane %v910_v34, 7  ;;  %v658_v12 = vadd.f32 %v6751_v11, %v622_v2  ;;  %v1454_v1 = vrot.slane %v1452_v6, 5 }
 0x132   : > { %v1449_v15 = vor.u32 %v1448_v5, %v1444_v4  ;;  %v1445_v20 = vsel %vm6527_vm8, %v1440_v14, %v1444_v4 }
 0x133   : > { %v915_v17 = vor.u32 %v913_v9, %v912_v8  ;;  %v917_v18 = vrot.slane %v912_v8, 4  ;;  %v690_v19 = vmax.f32 %v658_v12, 0.0  ;;  %3210 = vrot.lane.b32.xlu1 %v3179_v3, %s6225_s20  ;;  %v3144_v29 = vunpack.c.l.b16 %v1445_v20  ;;  %v2460_v3 = vld [vmem:[#allocation2 + $0x18] sm:$0xf]  ;;  %v2461_v8 = vld [vmem:[#allocation2 + $0x1c] sm:$0xf] }
 0x134   : > { %v1450_v21 = vrot.slane %v1449_v15, 4  ;;  %v1181_v9 = vld [vmem:[#allocation2 + $0x6c] sm:$0xf]  ;;  %v2518_v22 = vshll.u32 %v2461_v8, 16 }
 0x135   : > { %v916_v24 = vsel %vm6538_vm9, %v908_v16, %v915_v17  ;;  %v1172_v25 = vsel %vm6551_vm10, %v917_v18, %v1171_v13  ;;  %v778_v26 = vpack.c.bf16 %v690_v19, %v690_v19  ;;  %v2509_v17 = vshrl.u32 %v2460_v3, 16 }
 0x136   : > { %1170 = vst.msk [vmem:[#allocation2 + $0x58] sm:$0xf] %vm708_vm0, %v916_v24  ;;  %v561_v27 = vpop.f32.mrf.mxu0  ;;  %v1455_v28 = vsel %vm6527_vm8, %v1450_v21, %v1454_v1  ;;  %v2512_v18 = vshll.u32 %v2460_v3, 16 }
 0x137   : > { %1173 = vst [vmem:[#allocation2 + $0x5c] sm:$0x1] %v1172_v25  ;;  %v919_v30 = vshrl.u32 %v778_v26, 16  ;;  %v623_v31 = vmul.f32 %v6745_v0, %v561_v27  ;;  %v3145_v38 = vunpack.c.l.b16 %v1455_v28  ;;  %v922_v35 = vshll.u32 %v778_v26, 16 }
 0x139   : > { %v921_v33 = vrot.slane %v919_v30, 7  ;;  %v659_v36 = vadd.f32 %v6751_v11, %v623_v31  ;;  %v3170_v37 = vpack.c.b16 %v3145_v38, %v3144_v29 }
 0x13b   : > { %v924_v41 = vor.u32 %v922_v35, %v921_v33  ;;  %v691_v43 = vmax.f32 %v659_v36, 0.0  ;;  %3192 = vrot.lane.b32.xlu0 %v3170_v37, %s6225_s20  ;;  %v925_v54 = vrot.slane %v921_v33, 4  ;;  %v2522_v35 = vshrl.u32 %v2461_v8, 16 }
 0x13c   : > { %v3181_v16 = vpop.permute.xlu0 %3180 }
 0x13d   : > { %v1175_v46 = vsel %vm6508_vm3, %v924_v41, %v1174_v39  ;;  %v779_v47 = vpack.c.bf16 %v691_v43, %v691_v43  ;;  %v3679_v21 = vsel %vm3676_vm11, %v5739_v7, %v3181_v16  ;;  %v2511_v41 = vrot.slane %v2509_v17, 4  ;;  %v1185_v43 = vld [vmem:[#allocation2 + $0x74] sm:$0x1]  ;;  %v2463_v7 = vld [vmem:[#allocation2 + $0x28] sm:$0xf] }
 0x13e   : > { %1176 = vst [vmem:[#allocation2 + $0x60] sm:$0xf] %v1175_v46  ;;  %v564_v48 = vpop.f32.mrf.mxu0  ;;  %4277 = vmatmul.bf16.vlgmr.msra.gmra.mxu1 %v3679_v21  ;;  %v2492_v16 = vld [vmem:[#allocation2 + $0x20] sm:$0x1]  ;;  %v1188_v17 = vld [vmem:[#allocation2 + $0x78] sm:$0xf] }
 0x13f   : > { %v927_v49 = vshrl.u32 %v779_v47, 16  ;;  %v624_v50 = vmul.f32 %v6745_v0, %v564_v48  ;;  %v930_v51 = vshll.u32 %v779_v47, 16  ;;  %v2514_v48 = vrot.slane %v2512_v18, 5 }
 0x141   : > { %v929_v44 = vrot.slane %v927_v49, 7  ;;  %v660_v52 = vadd.f32 %v6751_v11, %v624_v50  ;;  %v6787_v49 = vrot.slane %v2518_v22, 5  ;;  %v2546_v22 = vshrl.u32 %v2463_v7, 16 }
 0x143   : > { %v932_v55 = vor.u32 %v930_v51, %v929_v44  ;;  %v934_v56 = vrot.slane %v929_v44, 4  ;;  %v692_v57 = vmax.f32 %v660_v52, 0.0  ;;  %3348 = vrot.lane.b32.xlu0 %v5767_v42, %s6225_s20 }
 0x145   : > { %v933_v45 = vsel %vm6538_vm9, %v925_v54, %v932_v55  ;;  %v1179_v58 = vsel %vm6551_vm10, %v934_v56, %v1178_v53  ;;  %v780_v59 = vpack.c.bf16 %v692_v57, %v692_v57  ;;  %v1253_v60 = vld [vmem:[#allocation2 + $0x60] sm:$0xf]  ;;  %v2524_v55 = vrot.slane %v2522_v35, 4 }
 0x146   : > { %1177 = vst.msk [vmem:[#allocation2 + $0x64] sm:$0xf] %vm708_vm0, %v933_v45  ;;  %v566_v61 = vpop.f32.mrf.mxu0  ;;  %v1481_v62 = vshrl.u32 %v1253_v60, 16  ;;  %v1484_v63 = vshll.u32 %v1253_v60, 16 }
 0x147   : > { %1180 = vst [vmem:[#allocation2 + $0x68] sm:$0x1] %v1179_v58  ;;  %v936_v34 = vshrl.u32 %v780_v59, 16  ;;  %v625_v2 = vmul.f32 %v6745_v0, %v566_v61  ;;  %v939_v5 = vshll.u32 %v780_v59, 16  ;;  %v2462_v59 = vld [vmem:[#allocation2 + $0x24] sm:$0xf] }
 0x148   : > { %v1483_v12 = vrot.slane %v1481_v62, 4  ;;  %v1486_v13 = vrot.slane %v1484_v63, 5  ;;  %v2533_v8 = vshrl.u32 %v2462_v59, 16 }
 0x149   : > { %v938_v4 = vrot.slane %v936_v34, 7  ;;  %v661_v6 = vadd.f32 %v6751_v11, %v625_v2 }
 0x14a   : > { %v1487_v26 = vor.u32 %v1486_v13, %v1483_v12 }
 0x14b   : > { %v941_v14 = vor.u32 %v939_v5, %v938_v4  ;;  %v693_v15 = vmax.f32 %v661_v6, 0.0  ;;  %v942_v50 = vrot.slane %v938_v4, 4  ;;  %v2515_v5 = vor.u32 %v2514_v48, %v2511_v41 }
 0x14c   : > { %v1488_v46 = vrot.slane %v1487_v26, 4  ;;  %v2525_v6 = vor.u32 %v2524_v55, %v6787_v49 }
 0x14d   : > { %v1182_v19 = vsel %vm6508_vm3, %v941_v14, %v1181_v9  ;;  %v781_v20 = vpack.c.bf16 %v693_v15, %v693_v15  ;;  %v1254_v1 = vld [vmem:[#allocation2 + $0x64] sm:$0xf]  ;;  %v2536_v9 = vshll.u32 %v2462_v59, 16  ;;  %v6808_v26 = vrot.slane %v2515_v5, 4  ;;  %v2464_v5 = vld [vmem:[#allocation2 + $0x30] sm:$0xf] }
 0x14e   : > { %1183 = vst [vmem:[#allocation2 + $0x6c] sm:$0xf] %v1182_v19  ;;  %v569_v24 = vpop.f32.mrf.mxu0  ;;  %v1277_v25 = vld [vmem:[#allocation2 + $0x68] sm:$0x1]  ;;  %v1490_v27 = vshll.u32 %v1254_v1, 16  ;;  %v1494_v28 = vshrl.u32 %v1254_v1, 16 }
 0x14f   : > { %v944_v30 = vshrl.u32 %v781_v20, 16  ;;  %v626_v31 = vmul.f32 %v6745_v0, %v569_v24  ;;  %v1500_v33 = vshll.u32 %v1277_v25, 16  ;;  %v947_v37 = vshll.u32 %v781_v20, 16  ;;  %v6805_v24 = vld [vmem:[#allocation2 + $0x8] sm:$0x1] }
 0x150   : > { %v1492_v29 = vrot.slane %v1490_v27, 5  ;;  %v1496_v38 = vrot.slane %v1494_v28, 4  ;;  %v2542_v1 = vshll.u32 %v2463_v7, 16  ;;  %v1744_v25 = vrot.slane %v6805_v24, 5  ;;  %v7246_v24 = vld [vmem:[#allocation2 + $0x28] sm:$0xf] }
 0x151   : > { %v946_v36 = vrot.slane %v944_v30, 7  ;;  %v662_v39 = vadd.f32 %v6751_v11, %v626_v31  ;;  %v1502_v54 = vrot.slane %v1500_v33, 5  ;;  %v6810_v27 = vrot.slane %v2525_v6, 4 }
 0x152   : > { %v1497_v47 = vor.u32 %v1496_v38, %v1492_v29  ;;  %v1493_v52 = vsel %vm6527_vm8, %v1488_v46, %v1492_v29  ;;  %v2528_v28 = vshll.u32 %v2492_v16, 16  ;;  %v5740_v29 = vld [vmem:[#allocation2 + $0xc] sm:$0xff]  ;;  %v6814_v33 = vrot.slane %v2533_v8, 4  ;;  %v2465_v16 = vld [vmem:[#allocation2 + $0x34] sm:$0xf] }
 0x153   : > { %v949_v42 = vor.u32 %v947_v37, %v946_v36  ;;  %v951_v44 = vrot.slane %v946_v36, 4  ;;  %v694_v51 = vmax.f32 %v662_v39, 0.0  ;;  %v3148_v3 = vunpack.c.l.b16 %v1493_v52 }
 0x154   : > { %v1498_v53 = vrot.slane %v1497_v47, 4  ;;  %v6816_v35 = vrot.slane %v2536_v9, 5 }
 0x155   : > { %v950_v56 = vsel %vm6538_vm9, %v942_v50, %v949_v42  ;;  %v1186_v57 = vsel %vm6551_vm10, %v951_v44, %v1185_v43  ;;  %v782_v45 = vpack.c.bf16 %v694_v51, %v694_v51  ;;  %v1255_v58 = vld [vmem:[#allocation2 + $0x6c] sm:$0xf]  ;;  %v6819_v50 = vrot.slane %v2542_v1, 5 }
 0x156   : > { %1184 = vst.msk [vmem:[#allocation2 + $0x70] sm:$0xf] %vm708_vm0, %v950_v56  ;;  %v571_v60 = vpop.f32.mrf.mxu0  ;;  %v1503_v61 = vsel %vm6527_vm8, %v1498_v53, %v1502_v54  ;;  %v1505_v62 = vshrl.u32 %v1255_v58, 16  ;;  %v1508_v63 = vshll.u32 %v1255_v58, 16  ;;  %v2548_v42 = vrot.slane %v2546_v22, 4 }
 0x157   : > { %1187 = vst [vmem:[#allocation2 + $0x74] sm:$0x1] %v1186_v57  ;;  %v953_v34 = vshrl.u32 %v782_v45, 16  ;;  %v627_v2 = vmul.f32 %v6745_v0, %v571_v60  ;;  %v3149_v4 = vunpack.c.l.b16 %v1503_v61  ;;  %v956_v13 = vshll.u32 %v782_v45, 16  ;;  %v5755_v57 = vld [vmem:[#allocation2 + $0xc] sm:$0xff] }
 0x158   : > { %v1507_v18 = vrot.slane %v1505_v62, 4  ;;  %v1510_v19 = vrot.slane %v1508_v63, 5  ;;  %v6823_v45 = vrot.slane %v2528_v28, 5  ;;  %v1192_v58 = vld [vmem:[#allocation2 + $0x80] sm:$0x1]  ;;  %v2521_v61 = vsel %vm6527_vm8, %v6808_v26, %v6787_v49 }
 0x159   : > { %v6800_v12 = vrot.slane %v953_v34, 7  ;;  %v663_v14 = vadd.f32 %v6751_v11, %v627_v2  ;;  %v3172_v15 = vpack.c.b16 %v3149_v4, %v3148_v3  ;;  %v2493_v62 = vld [vmem:[#allocation2 + $0x2c] sm:$0x1]  ;;  %v2539_v63 = vor.u32 %v6816_v35, %v6814_v33 }
 0x15a   : > { %v1511_v39 = vor.u32 %v1510_v19, %v1507_v18  ;;  %v2549_v9 = vor.u32 %v2548_v42, %v6819_v50 }
 0x15b   : > { %v958_v20 = vor.u32 %v956_v13, %v6800_v12  ;;  %v695_v21 = vmax.f32 %v663_v14, 0.0  ;;  %3196 = vrot.lane.b32.xlu1 %v3172_v15, %s6225_s20  ;;  %v959_v34 = vrot.slane %v6800_v12, 4  ;;  %v2552_v15 = vshll.u32 %v2493_v62, 16 }
 0x15c   : > { %v1512_v59 = vrot.slane %v1511_v39, 4 }
 0x15d   : > { %v1189_v30 = vsel %vm6508_vm3, %v958_v20, %v1188_v17  ;;  %v783_v31 = vpack.c.bf16 %v695_v21, %v695_v21  ;;  %v1256_v38 = vld [vmem:[#allocation2 + $0x70] sm:$0xf]  ;;  %v3183_v47 = vpop.permute.xlu0 %3182  ;;  %v2557_v21 = vshrl.u32 %v2464_v5, 16 }
 0x15e   : > { %1190 = vst [vmem:[#allocation2 + $0x78] sm:$0xf] %v1189_v30  ;;  %v574_v36 = vpop.f32.mrf.mxu0  ;;  %v1278_v37 = vld [vmem:[#allocation2 + $0x74] sm:$0x1]  ;;  %v1514_v41 = vshll.u32 %v1256_v38, 16  ;;  %v1518_v43 = vshrl.u32 %v1256_v38, 16  ;;  %v3683_v44 = vsel %vm3676_vm11, %v5740_v29, %v3183_v47 }
 0x15f   : > { %v961_v46 = vshrl.u32 %v783_v31, 16  ;;  %v628_v48 = vmul.f32 %v6745_v0, %v574_v36  ;;  %v1524_v53 = vshll.u32 %v1278_v37, 16  ;;  %v964_v55 = vshll.u32 %v783_v31, 16  ;;  %4282 = vmatmul.bf16.gmra.mxu1 %v3683_v44  ;;  %v5756_v37 = vld [vmem:[#allocation2 + $0x18] sm:$0xff] }
 0x160   : > { %v1516_v51 = vrot.slane %v1514_v41, 5  ;;  %v1520_v52 = vrot.slane %v1518_v43, 4  ;;  %v2550_v30 = vrot.slane %v2549_v9, 4  ;;  %v2560_v31 = vshll.u32 %v2464_v5, 16  ;;  %v1195_v41 = vld [vmem:[#allocation2 + $0x84] sm:$0xf] }
 0x161   : > { %v963_v54 = vrot.slane %v961_v46, 7  ;;  %v664_v56 = vadd.f32 %v6751_v11, %v628_v48  ;;  %v1526_v8 = vrot.slane %v1524_v53, 5  ;;  %v2566_v29 = vshll.u32 %v2465_v16, 16 }
 0x162   : > { %v1521_v60 = vor.u32 %v1520_v52, %v1516_v51  ;;  %v1517_v6 = vsel %vm6527_vm8, %v1512_v59, %v1516_v51  ;;  %v2570_v38 = vshrl.u32 %v2465_v16, 16  ;;  %v2540_v47 = vrot.slane %v2539_v63, 4  ;;  %v5741_v59 = vld [vmem:[#allocation2 + $0x18] sm:$0xff] }
 0x163   : > { %v966_v2 = vor.u32 %v964_v55, %v963_v54  ;;  %v968_v3 = vrot.slane %v963_v54, 4  ;;  %v696_v4 = vmax.f32 %v664_v56, 0.0  ;;  %3324 = vrot.lane.b32.xlu1 %v5755_v57, %s6225_s20  ;;  %v3150_v26 = vunpack.c.l.b16 %v1517_v6 }
 0x164   : > { %v1522_v7 = vrot.slane %v1521_v60, 4  ;;  %v2554_v48 = vrot.slane %v2552_v15, 5  ;;  %v2531_v51 = vsel %vm6527_vm8, %v6810_v27, %v6823_v45  ;;  %v6854_v52 = vunpack.c.l.b16 %v2521_v61 }
 0x165   : > { %v967_v49 = vsel %vm6538_vm9, %v959_v34, %v966_v2  ;;  %v1193_v13 = vsel %vm6551_vm10, %v968_v3, %v1192_v58  ;;  %v784_v12 = vpack.c.bf16 %v696_v4, %v696_v4  ;;  %v1257_v14 = vld [vmem:[#allocation2 + $0x78] sm:$0xf]  ;;  %v2545_v53 = vsel %vm6527_vm8, %v2540_v47, %v6819_v50 }
 0x166   : > { %1191 = vst.msk [vmem:[#allocation2 + $0x7c] sm:$0xf] %vm708_vm0, %v967_v49  ;;  %v576_v17 = vpop.f32.mrf.mxu0  ;;  %v1527_v18 = vsel %vm6527_vm8, %v1522_v7, %v1526_v8  ;;  %v1529_v19 = vshrl.u32 %v1257_v14, 16  ;;  %v1532_v20 = vshll.u32 %v1257_v14, 16  ;;  %v2555_v54 = vsel %vm6527_vm8, %v2550_v30, %v2554_v48  ;;  %v1246_v8 = vld [vmem:[#allocation2 + $0x34] sm:$0xf] }
 0x167   : > { %1194 = vst [vmem:[#allocation2 + $0x80] sm:$0x1] %v1193_v13  ;;  %v970_v1 = vshrl.u32 %v784_v12, 16  ;;  %v629_v22 = vmul.f32 %v6745_v0, %v576_v17  ;;  %v3151_v28 = vunpack.c.l.b16 %v1527_v18  ;;  %v973_v35 = vshll.u32 %v784_v12, 16  ;;  %v5757_v17 = vld [vmem:[#allocation2 + $0x24] sm:$0xff] }
 0x168   : > { %v1531_v43 = vrot.slane %v1529_v19, 4  ;;  %v1534_v46 = vrot.slane %v1532_v20, 5  ;;  %v6861_v55 = vrot.slane %v2557_v21, 4  ;;  %v6863_v56 = vrot.slane %v2560_v31, 5  ;;  %v1199_v19 = vld [vmem:[#allocation2 + $0x8c] sm:$0x1] }
 0x169   : > { %v6844_v33 = vrot.slane %v970_v1, 7  ;;  %v665_v36 = vadd.f32 %v6751_v11, %v629_v22  ;;  %v3173_v39 = vpack.c.b16 %v3151_v28, %v3150_v26  ;;  %v6867_v27 = vrot.slane %v2566_v29, 5  ;;  %v1245_v22 = vld [vmem:[#allocation2 + $0x30] sm:$0xf] }
 0x16a   : > { %v2572_v45 = vrot.slane %v2570_v38, 4  ;;  %v1535_v63 = vor.u32 %v1534_v46, %v1531_v43  ;;  %v6869_v3 = vunpack.c.l.b16 %v2531_v51  ;;  %v6873_v7 = vunpack.c.l.b16 %v2545_v53 }
 0x16b   : > { %v975_v42 = vor.u32 %v973_v35, %v6844_v33  ;;  %v697_v44 = vmax.f32 %v665_v36, 0.0  ;;  %3326 = vrot.lane.b32.xlu1 %v5756_v37, %s6225_s20  ;;  %3198 = vrot.lane.b32.xlu0 %v3173_v39, %s6225_s20  ;;  %v6875_v12 = vunpack.c.l.b16 %v2555_v54  ;;  %v2563_v18 = vor.u32 %v6863_v56, %v6861_v55 }
 0x16c   : > { %v1536_v20 = vrot.slane %v1535_v63, 4  ;;  %v2573_v1 = vor.u32 %v2572_v45, %v6867_v27  ;;  %v1394_v26 = vshll.u32 %v1246_v8, 16  ;;  %v976_v28 = vrot.slane %v6844_v33, 4  ;;  %v2494_v33 = vld [vmem:[#allocation2 + $0x38] sm:$0x1] }
 0x16d   : > { %v1196_v57 = vsel %vm6508_vm3, %v975_v42, %v1195_v41  ;;  %v785_v58 = vpack.c.bf16 %v697_v44, %v697_v44  ;;  %v1258_v60 = vld [vmem:[#allocation2 + $0x7c] sm:$0xf]  ;;  %v3185_v61 = vpop.permute.xlu1 %3184  ;;  %v1398_v37 = vshrl.u32 %v1246_v8, 16  ;;  %v1385_v47 = vshrl.u32 %v1245_v22, 16 }
 0x16e   : > { %1197 = vst [vmem:[#allocation2 + $0x84] sm:$0xf] %v1196_v57  ;;  %v579_v62 = vpop.f32.mrf.mxu0  ;;  %v1279_v50 = vld [vmem:[#allocation2 + $0x80] sm:$0x1]  ;;  %v1538_v34 = vshll.u32 %v1258_v60, 16  ;;  %v1542_v2 = vshrl.u32 %v1258_v60, 16  ;;  %v3687_v6 = vsel %vm3676_vm11, %v5741_v59, %v3185_v61 }
 0x16f   : > { %v978_v4 = vshrl.u32 %v785_v58, 16  ;;  %v630_v5 = vmul.f32 %v6745_v0, %v579_v62  ;;  %v1548_v13 = vshll.u32 %v1279_v50, 16  ;;  %v981_v15 = vshll.u32 %v785_v58, 16  ;;  %4287 = vmatmul.bf16.gmra.mxu1 %v3687_v6  ;;  %v2466_v58 = vld [vmem:[#allocation2 + $0x3c] sm:$0xf] }
 0x170   : > { %v1540_v9 = vrot.slane %v1538_v34, 5  ;;  %v1544_v49 = vrot.slane %v1542_v2, 4  ;;  %v1388_v53 = vshll.u32 %v1245_v22, 16  ;;  %v6893_v59 = vrot.slane %v2573_v1, 4  ;;  %v2467_v62 = vld [vmem:[#allocation2 + $0x40] sm:$0xf] }
 0x171   : > { %v980_v14 = vrot.slane %v978_v4, 7  ;;  %v666_v16 = vadd.f32 %v6751_v11, %v630_v5  ;;  %v1550_v36 = vrot.slane %v1548_v13, 5  ;;  %v2576_v60 = vshll.u32 %v2494_v33, 16  ;;  %v5758_v2 = vld [vmem:[#allocation2 + $0x30] sm:$0xff]  ;;  %v1273_v5 = vld [vmem:[#allocation2 + $0x38] sm:$0x1] }
 0x172   : > { %v1545_v21 = vor.u32 %v1544_v49, %v1540_v9  ;;  %v1541_v38 = vsel %vm6527_vm8, %v1536_v20, %v1540_v9  ;;  %v6895_v45 = vrot.slane %v1394_v26, 5  ;;  %v1400_v61 = vrot.slane %v1398_v37, 4  ;;  %v1202_v6 = vld [vmem:[#allocation2 + $0x90] sm:$0xf] }
 0x173   : > { %v983_v30 = vor.u32 %v981_v15, %v980_v14  ;;  %v985_v31 = vrot.slane %v980_v14, 4  ;;  %v698_v29 = vmax.f32 %v666_v16, 0.0  ;;  %3328 = vrot.lane.b32.xlu1 %v5757_v17, %s6225_s20  ;;  %v3152_v56 = vunpack.c.l.b16 %v1541_v38 }
 0x174   : > { %v1546_v35 = vrot.slane %v1545_v21, 4  ;;  %v1387_v49 = vrot.slane %v1385_v47, 4  ;;  %v1390_v13 = vrot.slane %v1388_v53, 5  ;;  %v2581_v16 = vshrl.u32 %v2466_v58, 16 }
 0x175   : > { %v984_v39 = vsel %vm6538_vm9, %v976_v28, %v983_v30  ;;  %v1200_v41 = vsel %vm6551_vm10, %v985_v31, %v1199_v19  ;;  %v786_v43 = vpack.c.bf16 %v698_v29, %v698_v29  ;;  %v1259_v46 = vld [vmem:[#allocation2 + $0x84] sm:$0xf]  ;;  %v2590_v17 = vshll.u32 %v2467_v62, 16 }
 0x176   : > { %1198 = vst.msk [vmem:[#allocation2 + $0x88] sm:$0xf] %vm708_vm0, %v984_v39  ;;  %v581_v48 = vpop.f32.mrf.mxu0  ;;  %v1551_v42 = vsel %vm6527_vm8, %v1546_v35, %v1550_v36  ;;  %v1553_v44 = vshrl.u32 %v1259_v46, 16  ;;  %v1556_v51 = vshll.u32 %v1259_v46, 16  ;;  %v6903_v19 = vrot.slane %v2563_v18, 4  ;;  %v5742_v46 = vld [vmem:[#allocation2 + $0x24] sm:$0xff] }
 0x177   : > { %1201 = vst [vmem:[#allocation2 + $0x8c] sm:$0x1] %v1200_v41  ;;  %v987_v54 = vshrl.u32 %v786_v43, 16  ;;  %v631_v55 = vmul.f32 %v6745_v0, %v581_v48  ;;  %v3153_v57 = vunpack.c.l.b16 %v1551_v42  ;;  %v990_v63 = vshll.u32 %v786_v43, 16 }
 0x178   : > { %v1555_v8 = vrot.slane %v1553_v44, 4  ;;  %v1558_v9 = vrot.slane %v1556_v51, 5  ;;  %v6905_v20 = vrot.slane %v2576_v60, 5  ;;  %v1404_v21 = vshll.u32 %v1273_v5, 16 }
 0x179   : > { %v6897_v50 = vrot.slane %v987_v54, 7  ;;  %v667_v34 = vadd.f32 %v6751_v11, %v631_v55  ;;  %v3174_v4 = vpack.c.b16 %v3153_v57, %v3152_v56  ;;  %v2594_v1 = vshrl.u32 %v2467_v62, 16  ;;  %v5759_v54 = vld [vmem:[#allocation2 + $0x3c] sm:$0xff]  ;;  %v1206_v57 = vld [vmem:[#allocation2 + $0x98] sm:$0x1] }
 0x17a   : > { %v1401_v30 = vor.u32 %v1400_v61, %v6895_v45  ;;  %v2584_v31 = vshll.u32 %v2466_v58, 16  ;;  %v1559_v38 = vor.u32 %v1558_v9, %v1555_v8  ;;  %v2579_v18 = vsel %vm6527_vm8, %v6893_v59, %v6905_v20 }
 0x17b   : > { %v992_v14 = vor.u32 %v990_v63, %v6897_v50  ;;  %v699_v15 = vmax.f32 %v667_v34, 0.0  ;;  %3330 = vrot.lane.b32.xlu1 %v5758_v2, %s6225_s20  ;;  %3200 = vrot.lane.b32.xlu0 %v3174_v4, %s6225_s20  ;;  %v1391_v39 = vor.u32 %v1390_v13, %v1387_v49  ;;  %v2583_v41 = vrot.slane %v2581_v16, 4  ;;  %v2495_v4 = vld [vmem:[#allocation2 + $0x44] sm:$0x1]  ;;  %v2468_v49 = vld [vmem:[#allocation2 + $0x48] sm:$0xf] }
 0x17c   : > { %v6914_v43 = vrot.slane %v2590_v17, 5  ;;  %v2596_v42 = vrot.slane %v2594_v1, 4  ;;  %v1402_v55 = vrot.slane %v1401_v30, 4  ;;  %v2586_v56 = vrot.slane %v2584_v31, 5  ;;  %v2469_v17 = vld [vmem:[#allocation2 + $0x4c] sm:$0xf] }
 0x17d   : > { %v1203_v22 = vsel %vm6508_vm3, %v992_v14, %v1202_v6  ;;  %v787_v26 = vpack.c.bf16 %v699_v15, %v699_v15  ;;  %v1260_v28 = vld [vmem:[#allocation2 + $0x88] sm:$0xf]  ;;  %v3187_v53 = vpop.permute.xlu1 %3186  ;;  %v1560_v59 = vrot.slane %v1559_v38, 4  ;;  %v1406_v61 = vrot.slane %v1404_v21, 5 }
 0x17e   : > { %1204 = vst [vmem:[#allocation2 + $0x90] sm:$0xf] %v1203_v22  ;;  %v1280_v29 = vld [vmem:[#allocation2 + $0x8c] sm:$0x1]  ;;  %v1562_v35 = vshll.u32 %v1260_v28, 16  ;;  %v1566_v36 = vshrl.u32 %v1260_v28, 16  ;;  %v3691_v58 = vsel %vm3676_vm11, %v5742_v46, %v3187_v53  ;;  %v2597_v9 = vor.u32 %v2596_v42, %v6914_v43 }
 0x17f   : > { %v995_v37 = vshrl.u32 %v787_v26, 16  ;;  %v1572_v48 = vshll.u32 %v1280_v29, 16  ;;  %v998_v51 = vshll.u32 %v787_v26, 16  ;;  %v993_v62 = vrot.slane %v6897_v50, 4  ;;  %4292 = vmatmul.bf16.gmra.mxu1 %v3691_v58 }
 0x180   : > { %v1564_v33 = vrot.slane %v1562_v35, 5  ;;  %v1568_v47 = vrot.slane %v1566_v36, 4  ;;  %v1392_v2 = vrot.slane %v1391_v39, 4  ;;  %v1407_v15 = vsel %vm6527_vm8, %v1402_v55, %v1406_v61 }
 0x181   : > { %v997_v44 = vrot.slane %v995_v37, 7  ;;  %v1574_v8 = vrot.slane %v1572_v48, 5  ;;  %v2587_v16 = vor.u32 %v2586_v56, %v2583_v41  ;;  %v2600_v22 = vshll.u32 %v2495_v4, 16  ;;  %v5760_v37 = vld [vmem:[#allocation2 + $0x48] sm:$0xff] }
 0x182   : > { %v1569_v60 = vor.u32 %v1568_v47, %v1564_v33  ;;  %v1565_v5 = vsel %vm6527_vm8, %v1560_v59, %v1564_v33  ;;  %v2605_v30 = vshrl.u32 %v2468_v49, 16  ;;  %v2608_v31 = vshll.u32 %v2468_v49, 16  ;;  %v1266_v4 = vld [vmem:[#allocation2 + $0xac] sm:$0xf] }
 0x183   : > { %v1000_v63 = vor.u32 %v998_v51, %v997_v44  ;;  %v1002_v34 = vrot.slane %v997_v44, 4  ;;  %3332 = vrot.lane.b32.xlu1 %v5759_v54, %s6225_s20  ;;  %v3154_v26 = vunpack.c.l.b16 %v1565_v5  ;;  %v2569_v29 = vsel %vm6527_vm8, %v6903_v19, %v6867_v27  ;;  %v1251_v51 = vld [vmem:[#allocation2 + $0x54] sm:$0xf] }
 0x184   : > { %v1570_v6 = vrot.slane %v1569_v60, 4  ;;  %v6935_v38 = vunpack.c.l.b16 %v2579_v18  ;;  %v1397_v35 = vsel %vm6527_vm8, %v1392_v2, %v6895_v45  ;;  %v2598_v36 = vrot.slane %v2597_v9, 4 }
 0x185   : > { %v1001_v13 = vsel %vm6538_vm9, %v993_v62, %v1000_v63  ;;  %v1207_v50 = vsel %vm6551_vm10, %v1002_v34, %v1206_v57  ;;  %v1261_v14 = vld [vmem:[#allocation2 + $0x90] sm:$0xf]  ;;  %v6940_v41 = vunpack.c.l.b16 %v1407_v15  ;;  %v2614_v46 = vshll.u32 %v2469_v17, 16  ;;  %v1265_v57 = vld [vmem:[#allocation2 + $0xa8] sm:$0xf] }
 0x186   : > { %1205 = vst.msk [vmem:[#allocation2 + $0x94] sm:$0xf] %vm708_vm0, %v1001_v13  ;;  %v1575_v20 = vsel %vm6527_vm8, %v1570_v6, %v1574_v8  ;;  %v1577_v21 = vshrl.u32 %v1261_v14, 16  ;;  %v1580_v1 = vshll.u32 %v1261_v14, 16  ;;  %v2618_v33 = vshrl.u32 %v2469_v17, 16 }
 0x187   : > { %1208 = vst [vmem:[#allocation2 + $0x98] sm:$0x1] %v1207_v50  ;;  %v3155_v28 = vunpack.c.l.b16 %v1575_v20  ;;  %v2588_v42 = vrot.slane %v2587_v16, 4  ;;  %v2602_v44 = vrot.slane %v2600_v22, 5  ;;  %v3580_v27 = vpack.c.b16 %v6869_v3, %v6854_v52  ;;  %v6961_v52 = vld [vmem:[#allocation2 + $0x50] sm:$0x1] }
 0x188   : > { %v1579_v47 = vrot.slane %v1577_v21, 4  ;;  %v1582_v48 = vrot.slane %v1580_v1, 5  ;;  %v6946_v45 = vunpack.c.l.b16 %v2569_v29  ;;  %v6948_v19 = vrot.slane %v2605_v30, 4  ;;  %v6980_v15 = vld [vmem:[#allocation2 + $0x58] sm:$0xf] }
 0x189   : > { %v3175_v39 = vpack.c.b16 %v3155_v28, %v3154_v26  ;;  %v6950_v18 = vrot.slane %v2608_v31, 5  ;;  %v3581_v53 = vpack.c.b16 %v6875_v12, %v6873_v7  ;;  %v6954_v54 = vunpack.c.l.b16 %v1397_v35  ;;  %v5761_v16 = vld [vmem:[#allocation2 + $0x54] sm:$0xff] }
 0x18a   : > { %v2593_v55 = vsel %vm6527_vm8, %v2588_v42, %v6914_v43  ;;  %v2603_v56 = vsel %vm6527_vm8, %v2598_v36, %v2602_v44  ;;  %v3582_v58 = vpack.c.b16 %v6935_v38, %v6946_v45  ;;  %v6965_v59 = vrot.slane %v2614_v46, 5  ;;  %v1283_v46 = vld [vmem:[#allocation2 + $0xb0] sm:$0x1]  ;;  %v1684_v44 = vld [vmem:[#allocation2 + $0x90] sm:$0xe]  ;;  %v5818_v12 = vld [vmem:[%s8337_s4 + $0xf8] sm:$0xff] }
 0x18b   : > { %3334 = vrot.lane.b32.xlu1 %v5760_v37, %s6225_s20  ;;  %3202 = vrot.lane.b32.xlu0 %v3175_v39, %s6225_s20  ;;  %v6967_v60 = vrot.slane %v2618_v33, 4  ;;  %v1457_v61 = vshrl.u32 %v1251_v51, 16  ;;  %v1583_v63 = vor.u32 %v1582_v48, %v1579_v47  ;;  %v3168_v2 = vpack.c.b16 %v6940_v41, %v6954_v54  ;;  %v599_v39 = vpop.f32.mrf.mxu3  ;;  %v5801_v7 = vld [vmem:[%s8337_s4 + $0x70] sm:$0xff]  ;;  %v2473_v45 = vld [vmem:[#allocation2 + $0x64] sm:$0xf] }
 0x18c   : > { %v6973_v5 = vunpack.c.l.b16 %v2593_v55  ;;  %v6975_v6 = vunpack.c.l.b16 %v2603_v56  ;;  %v1625_v8 = vshrl.u32 %v1265_v57, 16  ;;  %v2611_v9 = vor.u32 %v6950_v18, %v6948_v19  ;;  %v5802_v56 = vld [vmem:[%s8337_s4 + $0x78] sm:$0xff]  ;;  %4536 = vmatpush.bf16.msrb.mxu0 %v5818_v12  ;;  %v5799_v54 = vld [vmem:[%s8337_s4 + $0x60] sm:$0xff] }
 0x18d   : > { %v1262_v3 = vld [vmem:[#allocation2 + $0x94] sm:$0xf]  ;;  %v1628_v14 = vshll.u32 %v1265_v57, 16  ;;  %v1634_v17 = vshll.u32 %v1266_v4, 16  ;;  %v1638_v20 = vshrl.u32 %v1266_v4, 16  ;;  %v2621_v21 = vor.u32 %v6967_v60, %v6965_v59  ;;  %4358 = vmatpush.bf16.msra.mxu2 %v5802_v56  ;;  %5844 = vmatpush.bf16.msra.mxu3 %v5802_v56  ;;  %v5762_v4 = vld [vmem:[#allocation2 + $0x60] sm:$0xff] }
 0x18e   : > { %v6969_v62 = vld [vmem:[#allocation2 + $0x98] sm:$0x1]  ;;  %v1586_v34 = vshll.u32 %v1262_v3, 16  ;;  %v1590_v43 = vshrl.u32 %v1262_v3, 16  ;;  %v2624_v1 = vshll.u32 %v6961_v52, 16  ;;  %v1584_v22 = vrot.slane %v1583_v63, 4 }
 0x18f   : > { %v1596_v50 = vshll.u32 %v6969_v62, 16  ;;  %v6985_v28 = vrot.slane %v1457_v61, 4  ;;  %v1460_v30 = vshll.u32 %v1251_v51, 16  ;;  %v1627_v31 = vrot.slane %v1625_v8, 4  ;;  %v1230_v56 = vld [vmem:[#allocation2 + $0xc0] sm:$0xf] }
 0x190   : > { %v1588_v49 = vrot.slane %v1586_v34, 5  ;;  %v1592_v13 = vrot.slane %v1590_v43, 4  ;;  %v1466_v29 = vshll.u32 %v6980_v15, 16  ;;  %v1630_v33 = vrot.slane %v1628_v14, 5 }
 0x191   : > { %v1598_v37 = vrot.slane %v1596_v50, 5  ;;  %v638_v47 = vmul.f32 %v6745_v0, %v599_v39  ;;  %v6993_v48 = vrot.slane %v1634_v17, 5  ;;  %v1640_v42 = vrot.slane %v1638_v20, 4  ;;  %v1276_v17 = vld [vmem:[#allocation2 + $0x5c] sm:$0x1]  ;;  %4359 = vmatpush.bf16.msra.mxu2 %v5801_v7  ;;  %5845 = vmatpush.bf16.msra.mxu3 %v5801_v7 }
 0x192   : > { %v1593_v26 = vor.u32 %v1592_v13, %v1588_v49  ;;  %v1589_v35 = vsel %vm6527_vm8, %v1584_v22, %v1588_v49  ;;  %v1825_v51 = vrot.slane %v1262_v3, 5  ;;  %v1828_v19 = vrot.slane %v6969_v62, 5 }
 0x193   : > { %3336 = vrot.lane.b32.xlu1 %v5761_v16, %s6225_s20  ;;  %3596 = vrot.lane.b32.xlu0 %v3580_v27, %s6225_s20  ;;  %v1462_v18 = vrot.slane %v1460_v30, 5  ;;  %v5305_v55 = vrot.slane %v1684_v44, 9  ;;  %v3156_v57 = vunpack.c.l.b16 %v1589_v35  ;;  %v674_v60 = vadd.f32 %v6751_v11, %v638_v47  ;;  %v2470_v35 = vld [vmem:[#allocation2 + $0x54] sm:$0xf] }
 0x194   : > { %v1594_v36 = vrot.slane %v1593_v26, 4  ;;  %v1827_v3 = vrot.slane %v1825_v51, 4  ;;  %v1631_v63 = vor.u32 %v1630_v33, %v1627_v31  ;;  %v1644_v34 = vshll.u32 %v1283_v46, 16  ;;  %v5822_v33 = vld [vmem:[%s8337_s4 + $0x118] sm:$0xff] }
 0x195   : > { %v1470_v62 = vshrl.u32 %v6980_v15, 16  ;;  %v1826_v43 = vsel %vm7004_vm14, %v5305_v55, %v1825_v51  ;;  %v706_v49 = vmax.f32 %v674_v60, 0.0  ;;  %v1641_v13 = vor.u32 %v1640_v42, %v6993_v48  ;;  %4629 = vmatpush.bf16.msrb.mxu1 %v5822_v33 }
 0x196   : > { %v1599_v27 = vsel %vm6527_vm8, %v1594_v36, %v1598_v37  ;;  %v1829_v50 = vsel %vm7004_vm14, %v1827_v3, %v1828_v19  ;;  %v2612_v14 = vrot.slane %v2611_v9, 4  ;;  %v7014_v16 = vrot.slane %v2624_v1, 5  ;;  %v2471_v9 = vld [vmem:[#allocation2 + $0x58] sm:$0xf]  ;;  %v601_v37 = vpop.f32.mrf.mxu3 }
 0x197   : > { %v3157_v52 = vunpack.c.l.b16 %v1599_v27  ;;  %v3236_v20 = vunpack.c.l.b16 %v1826_v43  ;;  %v3237_v22 = vunpack.c.l.b16 %v1829_v50  ;;  %v794_v15 = vpack.c.bf16 %v706_v49, %v706_v49  ;;  %v5800_v27 = vld [vmem:[%s8337_s4 + $0x68] sm:$0xff] }
 0x198   : > { %v2622_v26 = vrot.slane %v2621_v21, 4  ;;  %v1463_v30 = vor.u32 %v1462_v18, %v6985_v28  ;;  %v7022_v31 = vrot.slane %v1466_v29, 5  ;;  %v1632_v1 = vrot.slane %v1631_v63, 4  ;;  %v5763_v63 = vld [vmem:[#allocation2 + $0x6c] sm:$0xff]  ;;  %4360 = vmatpush.bf16.msra.mxu2 %v5800_v27  ;;  %5846 = vmatpush.bf16.msra.mxu3 %v5800_v27 }
 0x199   : > { %v3176_v8 = vpack.c.b16 %v3157_v52, %v3156_v57  ;;  %v1646_v36 = vrot.slane %v1644_v34, 5  ;;  %v1472_v39 = vrot.slane %v1470_v62, 4  ;;  %v7025_v46 = vpack.c.b16 %v3237_v22, %v3236_v20  ;;  %v7075_v20 = vld [vmem:[#allocation2 + $0xc] sm:$0xe] }
 0x19a   : > { %v1058_v21 = vshll.u32 %v794_v15, 16  ;;  %v1642_v28 = vrot.slane %v1641_v13, 4  ;;  %v639_v29 = vmul.f32 %v6745_v0, %v601_v37  ;;  %v2629_v47 = vshrl.u32 %v2470_v35, 16 }
 0x19b   : > { %3338 = vrot.lane.b32.xlu1 %v5762_v4, %s6225_s20  ;;  %3598 = vrot.lane.b32.xlu0 %v3581_v53, %s6225_s20  ;;  %v1055_v53 = vshrl.u32 %v794_v15, 16  ;;  %v2632_v42 = vshll.u32 %v2470_v35, 16  ;;  %v2638_v44 = vshll.u32 %v2471_v9, 16  ;;  %v2642_v51 = vshrl.u32 %v2471_v9, 16  ;;  %v7088_v15 = vpop.permute.xlu0 %3206  ;;  %v2497_v9 = vld [vmem:[#allocation2 + $0x5c] sm:$0x1] }
 0x19c   : > { %3204 = vrot.lane.b32.xlu2 %v3176_v8, %s6225_s20  ;;  %v3583_v18 = vpack.c.b16 %v6975_v6, %v6973_v5  ;;  %v675_v0 = vadd.f32 %v6751_v11, %v639_v29  ;;  %v1476_v55 = vshll.u32 %v1276_v17, 16  ;;  %v2617_v57 = vsel %vm6527_vm8, %v2612_v14, %v6965_v59  ;;  %v7060_v59 = vld [vmem:[#allocation2 + $0x10] sm:$0xf]  ;;  %v2472_v17 = vld [vmem:[#allocation2 + $0x60] sm:$0xf]  ;;  %4361 = vmatpush.bf16.msra.mxu2 %v5799_v54  ;;  %v5798_v29 = vld [vmem:[%s8337_s4 + $0x58] sm:$0xff] }
 0x19d   : > { %v7040_v19 = vrot.slane %v1055_v53, 7  ;;  %v2627_v52 = vsel %vm6527_vm8, %v2622_v26, %v7014_v16  ;;  %v7051_v60 = vrot.slane %v1463_v30, 4  ;;  %v1473_v3 = vor.u32 %v1472_v39, %v7022_v31  ;;  %5847 = vmatpush.bf16.msra.mxu3 %v5799_v54 }
 0x19e   : > { %v1637_v11 = vsel %vm6527_vm8, %v1632_v1, %v6993_v48  ;;  %v1647_v62 = vsel %vm6527_vm8, %v1642_v28, %v1646_v36  ;;  %v707_v43 = vmax.f32 %v675_v0, 0.0  ;;  %v2631_v4 = vrot.slane %v2629_v47, 4 }
 0x19f   : > { %v1060_v34 = vor.u32 %v1058_v21, %v7040_v19  ;;  %v2634_v8 = vrot.slane %v2632_v42, 5  ;;  %v7062_v49 = vrot.slane %v2638_v44, 5  ;;  %v2644_v13 = vrot.slane %v2642_v51, 4  ;;  %v1234_v21 = vld [vmem:[#allocation2 + $0xc8] sm:$0x1]  ;;  %v5764_v44 = vld [vmem:[#allocation2 + $0x78] sm:$0xff] }
 0x1a0   : > { %v795_v50 = vpack.c.bf16 %v707_v43, %v707_v43  ;;  %v7071_v14 = vunpack.c.l.b16 %v2617_v57  ;;  %v7073_v16 = vrot.slane %v1476_v55, 5  ;;  %v7081_v22 = vunpack.c.l.b16 %v2627_v52  ;;  %v2475_v55 = vld [vmem:[#allocation2 + $0x70] sm:$0xf]  ;;  %v2498_v52 = vld [vmem:[#allocation2 + $0x68] sm:$0x1]  ;;  %4362 = vmatpush.bf16.msra.mxu2 %v5798_v29 }
 0x1a1   : > { %v1231_v48 = vsel %vm6508_vm3, %v1060_v34, %v1230_v56  ;;  %v1469_v10 = vsel %vm6527_vm8, %v7051_v60, %v7022_v31  ;;  %v1474_v38 = vrot.slane %v1473_v3, 4  ;;  %v3160_v26 = vunpack.c.l.b16 %v1637_v11  ;;  %v7120_v43 = vld [vmem:[#allocation2 + $0x88] sm:$0xf]  ;;  %5848 = vmatpush.bf16.msra.mxu3 %v5798_v29 }
 0x1a2   : > { %1232 = vst [vmem:[#allocation2 + $0xc0] sm:$0xf] %v1231_v48  ;;  %v3161_v30 = vunpack.c.l.b16 %v1647_v62  ;;  %v1063_v35 = vshrl.u32 %v795_v50, 16  ;;  %v1066_v41 = vshll.u32 %v795_v50, 16  ;;  %v2635_v1 = vor.u32 %v2634_v8, %v2631_v4  ;;  %v2482_v4 = vld [vmem:[#allocation2 + $0x9c] sm:$0xf] }
 0x1a3   : > { %3340 = vrot.lane.b32.xlu1 %v5763_v63, %s6225_s20  ;;  %3600 = vrot.lane.b32.xlu0 %v3582_v58, %s6225_s20  ;;  %v2349_v58 = vrot.slane %v7060_v59, 5  ;;  %v2645_v31 = vor.u32 %v2644_v13, %v7062_v49  ;;  %v2653_v36 = vshrl.u32 %v2472_v17, 16  ;;  %v2656_v37 = vshll.u32 %v2472_v17, 16  ;;  %v5797_v17 = vld [vmem:[%s8337_s4 + $0x50] sm:$0xff] }
 0x1a4   : > { %3188 = vrot.lane.b32.xlu2 %v3168_v2, %s6225_s20  ;;  %v7093_v2 = vld [vmem:[#allocation2 + $0x14] sm:$0x1]  ;;  %v1061_v39 = vrot.slane %v7040_v19, 4  ;;  %v1065_v7 = vrot.slane %v1063_v35, 7  ;;  %v2662_v12 = vshll.u32 %v2473_v45, 16  ;;  %v2666_v53 = vshrl.u32 %v2473_v45, 16  ;;  %4363 = vmatpush.bf16.msra.mxu2 %v5797_v17 }
 0x1a5   : > { %v1479_v28 = vsel %vm6527_vm8, %v1474_v38, %v7073_v16  ;;  %v5309_v33 = vrot.slane %v7075_v20, 9  ;;  %v7106_v47 = vrot.slane %v2349_v58, 4  ;;  %v2352_v42 = vrot.slane %v7093_v2, 5  ;;  %v2474_v16 = vld [vmem:[#allocation2 + $0x6c] sm:$0xf]  ;;  %5849 = vmatpush.bf16.msra.mxu3 %v5797_v17 }
 0x1a6   : > { %v3178_v51 = vpack.c.b16 %v3161_v30, %v3160_v26  ;;  %v1068_v27 = vor.u32 %v1066_v41, %v1065_v7  ;;  %v1070_v19 = vrot.slane %v1065_v7, 4  ;;  %v2648_v0 = vshll.u32 %v2497_v9, 16  ;;  %v2293_v30 = vld [vmem:[#allocation2 + $0x84] sm:$0xe] }
 0x1a7   : > { %v2636_v56 = vrot.slane %v2635_v1, 4  ;;  %v2646_v57 = vrot.slane %v2645_v31, 4  ;;  %v2655_v60 = vrot.slane %v2653_v36, 4  ;;  %v2658_v3 = vrot.slane %v2656_v37, 5  ;;  %v5796_v31 = vld [vmem:[%s8337_s4 + $0x48] sm:$0xff] }
 0x1a8   : > { %v1069_v63 = vsel %vm6538_vm9, %v1061_v39, %v1068_v27  ;;  %v1235_v34 = vsel %vm6551_vm10, %v1070_v19, %v1234_v21  ;;  %v7118_v11 = vrot.slane %v2662_v12, 5  ;;  %v2668_v62 = vrot.slane %v2666_v53, 4  ;;  %v5765_v36 = vld [vmem:[#allocation2 + $0x84] sm:$0xff]  ;;  %v1893_v39 = vld [vmem:[#allocation2 + $0x8c] sm:$0x1]  ;;  %4364 = vmatpush.bf16.msra.mxu2 %v5796_v31 }
 0x1a9   : > { %1233 = vst.msk [vmem:[#allocation2 + $0xc4] sm:$0xf] %vm708_vm0, %v1069_v63  ;;  %v3584_v5 = vpack.c.b16 %v7081_v22, %v7071_v14  ;;  %v2686_v6 = vshll.u32 %v2475_v55, 16  ;;  %v2690_v32 = vshrl.u32 %v2475_v55, 16  ;;  %v3146_v40 = vunpack.c.l.b16 %v1469_v10  ;;  %5850 = vmatpush.bf16.msra.mxu3 %v5796_v31 }
 0x1aa   : > { %1236 = vst [vmem:[#allocation2 + $0xc8] sm:$0x1] %v1235_v34  ;;  %v3147_v13 = vunpack.c.l.b16 %v1479_v28  ;;  %v2641_v48 = vsel %vm6527_vm8, %v2636_v56, %v7062_v49  ;;  %v2650_v50 = vrot.slane %v2648_v0, 5  ;;  %v2659_v14 = vor.u32 %v2658_v3, %v2655_v60  ;;  %v2499_v56 = vld [vmem:[#allocation2 + $0x74] sm:$0x1] }
 0x1ab   : > { %3342 = vrot.lane.b32.xlu1 %v5764_v44, %s6225_s20  ;;  %3602 = vrot.lane.b32.xlu0 %v3583_v18, %s6225_s20  ;;  %v2483_v18 = vld [vmem:[#allocation2 + $0xa0] sm:$0xf]  ;;  %v2672_v22 = vshll.u32 %v2498_v52, 16  ;;  %v2773_v38 = vshrl.u32 %v2482_v4, 16  ;;  %v2776_v45 = vshll.u32 %v2482_v4, 16  ;;  %v2669_v10 = vor.u32 %v2668_v62, %v7118_v11 }
 0x1ac   : > { %3208 = vrot.lane.b32.xlu2 %v3178_v51, %s6225_s20  ;;  %v2651_v26 = vsel %vm6527_vm8, %v2646_v57, %v2650_v50  ;;  %v2419_v35 = vrot.slane %v7120_v43, 5  ;;  %v2782_v49 = vshll.u32 %v2483_v18, 16  ;;  %v2677_v41 = vshrl.u32 %v2474_v16, 16  ;;  %v2477_v51 = vld [vmem:[#allocation2 + $0x7c] sm:$0xf] }
 0x1ad   : > { %v7126_v8 = vpop.permute.xlu0 %3192  ;;  %v7138_v54 = vrot.slane %v2686_v6, 5  ;;  %v2692_v9 = vrot.slane %v2690_v32, 4  ;;  %v2786_v1 = vshrl.u32 %v2483_v18, 16  ;;  %v3171_v37 = vpack.c.b16 %v3147_v13, %v3146_v40  ;;  %v2503_v57 = vld [vmem:[#allocation2 + $0xa4] sm:$0x1] }
 0x1ae   : > { %v2680_v7 = vshll.u32 %v2474_v16, 16  ;;  %v2775_v12 = vrot.slane %v2773_v38, 4  ;;  %v2778_v53 = vrot.slane %v2776_v45, 5  ;;  %v7143_v21 = vrot.slane %v2659_v14, 4  ;;  %v7151_v34 = vld [vmem:[#allocation2 + $0x1c] sm:$0xf] }
 0x1af   : > { %v2674_v28 = vrot.slane %v2672_v22, 5  ;;  %v7145_v29 = vrot.slane %v2782_v49, 5  ;;  %v2788_v44 = vrot.slane %v2786_v1, 4  ;;  %v3558_v27 = vunpack.c.l.b16 %v2641_v48  ;;  %v5795_v18 = vld [vmem:[%s8337_s4 + $0x40] sm:$0xff]  ;;  %v5817_v22 = vld [vmem:[%s8337_s4 + $0xf0] sm:$0xff]  ;;  %v5768_v1 = vld [vmem:[#allocation2 + $0xa8] sm:$0xff] }
 0x1b0   : > { %v3559_v19 = vunpack.c.l.b16 %v2651_v26  ;;  %v2670_v0 = vrot.slane %v2669_v10, 4  ;;  %v5319_v55 = vrot.slane %v2293_v30, 9  ;;  %v2421_v52 = vrot.slane %v2419_v35, 4  ;;  %4365 = vmatpush.bf16.msra.mxu2 %v5795_v18  ;;  %v5766_v30 = vld [vmem:[#allocation2 + $0x90] sm:$0xff]  ;;  %4537 = vmatpush.bf16.msrb.mxu0 %v5817_v22  ;;  %v5935_v22 = vld [vmem:[#allocation2 + $0x4] sm:$0xf] }
 0x1b1   : > { %v2422_v60 = vrot.slane %v1893_v39, 5  ;;  %v2679_v3 = vrot.slane %v2677_v41, 4  ;;  %v2693_v63 = vor.u32 %v2692_v9, %v7138_v54  ;;  %v2682_v43 = vrot.slane %v2680_v7, 5  ;;  %5851 = vmatpush.bf16.msra.mxu3 %v5795_v18  ;;  %v7177_v7 = vpop.permute.xlu1 %3190 }
 0x1b2   : > { %v2779_v4 = vor.u32 %v2778_v53, %v2775_v12  ;;  %v2710_v6 = vshll.u32 %v2477_v51, 16  ;;  %v2714_v32 = vshrl.u32 %v2477_v51, 16  ;;  %v2696_v13 = vshll.u32 %v2499_v56, 16 }
 0x1b3   : > { %3344 = vrot.lane.b32.xlu1 %v5765_v36, %s6225_s20  ;;  %3604 = vrot.lane.b32.xlu0 %v3584_v5, %s6225_s20  ;;  %v2476_v5 = vld [vmem:[#allocation2 + $0x78] sm:$0xf]  ;;  %v2789_v48 = vor.u32 %v2788_v44, %v7145_v29  ;;  %v2792_v50 = vshll.u32 %v2503_v57, 16  ;;  %v3585_v16 = vpack.c.b16 %v3559_v19, %v3558_v27  ;;  %v2665_v17 = vsel %vm6527_vm8, %v7143_v21, %v7118_v11 }
 0x1b4   : > { %3194 = vrot.lane.b32.xlu2 %v3171_v37, %s6225_s20  ;;  %v2675_v14 = vsel %vm6527_vm8, %v2670_v0, %v2674_v28  ;;  %v2420_v38 = vsel %vm7004_vm14, %v5319_v55, %v2419_v35  ;;  %v2423_v45 = vsel %vm7004_vm14, %v2421_v52, %v2422_v60  ;;  %v2694_v26 = vrot.slane %v2693_v63, 4  ;;  %v2500_v35 = vld [vmem:[#allocation2 + $0x80] sm:$0x1]  ;;  %v7196_v44 = vld [vmem:[#allocation2 + $0x18] sm:$0xe] }
 0x1b5   : > { %v3349_v62 = vpop.permute.xlu0 %3348  ;;  %v2701_v10 = vshrl.u32 %v2476_v5, 16  ;;  %v2780_v11 = vrot.slane %v2779_v4, 4  ;;  %v2704_v49 = vshll.u32 %v2476_v5, 16  ;;  %v7175_v41 = vrot.slane %v2710_v6, 5  ;;  %v1878_v52 = vld [vmem:[#allocation2 + $0xac] sm:$0xf] }
 0x1b6   : > { %v7158_v40 = vsel %vm3676_vm11, %v7025_v46, %v3349_v62  ;;  %v2356_v46 = vrot.slane %v7151_v34, 5  ;;  %v2716_v9 = vrot.slane %v2714_v32, 4  ;;  %v2683_v31 = vor.u32 %v2682_v43, %v2679_v3  ;;  %v2479_v3 = vld [vmem:[#allocation2 + $0x88] sm:$0xf]  ;;  %v2488_v63 = vld [vmem:[#allocation2 + $0xc0] sm:$0xf] }
 0x1b7   : > { %v2698_v36 = vrot.slane %v2696_v13, 5  ;;  %v2790_v37 = vrot.slane %v2789_v48, 4  ;;  %v2794_v39 = vrot.slane %v2792_v50, 5  ;;  %v3561_v12 = vunpack.c.l.b16 %v2675_v14  ;;  %v2296_v5 = vld [vmem:[#allocation2 + $0xa8] sm:$0xe]  ;;  %v5769_v14 = vld [vmem:[#allocation2 + $0xb4] sm:$0xff] }
 0x1b8   : > { %v3425_v53 = vunpack.c.l.b16 %v2423_v45  ;;  %v7187_v21 = vsel %vm7004_vm14, %v5309_v33, %v2349_v58  ;;  %v7194_v28 = vsel %vm7004_vm14, %v7106_v47, %v2352_v42  ;;  %v3560_v51 = vunpack.c.l.b16 %v2665_v17  ;;  %v2489_v32 = vld [vmem:[#allocation2 + $0xc4] sm:$0xf] }
 0x1b9   : > { %v3424_v27 = vunpack.c.l.b16 %v2420_v38  ;;  %v2699_v59 = vsel %vm6527_vm8, %v2694_v26, %v2698_v36  ;;  %v2703_v20 = vrot.slane %v2701_v10, 4  ;;  %v2785_v58 = vsel %vm6527_vm8, %v2780_v11, %v7145_v29  ;;  %v2478_v17 = vld [vmem:[#allocation2 + $0x84] sm:$0xf] }
 0x1ba   : > { %v2706_v2 = vrot.slane %v2704_v49, 5  ;;  %v2717_v33 = vor.u32 %v2716_v9, %v7175_v41  ;;  %v2720_v19 = vshll.u32 %v2500_v35, 16  ;;  %v2684_v47 = vrot.slane %v2683_v31, 4 }
 0x1bb   : > { %3606 = vrot.lane.b32.xlu0 %v3585_v16, %s6225_s20  ;;  %3346 = vrot.lane.b32.xlu1 %v5766_v30, %s6225_s20  ;;  %v2795_v42 = vsel %vm6527_vm8, %v2790_v37, %v2794_v39  ;;  %v5310_v0 = vrot.slane %v7196_v44, 9  ;;  %v7210_v55 = vrot.slane %v2356_v46, 4  ;;  %v3586_v56 = vpack.c.b16 %v3561_v12, %v3560_v51  ;;  %v1896_v16 = vld [vmem:[#allocation2 + $0xb0] sm:$0x1]  ;;  %v1672_v30 = vld [vmem:[#allocation2] sm:$0xe]  ;;  %v7220_v39 = vpop.permute.xlu1 %3210 }
 0x1bc   : > { %3350 = vrot.lane.b32.xlu2 %v5768_v1, %s6225_s20  ;;  %v3446_v57 = vpack.c.b16 %v3425_v53, %v3424_v27  ;;  %v3404_v60 = vunpack.c.l.b16 %v7187_v21  ;;  %v3405_v29 = vunpack.c.l.b16 %v7194_v28  ;;  %v2689_v62 = vsel %vm6527_vm8, %v2684_v47, %v7138_v54  ;;  %v2506_v12 = vld [vmem:[#allocation2 + $0xc8] sm:$0x1] }
 0x1bd   : > { %v3563_v43 = vunpack.c.l.b16 %v2699_v59  ;;  %v3570_v4 = vunpack.c.l.b16 %v2785_v58  ;;  %v2440_v6 = vrot.slane %v1878_v52, 5  ;;  %v3571_v18 = vunpack.c.l.b16 %v2795_v42 }
 0x1be   : > { %v2707_v13 = vor.u32 %v2706_v2, %v2703_v20  ;;  %v2718_v48 = vrot.slane %v2717_v33, 4  ;;  %v2722_v50 = vrot.slane %v2720_v19, 5  ;;  %v1741_v38 = vrot.slane %v5935_v22, 5 }
 0x1bf   : > { %v2734_v45 = vshll.u32 %v2479_v3, 16  ;;  %v2738_v26 = vshrl.u32 %v2479_v3, 16  ;;  %v2845_v10 = vshrl.u32 %v2488_v63, 16  ;;  %v5322_v54 = vrot.slane %v2296_v5, 9  ;;  %v1884_v5 = vld [vmem:[#allocation2 + $0x20] sm:$0x1] }
 0x1c0   : > { %v2848_v11 = vshll.u32 %v2488_v63, 16  ;;  %v2854_v49 = vshll.u32 %v2489_v32, 16  ;;  %v2858_v9 = vshrl.u32 %v2489_v32, 16  ;;  %v2442_v1 = vrot.slane %v2440_v6, 4 }
 0x1c1   : > { %v2443_v31 = vrot.slane %v1896_v16, 5  ;;  %v2725_v36 = vshrl.u32 %v2478_v17, 16  ;;  %v2847_v37 = vrot.slane %v2845_v10, 4  ;;  %v2728_v35 = vshll.u32 %v2478_v17, 16  ;;  %v2501_v17 = vld [vmem:[#allocation2 + $0x8c] sm:$0x1] }
 0x1c2   : > { %v2850_v53 = vrot.slane %v2848_v11, 5  ;;  %v7222_v51 = vrot.slane %v2854_v49, 5  ;;  %v2860_v27 = vrot.slane %v2858_v9, 4  ;;  %v5293_v59 = vrot.slane %v1672_v30, 9  ;;  %v7250_v49 = vld [vmem:[#allocation2 + $0x94] sm:$0xf] }
 0x1c3   : > { %3608 = vrot.lane.b32.xlu0 %v3586_v56, %s6225_s20  ;;  %3472 = vrot.lane.b32.xlu1 %v3446_v57, %s6225_s20  ;;  %v1743_v20 = vrot.slane %v1741_v38, 4  ;;  %v7224_v58 = vrot.slane %v2734_v45, 5  ;;  %v2740_v2 = vrot.slane %v2738_v26, 4  ;;  %v3562_v33 = vunpack.c.l.b16 %v2689_v62  ;;  %v5770_v56 = vld [vmem:[#allocation2 + $0xc0] sm:$0xff] }
 0x1c4   : > { %3352 = vrot.lane.b32.xlu2 %v5769_v14, %s6225_s20  ;;  %v2708_v19 = vrot.slane %v2707_v13, 4  ;;  %v2723_v47 = vsel %vm6527_vm8, %v2718_v48, %v2722_v50  ;;  %v2441_v42 = vsel %vm7004_vm14, %v5322_v54, %v2440_v6  ;;  %v2444_v57 = vsel %vm7004_vm14, %v2442_v1, %v2443_v31  ;;  %v2484_v31 = vld [vmem:[#allocation2 + $0xa8] sm:$0xf] }
 0x1c5   : > { %v2851_v52 = vor.u32 %v2850_v53, %v2847_v37  ;;  %v2861_v3 = vor.u32 %v2860_v27, %v7222_v51  ;;  %v2864_v63 = vshll.u32 %v2506_v12, 16  ;;  %v3587_v32 = vpack.c.b16 %v3563_v43, %v3562_v33  ;;  %v5821_v37 = vld [vmem:[%s8337_s4 + $0x110] sm:$0xff] }
 0x1c6   : > { %v3591_v16 = vpack.c.b16 %v3571_v18, %v3570_v4  ;;  %v2727_v62 = vrot.slane %v2725_v36, 4  ;;  %v2730_v13 = vrot.slane %v2728_v35, 5  ;;  %v2713_v48 = vsel %vm6527_vm8, %v2708_v19, %v7175_v41  ;;  %v5816_v36 = vld [vmem:[%s8337_s4 + $0xe8] sm:$0xff]  ;;  %4630 = vmatpush.bf16.msrb.mxu1 %v5821_v37 }
 0x1c7   : > { %v1742_v6 = vsel %vm7004_vm14, %v5293_v59, %v1741_v38  ;;  %v1745_v50 = vsel %vm7004_vm14, %v1743_v20, %v1744_v25  ;;  %v2741_v14 = vor.u32 %v2740_v2, %v7224_v58  ;;  %v3565_v43 = vunpack.c.l.b16 %v2723_v47  ;;  %4538 = vmatpush.bf16.msrb.mxu0 %v5816_v36 }
 0x1c8   : > { %v3430_v4 = vunpack.c.l.b16 %v2441_v42  ;;  %v3431_v18 = vunpack.c.l.b16 %v2444_v57  ;;  %v2359_v22 = vrot.slane %v1884_v5, 5  ;;  %v2744_v41 = vshll.u32 %v2501_v17, 16  ;;  %v1885_v57 = vld [vmem:[#allocation2 + $0x2c] sm:$0x1]  ;;  %v5936_v17 = vld [vmem:[#allocation2 + $0x10] sm:$0xf] }
 0x1c9   : > { %v2852_v45 = vrot.slane %v2851_v52, 4  ;;  %v2862_v38 = vrot.slane %v2861_v3, 4  ;;  %v2866_v26 = vrot.slane %v2864_v63, 5  ;;  %v3564_v25 = vunpack.c.l.b16 %v2713_v48  ;;  %v2285_v52 = vld [vmem:[#allocation2 + $0x24] sm:$0xe] }
 0x1ca   : > { %v3212_v54 = vunpack.c.l.b16 %v1742_v6  ;;  %v3213_v30 = vunpack.c.l.b16 %v1745_v50  ;;  %v2731_v11 = vor.u32 %v2730_v13, %v2727_v62  ;;  %v3436_v9 = vpack.c.b16 %v3405_v29, %v3404_v60  ;;  %v2485_v29 = vld [vmem:[#allocation2 + $0xac] sm:$0xf]  ;;  %v2294_v6 = vld [vmem:[#allocation2 + $0x90] sm:$0xe] }
 0x1cb   : > { %3610 = vrot.lane.b32.xlu0 %v3587_v32, %s6225_s20  ;;  %3618 = vrot.lane.b32.xlu1 %v3591_v16, %s6225_s20  ;;  %v2742_v1 = vrot.slane %v2741_v14, 4  ;;  %v3588_v35 = vpack.c.b16 %v3565_v43, %v3564_v25  ;;  %v2357_v21 = vsel %vm7004_vm14, %v5310_v0, %v2356_v46  ;;  %v2360_v28 = vsel %vm7004_vm14, %v7210_v55, %v2359_v22  ;;  %v1894_v32 = vld [vmem:[#allocation2 + $0x98] sm:$0x1]  ;;  %v5815_v43 = vld [vmem:[%s8337_s4 + $0xe0] sm:$0xff]  ;;  %v7294_v25 = vld [vmem:[#allocation2 + $0x34] sm:$0xf] }
 0x1cc   : > { %3354 = vrot.lane.b32.xlu2 %v5770_v56, %s6225_s20  ;;  %v2363_v60 = vrot.slane %v7246_v24, 5  ;;  %v3449_v12 = vpack.c.b16 %v3431_v18, %v3430_v4  ;;  %v2746_v53 = vrot.slane %v2744_v41, 5  ;;  %v2857_v27 = vsel %vm6527_vm8, %v2852_v45, %v7222_v51  ;;  %v2504_v41 = vld [vmem:[#allocation2 + $0xb0] sm:$0x1]  ;;  %4539 = vmatpush.bf16.msrb.mxu0 %v5815_v43  ;;  %v1897_v43 = vld [vmem:[#allocation2 + $0xbc] sm:$0x1] }
 0x1cd   : > { %v7248_v10 = vpop.permute.xlu1 %3196  ;;  %v2867_v34 = vsel %vm6527_vm8, %v2862_v38, %v2866_v26  ;;  %v3244_v44 = vpack.c.b16 %v3213_v30, %v3212_v54  ;;  %v2732_v46 = vrot.slane %v2731_v11, 4  ;;  %v2426_v0 = vrot.slane %v7250_v49, 5  ;;  %v5814_v54 = vld [vmem:[%s8337_s4 + $0xd8] sm:$0xff] }
 0x1ce   : > { %v2797_v59 = vshrl.u32 %v2484_v31, 16  ;;  %v2747_v55 = vsel %vm6527_vm8, %v2742_v1, %v2746_v53  ;;  %v2800_v20 = vshll.u32 %v2484_v31, 16  ;;  %v2806_v2 = vshll.u32 %v2485_v29, 16  ;;  %v1673_v31 = vld [vmem:[#allocation2 + $0xc] sm:$0xe] }
 0x1cf   : > { %v2810_v33 = vshrl.u32 %v2485_v29, 16  ;;  %v3576_v51 = vunpack.c.l.b16 %v2857_v27  ;;  %v3577_v19 = vunpack.c.l.b16 %v2867_v34  ;;  %v2737_v47 = vsel %vm6527_vm8, %v2732_v46, %v7224_v58 }
 0x1d0   : > { %v3406_v42 = vunpack.c.l.b16 %v2357_v21  ;;  %v3407_v56 = vunpack.c.l.b16 %v2360_v28  ;;  %v2365_v3 = vrot.slane %v2363_v60, 4  ;;  %v3567_v5 = vunpack.c.l.b16 %v2747_v55  ;;  %v5937_v21 = vld [vmem:[#allocation2 + $0x14] sm:$0x1]  ;;  %4540 = vmatpush.bf16.msrb.mxu0 %v5814_v54 }
 0x1d1   : > { %v2428_v16 = vrot.slane %v2426_v0, 4  ;;  %v1748_v62 = vrot.slane %v5936_v17, 5  ;;  %v2799_v13 = vrot.slane %v2797_v59, 4  ;;  %v2802_v50 = vrot.slane %v2800_v20, 5 }
 0x1d2   : > { %v7289_v14 = vrot.slane %v2806_v2, 5  ;;  %v2812_v58 = vrot.slane %v2810_v33, 4  ;;  %v3566_v4 = vunpack.c.l.b16 %v2737_v47  ;;  %v3594_v18 = vpack.c.b16 %v3577_v19, %v3576_v51  ;;  %v1886_v2 = vld [vmem:[#allocation2 + $0x38] sm:$0x1]  ;;  %v7318_v19 = vld [vmem:[#allocation2 + $0x1c] sm:$0xf] }
 0x1d3   : > { %3612 = vrot.lane.b32.xlu0 %v3588_v35, %s6225_s20  ;;  %3478 = vrot.lane.b32.xlu1 %v3449_v12, %s6225_s20  ;;  %v2366_v22 = vrot.slane %v1885_v57, 5  ;;  %v3437_v45 = vpack.c.b16 %v3407_v56, %v3406_v42  ;;  %v2429_v38 = vrot.slane %v1894_v32, 5  ;;  %v5311_v26 = vrot.slane %v2285_v52, 9  ;;  %v2286_v42 = vld [vmem:[#allocation2 + $0x30] sm:$0xe] }
 0x1d4   : > { %3452 = vrot.lane.b32.xlu2 %v3436_v9, %s6225_s20  ;;  %v3589_v30 = vpack.c.b16 %v3567_v5, %v3566_v4  ;;  %v5320_v11 = vrot.slane %v2294_v6, 9  ;;  %v1750_v9 = vrot.slane %v1748_v62, 4  ;;  %v2803_v36 = vor.u32 %v2802_v50, %v2799_v13  ;;  %v7321_v56 = vld [vmem:[#allocation2 + $0x40] sm:$0xf]  ;;  %v5813_v57 = vld [vmem:[%s8337_s4 + $0xd0] sm:$0xff] }
 0x1d5   : > { %v3325_v63 = vpop.permute.xlu1 %3324  ;;  %v2367_v49 = vsel %vm7004_vm14, %v2365_v3, %v2366_v22  ;;  %v2430_v1 = vsel %vm7004_vm14, %v2428_v16, %v2429_v38  ;;  %v2813_v37 = vor.u32 %v2812_v58, %v7289_v14  ;;  %v2816_v35 = vshll.u32 %v2504_v41, 16  ;;  %v1880_v5 = vld [vmem:[#allocation2 + $0xb8] sm:$0xf]  ;;  %4541 = vmatpush.bf16.msrb.mxu0 %v5813_v57 }
 0x1d6   : > { %v3743_v48 = vsel %vm3676_vm11, %v3244_v44, %v3325_v63  ;;  %v1751_v28 = vrot.slane %v5937_v21, 5  ;;  %v2370_v29 = vrot.slane %v7294_v25, 5  ;;  %v2427_v12 = vsel %vm7004_vm14, %v5320_v11, %v2426_v0  ;;  %v2287_v21 = vld [vmem:[#allocation2 + $0x3c] sm:$0xe] }
 0x1d7   : > { %4366 = vmatmul.bf16.vlgmr.msra.gmra.mxu2 %v3743_v48  ;;  %v2364_v53 = vsel %vm7004_vm14, %v5311_v26, %v2363_v60  ;;  %v3427_v27 = vunpack.c.l.b16 %v2430_v1  ;;  %v3409_v34 = vunpack.c.l.b16 %v2367_v49  ;;  %v5294_v44 = vrot.slane %v1673_v31, 9  ;;  %v5812_v48 = vld [vmem:[%s8337_s4 + $0xc8] sm:$0xff]  ;;  %v7344_v31 = vld [vmem:[#allocation2 + $0x44] sm:$0x1] }
 0x1d8   : > { %v1752_v46 = vsel %vm7004_vm14, %v1750_v9, %v1751_v28  ;;  %v2804_v59 = vrot.slane %v2803_v36, 4  ;;  %v2814_v55 = vrot.slane %v2813_v37, 4  ;;  %v2818_v20 = vrot.slane %v2816_v35, 5  ;;  %v2892_v36 = vld [vmem:[#allocation2 + $0x18] sm:$0xe] }
 0x1d9   : > { %v3426_v33 = vunpack.c.l.b16 %v2427_v12  ;;  %v3408_v51 = vunpack.c.l.b16 %v2364_v53  ;;  %v1749_v0 = vsel %vm7004_vm14, %v5294_v44, %v1748_v62  ;;  %v2372_v24 = vrot.slane %v2370_v29, 4  ;;  %v2297_v62 = vld [vmem:[#allocation2 + $0xb4] sm:$0xe]  ;;  %4542 = vmatpush.bf16.msrb.mxu0 %v5812_v48  ;;  %v1862_v12 = vld [vmem:[#allocation2 + $0x4c] sm:$0xf] }
 0x1da   : > { %v2958_v60 = vrot.slane %v7318_v19, 5  ;;  %v3215_v47 = vunpack.c.l.b16 %v1752_v46  ;;  %v2373_v63 = vrot.slane %v1886_v2, 5  ;;  %v3214_v32 = vunpack.c.l.b16 %v1749_v0  ;;  %v1674_v44 = vld [vmem:[#allocation2 + $0x18] sm:$0xe]  ;;  %v1888_v19 = vld [vmem:[#allocation2 + $0x50] sm:$0x1] }
 0x1db   : > { %3614 = vrot.lane.b32.xlu0 %v3589_v30, %s6225_s20  ;;  %3624 = vrot.lane.b32.xlu1 %v3594_v18, %s6225_s20  ;;  %v3447_v52 = vpack.c.b16 %v3427_v27, %v3426_v33  ;;  %v3438_v3 = vpack.c.b16 %v3409_v34, %v3408_v51  ;;  %v2809_v16 = vsel %vm6527_vm8, %v2804_v59, %v7289_v14  ;;  %v2447_v13 = vrot.slane %v1880_v5, 5  ;;  %v5939_v18 = vld [vmem:[#allocation2 + $0x20] sm:$0x1] }
 0x1dc   : > { %3454 = vrot.lane.b32.xlu2 %v3437_v45, %s6225_s20  ;;  %v2819_v17 = vsel %vm6527_vm8, %v2814_v55, %v2818_v20  ;;  %v5312_v50 = vrot.slane %v2286_v42, 9  ;;  %v2374_v58 = vsel %vm7004_vm14, %v2372_v24, %v2373_v63  ;;  %v2377_v14 = vrot.slane %v7321_v56, 5  ;;  %v5940_v45 = vld [vmem:[#allocation2 + $0x1c] sm:$0xf]  ;;  %v5941_v59 = vld [vmem:[#allocation2 + $0x20] sm:$0x1] }
 0x1dd   : > { %v3327_v6 = vpop.permute.xlu1 %3326  ;;  %v2960_v4 = vrot.slane %v2958_v60, 4  ;;  %v2961_v22 = vrot.slane %v5939_v18, 5  ;;  %v3245_v41 = vpack.c.b16 %v3215_v47, %v3214_v32  ;;  %v1755_v38 = vrot.slane %v5940_v45, 5 }
 0x1de   : > { %v3572_v26 = vunpack.c.l.b16 %v2809_v16  ;;  %v3573_v25 = vunpack.c.l.b16 %v2819_v17  ;;  %v2371_v54 = vsel %vm7004_vm14, %v5312_v50, %v2370_v29  ;;  %v5323_v30 = vrot.slane %v2297_v62, 9  ;;  %v5811_v29 = vld [vmem:[%s8337_s4 + $0xc0] sm:$0xff]  ;;  %v1864_v50 = vld [vmem:[#allocation2 + $0x58] sm:$0xf] }
 0x1df   : > { %v3747_v11 = vsel %vm3676_vm11, %v3245_v41, %v3327_v6  ;;  %v3411_v49 = vunpack.c.l.b16 %v2374_v58  ;;  %v2449_v9 = vrot.slane %v2447_v13, 4  ;;  %v2450_v1 = vrot.slane %v1897_v43, 5  ;;  %4543 = vmatpush.bf16.msrb.mxu0 %v5811_v29  ;;  %v2288_v6 = vld [vmem:[#allocation2 + $0x48] sm:$0xe] }
 0x1e0   : > { %v2379_v37 = vrot.slane %v2377_v14, 4  ;;  %v3410_v35 = vunpack.c.l.b16 %v2371_v54  ;;  %v1757_v28 = vrot.slane %v1755_v38, 4  ;;  %v2962_v53 = vsel %vm7004_vm14, %v2960_v4, %v2961_v22 }
 0x1e1   : > { %v3592_v27 = vpack.c.b16 %v3573_v25, %v3572_v26  ;;  %v2380_v34 = vrot.slane %v7344_v31, 5  ;;  %v5325_v46 = vrot.slane %v2892_v36, 9  ;;  %v1758_v55 = vrot.slane %v5941_v59, 5  ;;  %v5751_v25 = vld [vmem:[#allocation2 + $0x90] sm:$0xff]  ;;  %v1889_v36 = vld [vmem:[#allocation2 + $0x5c] sm:$0x1] }
 0x1e2   : > { %v3439_v20 = vpack.c.b16 %v3411_v49, %v3410_v35  ;;  %v2448_v2 = vsel %vm7004_vm14, %v5323_v30, %v2447_v13  ;;  %v2451_v33 = vsel %vm7004_vm14, %v2449_v9, %v2450_v1  ;;  %v5313_v51 = vrot.slane %v2287_v21, 9  ;;  %v5942_v30 = vld [vmem:[#allocation2 + $0x28] sm:$0xf]  ;;  %v5943_v59 = vld [vmem:[#allocation2 + $0x2c] sm:$0x1] }
 0x1e3   : > { %3474 = vrot.lane.b32.xlu0 %v3447_v52, %s6225_s20  ;;  %v2381_v0 = vsel %vm7004_vm14, %v2379_v37, %v2380_v34  ;;  %v2384_v24 = vrot.slane %v1862_v12, 5  ;;  %v2959_v47 = vsel %vm7004_vm14, %v5325_v46, %v2958_v60  ;;  %v5295_v42 = vrot.slane %v1674_v44, 9  ;;  %v7366_v52 = vpop.permute.xlu0 %3198  ;;  %v1866_v12 = vld [vmem:[#allocation2 + $0x64] sm:$0xf] }
 0x1e4   : > { %3456 = vrot.lane.b32.xlu2 %v3438_v3, %s6225_s20  ;;  %v1759_v56 = vsel %vm7004_vm14, %v1757_v28, %v1758_v55  ;;  %v3629_v57 = vunpack.c.l.b16 %v2962_v53  ;;  %v3432_v3 = vunpack.c.l.b16 %v2448_v2  ;;  %v3433_v63 = vunpack.c.l.b16 %v2451_v33  ;;  %v2289_v28 = vld [vmem:[#allocation2 + $0x54] sm:$0xe]  ;;  %v1675_v34 = vld [vmem:[#allocation2 + $0x24] sm:$0xe] }
 0x1e5   : > { %v2378_v5 = vsel %vm7004_vm14, %v5313_v51, %v2377_v14  ;;  %v3628_v32 = vunpack.c.l.b16 %v2959_v47  ;;  %v3413_v16 = vunpack.c.l.b16 %v2381_v0  ;;  %v1756_v60 = vsel %vm7004_vm14, %v5295_v42, %v1755_v38  ;;  %v3329_v22 = vpop.permute.xlu1 %3328  ;;  %v5743_v33 = vld [vmem:[#allocation2 + $0x30] sm:$0xff] }
 0x1e6   : > { %v2386_v17 = vrot.slane %v2384_v24, 4  ;;  %v3412_v13 = vunpack.c.l.b16 %v2378_v5  ;;  %v3217_v48 = vunpack.c.l.b16 %v1759_v56  ;;  %v3450_v58 = vpack.c.b16 %v3433_v63, %v3432_v3  ;;  %v1890_v56 = vld [vmem:[#allocation2 + $0x68] sm:$0x1]  ;;  %v1868_v5 = vld [vmem:[#allocation2 + $0x70] sm:$0xf] }
 0x1e7   : > { %4371 = vmatmul.bf16.gmra.mxu2 %v3747_v11  ;;  %v7372_v62 = vpack.c.b16 %v3629_v57, %v3628_v32  ;;  %v2387_v43 = vrot.slane %v1888_v19, 5  ;;  %v3216_v18 = vunpack.c.l.b16 %v1756_v60  ;;  %v5314_v14 = vrot.slane %v2288_v6, 9  ;;  %v2290_v19 = vld [vmem:[#allocation2 + $0x60] sm:$0xe]  ;;  %v5820_v60 = vld [vmem:[%s8337_s4 + $0x108] sm:$0xff] }
 0x1e8   : > { %v3440_v4 = vpack.c.b16 %v3413_v16, %v3412_v13  ;;  %v2391_v45 = vrot.slane %v1864_v50, 5  ;;  %v1762_v11 = vrot.slane %v5942_v30, 5  ;;  %v2394_v29 = vrot.slane %v1889_v36, 5  ;;  %4631 = vmatpush.bf16.msrb.mxu1 %v5820_v60  ;;  %v2481_v36 = vld [vmem:[#allocation2 + $0x94] sm:$0xf] }
 0x1e9   : > { %v2388_v41 = vsel %vm7004_vm14, %v2386_v17, %v2387_v43  ;;  %v3246_v38 = vpack.c.b16 %v3217_v48, %v3216_v18  ;;  %v2385_v54 = vsel %vm7004_vm14, %v5314_v14, %v2384_v24  ;;  %v5315_v44 = vrot.slane %v2289_v28, 9  ;;  %v5771_v18 = vld [vmem:[#allocation2 + $0x18] sm:$0xff]  ;;  %v5944_v14 = vld [vmem:[#allocation2 + $0x34] sm:$0xf] }
 0x1ea   : > { %v3415_v1 = vunpack.c.l.b16 %v2388_v41  ;;  %v2393_v35 = vrot.slane %v2391_v45, 4  ;;  %v3414_v21 = vunpack.c.l.b16 %v2385_v54  ;;  %v1764_v53 = vrot.slane %v1762_v11, 4 }
 0x1eb   : > { %3620 = vrot.lane.b32.xlu0 %v3592_v27, %s6225_s20  ;;  %v3751_v9 = vsel %vm3676_vm11, %v3246_v38, %v3329_v22  ;;  %v1765_v55 = vrot.slane %v5943_v59, 5  ;;  %v2392_v51 = vsel %vm7004_vm14, %v5315_v44, %v2391_v45  ;;  %v5296_v0 = vrot.slane %v1675_v34, 9 }
 0x1ec   : > { %3458 = vrot.lane.b32.xlu2 %v3439_v20, %s6225_s20  ;;  %v3441_v27 = vpack.c.b16 %v3415_v1, %v3414_v21  ;;  %v2395_v46 = vsel %vm7004_vm14, %v2393_v35, %v2394_v29  ;;  %v2398_v20 = vrot.slane %v1866_v12, 5  ;;  %v3416_v32 = vunpack.c.l.b16 %v2392_v51  ;;  %v1676_v1 = vld [vmem:[#allocation2 + $0x30] sm:$0xe]  ;;  %v2291_v35 = vld [vmem:[#allocation2 + $0x6c] sm:$0xe] }
 0x1ed   : > { %v7378_v26 = vpop.permute.xlu0 %3200  ;;  %v1766_v24 = vsel %vm7004_vm14, %v1764_v53, %v1765_v55  ;;  %v3417_v42 = vunpack.c.l.b16 %v2395_v46  ;;  %v1763_v3 = vsel %vm7004_vm14, %v5296_v0, %v1762_v11  ;;  %v2401_v17 = vrot.slane %v1890_v56, 5  ;;  %v3331_v50 = vpop.permute.xlu1 %3330  ;;  %v1870_v12 = vld [vmem:[#allocation2 + $0x7c] sm:$0xf]  ;;  %v5945_v29 = vld [vmem:[#allocation2 + $0x38] sm:$0x1] }
 0x1ee   : > { %v2400_v63 = vrot.slane %v2398_v20, 4  ;;  %v3219_v16 = vunpack.c.l.b16 %v1766_v24  ;;  %v3218_v48 = vunpack.c.l.b16 %v1763_v3  ;;  %v2405_v6 = vrot.slane %v1868_v5, 5  ;;  %v5744_v0 = vld [vmem:[#allocation2 + $0x3c] sm:$0xff] }
 0x1ef   : > { %v3442_v13 = vpack.c.b16 %v3417_v42, %v3416_v32  ;;  %v5316_v43 = vrot.slane %v2290_v19, 9  ;;  %v1769_v41 = vrot.slane %v5944_v14, 5  ;;  %v1772_v53 = vrot.slane %v5945_v29, 5  ;;  %v1892_v56 = vld [vmem:[#allocation2 + $0x80] sm:$0x1] }
 0x1f0   : > { %v3247_v22 = vpack.c.b16 %v3219_v16, %v3218_v48  ;;  %v2758_v44 = vshll.u32 %v2481_v36, 16  ;;  %v2762_v46 = vshrl.u32 %v2481_v36, 16  ;;  %v5317_v59 = vrot.slane %v2291_v35, 9  ;;  %v1677_v35 = vld [vmem:[#allocation2 + $0x3c] sm:$0xe] }
 0x1f1   : > { %v2399_v38 = vsel %vm7004_vm14, %v5316_v43, %v2398_v20  ;;  %v1771_v28 = vrot.slane %v1769_v41, 4  ;;  %v2412_v55 = vrot.slane %v1870_v12, 5  ;;  %v2480_v20 = vld [vmem:[#allocation2 + $0x90] sm:$0xf]  ;;  %v3699_v32 = vsel %vm3676_vm11, %v5744_v0, %v7177_v7 }
 0x1f2   : > { %v3755_v30 = vsel %vm3676_vm11, %v3247_v22, %v3331_v50  ;;  %v2406_v24 = vsel %vm7004_vm14, %v5317_v59, %v2405_v6  ;;  %v2752_v3 = vshll.u32 %v2480_v20, 16  ;;  %v2764_v5 = vrot.slane %v2762_v46, 4  ;;  %v5947_v59 = vld [vmem:[#allocation2 + $0x44] sm:$0x1] }
 0x1f3   : > { %3480 = vrot.lane.b32.xlu0 %v3450_v58, %s6225_s20  ;;  %v5752_v58 = vld [vmem:[#allocation2 + $0x9c] sm:$0xff]  ;;  %v2414_v19 = vrot.slane %v2412_v55, 4  ;;  %v3420_v60 = vunpack.c.l.b16 %v2406_v24  ;;  %v2415_v48 = vrot.slane %v1892_v56, 5  ;;  %v1895_v24 = vld [vmem:[#allocation2 + $0xa4] sm:$0x1] }
 0x1f4   : > { %3460 = vrot.lane.b32.xlu2 %v3440_v4, %s6225_s20  ;;  %v2402_v4 = vsel %vm7004_vm14, %v2400_v63, %v2401_v17  ;;  %v7417_v63 = vrot.slane %v2758_v44, 5  ;;  %v2292_v17 = vld [vmem:[#allocation2 + $0x78] sm:$0xe]  ;;  %v5298_v44 = vrot.slane %v1677_v35, 9 }
 0x1f5   : > { %v3419_v11 = vunpack.c.l.b16 %v2402_v4  ;;  %v3333_v50 = vpop.permute.xlu1 %3332  ;;  %v2754_v4 = vrot.slane %v2752_v3, 5  ;;  %v2416_v7 = vsel %vm7004_vm14, %v2414_v19, %v2415_v48 }
 0x1f6   : > { %v3205_v49 = vpop.permute.xlu2 %3204 }
 0x1f7   : > { %v3727_v37 = vsel %vm3676_vm11, %v5751_v25, %v3205_v49  ;;  %4376 = vmatmul.bf16.gmra.mxu2 %v3751_v9  ;;  %v1891_v25 = vld [vmem:[#allocation2 + $0x74] sm:$0x1]  ;;  %v2407_v49 = vrot.slane %v2405_v6, 4  ;;  %v3731_v9 = vsel %vm3676_vm11, %v5752_v58, %v7088_v15  ;;  %v5297_v15 = vrot.slane %v1676_v1, 9  ;;  %v2502_v6 = vld [vmem:[#allocation2 + $0x98] sm:$0x1] }
 0x1f8   : > { %4337 = vmatmul.bf16.vlgmr.msrb.gmra.mxu3 %v3727_v37  ;;  %v3418_v37 = vunpack.c.l.b16 %v2399_v38  ;;  %v2408_v21 = vrot.slane %v1891_v25, 5  ;;  %v2768_v38 = vshll.u32 %v2502_v6, 16  ;;  %v5753_v25 = vld [vmem:[#allocation2 + $0xa8] sm:$0xff]  ;;  %v3423_v1 = vunpack.c.l.b16 %v2416_v7 }
 0x1f9   : > { %v1770_v42 = vsel %vm7004_vm14, %v5297_v15, %v1769_v41  ;;  %v5318_v41 = vrot.slane %v2292_v17, 9  ;;  %v1779_v15 = vrot.slane %v5947_v59, 5  ;;  %v2436_v6 = vrot.slane %v1895_v24, 5  ;;  %v5808_v59 = vld [vmem:[%s8337_s4 + $0xa8] sm:$0xff]  ;;  %v5949_v24 = vld [vmem:[#allocation2 + $0x50] sm:$0x1] }
 0x1fa   : > { %v2409_v34 = vsel %vm7004_vm14, %v2407_v49, %v2408_v21  ;;  %v2770_v29 = vrot.slane %v2768_v38, 5 }
 0x1fc   : > { %3462 = vrot.lane.b32.xlu2 %v3441_v27, %s6225_s20  ;;  %v3443_v27 = vpack.c.b16 %v3419_v11, %v3418_v37  ;;  %v5946_v11 = vld [vmem:[#allocation2 + $0x40] sm:$0xf] }
 0x1fd   : > { %v7387_v2 = vpop.permute.xlu0 %3202  ;;  %v1776_v49 = vrot.slane %v5946_v11, 5  ;;  %v3335_v38 = vpop.permute.xlu1 %3334 }
 0x1fe   : > { %v3189_v47 = vpop.permute.xlu2 %3188 }
 0x1ff   : > { %v3695_v57 = vsel %vm3676_vm11, %v5743_v33, %v3189_v47  ;;  %v1773_v33 = vsel %vm7004_vm14, %v1771_v28, %v1772_v53  ;;  %v3421_v47 = vunpack.c.l.b16 %v2409_v34  ;;  %v2486_v53 = vld [vmem:[#allocation2 + $0xb4] sm:$0xf]  ;;  %v5810_v34 = vld [vmem:[%s8337_s4 + $0xb8] sm:$0xff]  ;;  %v1778_v46 = vrot.slane %v1776_v49, 4 }
 0x200   : > { %4297 = vmatmul.bf16.gmra.mxu1 %v3695_v57  ;;  %v2749_v57 = vshrl.u32 %v2480_v20, 16  ;;  %v3221_v16 = vunpack.c.l.b16 %v1773_v33  ;;  %v5745_v33 = vld [vmem:[#allocation2 + $0x48] sm:$0xff]  ;;  %4447 = vmatpush.bf16.msrb.mxu3 %v5810_v34  ;;  %v2821_v56 = vshrl.u32 %v2486_v53, 16  ;;  %v1777_v19 = vsel %vm7004_vm14, %v5298_v44, %v1776_v49 }
 0x201   : > { %v3444_v58 = vpack.c.b16 %v3421_v47, %v3420_v60  ;;  %v1780_v60 = vsel %vm7004_vm14, %v1778_v46, %v1779_v15  ;;  %v3222_v7 = vunpack.c.l.b16 %v1777_v19 }
 0x202   : > { %v2751_v43 = vrot.slane %v2749_v57, 4  ;;  %v2824_v57 = vshll.u32 %v2486_v53, 16 }
 0x204   : > { %3464 = vrot.lane.b32.xlu2 %v3442_v13, %s6225_s20  ;;  %v3220_v13 = vunpack.c.l.b16 %v1770_v42  ;;  %v2755_v36 = vor.u32 %v2754_v4, %v2751_v43  ;;  %v2295_v42 = vld [vmem:[#allocation2 + $0x9c] sm:$0xe] }
 0x205   : > { %v3597_v45 = vpop.permute.xlu0 %3596 }
 0x206   : > { %v3871_v54 = vsel %vm3676_vm11, %v5771_v18, %v3597_v45  ;;  %v3209_v51 = vpop.permute.xlu2 %3208  ;;  %v2765_v18 = vor.u32 %v2764_v5, %v7417_v63  ;;  %v3248_v14 = vpack.c.b16 %v3221_v16, %v3220_v13  ;;  %v5772_v45 = vld [vmem:[#allocation2 + $0x24] sm:$0xff]  ;;  %v2756_v0 = vrot.slane %v2755_v36, 4  ;;  %v5754_v36 = vld [vmem:[#allocation2 + $0xb4] sm:$0xff] }
 0x207   : > { %4381 = vmatmul.bf16.gmra.mxu2 %v3755_v30  ;;  %4544 = vmatmul.bf16.vlgmr.msrb.gmra.mxu0 %v3871_v54  ;;  %v2413_v30 = vsel %vm7004_vm14, %v5318_v41, %v2412_v55  ;;  %v3735_v28 = vsel %vm3676_vm11, %v5753_v25, %v3209_v51  ;;  %v1876_v55 = vld [vmem:[#allocation2 + $0xa0] sm:$0xf]  ;;  %v5321_v13 = vrot.slane %v2295_v42, 9 }
 0x208   : > { %4342 = vmatmul.bf16.gmra.mxu3 %v3731_v9  ;;  %v3759_v54 = vsel %vm3676_vm11, %v3248_v14, %v3333_v50  ;;  %v2766_v37 = vrot.slane %v2765_v18, 4  ;;  %v3422_v12 = vunpack.c.l.b16 %v2413_v30  ;;  %v2433_v47 = vrot.slane %v1876_v55, 5 }
 0x209   : > { %v2761_v16 = vsel %vm6527_vm8, %v2756_v0, %v7417_v63  ;;  %v2823_v50 = vrot.slane %v2821_v56, 4  ;;  %v3223_v18 = vunpack.c.l.b16 %v1780_v60  ;;  %v5809_v63 = vld [vmem:[%s8337_s4 + $0xb0] sm:$0xff] }
 0x20a   : > { %v3445_v20 = vpack.c.b16 %v3423_v1, %v3422_v12  ;;  %v2771_v51 = vsel %vm6527_vm8, %v2766_v37, %v2770_v29  ;;  %v2435_v48 = vrot.slane %v2433_v47, 4  ;;  %4448 = vmatpush.bf16.msrb.mxu3 %v5809_v63  ;;  %v5773_v1 = vld [vmem:[#allocation2 + $0x30] sm:$0xff]  ;;  %v5948_v37 = vld [vmem:[#allocation2 + $0x4c] sm:$0xf]  ;;  %v3337_v63 = vpop.permute.xlu1 %3336 }
 0x20b   : > { %v3569_v17 = vunpack.c.l.b16 %v2771_v51  ;;  %v1783_v35 = vrot.slane %v5948_v37, 5  ;;  %v5746_v56 = vld [vmem:[#allocation2 + $0x54] sm:$0xff] }
 0x20c   : > { %3466 = vrot.lane.b32.xlu2 %v3443_v27, %s6225_s20  ;;  %v2487_v27 = vld [vmem:[#allocation2 + $0xb8] sm:$0xf] }
 0x20d   : > { %v3599_v22 = vpop.permute.xlu0 %3598  ;;  %v2830_v3 = vshll.u32 %v2487_v27, 16  ;;  %v2834_v5 = vshrl.u32 %v2487_v27, 16  ;;  %v3739_v27 = vsel %vm3676_vm11, %v5754_v36, %v7220_v39  ;;  %v1785_v15 = vrot.slane %v1783_v35, 4  ;;  %v5951_v36 = vld [vmem:[#allocation2 + $0xa0] sm:$0xf] }
 0x20e   : > { %v3875_v9 = vsel %vm3676_vm11, %v5772_v45, %v3599_v22  ;;  %v7429_v21 = vpop.permute.xlu2 %3194  ;;  %v2505_v22 = vld [vmem:[#allocation2 + $0xbc] sm:$0x1]  ;;  %v2434_v45 = vsel %vm7004_vm14, %v5321_v13, %v2433_v47  ;;  %4449 = vmatpush.bf16.msrb.mxu3 %v5808_v59  ;;  %v1786_v47 = vrot.slane %v5949_v24, 5  ;;  %v1832_v37 = vrot.slane %v5951_v36, 5 }
 0x20f   : > { %v2832_v43 = vrot.slane %v2830_v3, 5  ;;  %v2836_v4 = vrot.slane %v2834_v5, 4  ;;  %v2840_v49 = vshll.u32 %v2505_v22, 16  ;;  %v3428_v29 = vunpack.c.l.b16 %v2434_v45  ;;  %v2298_v3 = vld [vmem:[#allocation2 + $0xc0] sm:$0xe] }
 0x210   : > { %4302 = vmatmul.bf16.gmra.mxu1 %v3699_v32  ;;  %v3703_v32 = vsel %vm3676_vm11, %v5745_v33, %v7126_v8  ;;  %v3568_v8 = vunpack.c.l.b16 %v2761_v16  ;;  %v1882_v33 = vld [vmem:[#allocation2 + $0xc4] sm:$0xf]  ;;  %v7473_v16 = vpop.f32.mrf.mxu1  ;;  %v3707_v19 = vsel %vm3676_vm11, %v5746_v56, %v7429_v21  ;;  %v5826_v21 = vld [vmem:[%s8340_s7 + $0x18] sm:$0xff] }
 0x211   : > { %v2837_v11 = vor.u32 %v2836_v4, %v2832_v43  ;;  %v2842_v46 = vrot.slane %v2840_v49, 5  ;;  %v2454_v42 = vrot.slane %v1882_v33, 5  ;;  %v5819_v4 = vld [vmem:[%s8337_s4 + $0x100] sm:$0xff]  ;;  %4918 = vmatpush.bf16.msrb.mxu2 %v5826_v21 }
 0x212   : > { %v3590_v41 = vpack.c.b16 %v3569_v17, %v3568_v8  ;;  %4632 = vmatpush.bf16.msrb.mxu1 %v5819_v4  ;;  %v5955_v4 = vld [vmem:[#allocation2 + $0xac] sm:$0xf] }
 0x213   : > { %v2838_v44 = vrot.slane %v2837_v11, 4  ;;  %v1839_v21 = vrot.slane %v5955_v4, 5 }
 0x214   : > { %3468 = vrot.lane.b32.xlu2 %v3444_v58, %s6225_s20  ;;  %v2826_v58 = vrot.slane %v2824_v57, 5  ;;  %v1898_v57 = vld [vmem:[#allocation2 + $0xc8] sm:$0x1] }
 0x215   : > { %v3601_v25 = vpop.permute.xlu0 %3600  ;;  %v2843_v51 = vsel %vm6527_vm8, %v2838_v44, %v2842_v46  ;;  %v1834_v44 = vrot.slane %v1832_v37, 4  ;;  %v5952_v46 = vld [vmem:[#allocation2 + $0xa4] sm:$0x1] }
 0x216   : > { %v7450_v14 = vpop.permute.xlu2 %3350  ;;  %v2827_v30 = vor.u32 %v2826_v58, %v2823_v50  ;;  %v3879_v12 = vsel %vm3676_vm11, %v5773_v1, %v3601_v25  ;;  %v3575_v17 = vunpack.c.l.b16 %v2843_v51  ;;  %v2457_v50 = vrot.slane %v1898_v57, 5  ;;  %v5805_v57 = vld [vmem:[%s8337_s4 + $0x90] sm:$0xff] }
 0x217   : > { %4386 = vmatmul.bf16.gmra.mxu2 %v3759_v54  ;;  %4549 = vmatmul.bf16.gmra.mxu0 %v3875_v9  ;;  %v2437_v54 = vsel %vm7004_vm14, %v2435_v48, %v2436_v6  ;;  %v3249_v9 = vpack.c.b16 %v3223_v18, %v3222_v7  ;;  %v5324_v48 = vrot.slane %v2298_v3, 9  ;;  %v2456_v6 = vrot.slane %v2454_v42, 4 }
 0x218   : > { %4347 = vmatmul.bf16.gmra.mxu3 %v3735_v28  ;;  %v3429_v53 = vunpack.c.l.b16 %v2437_v54  ;;  %v2828_v34 = vrot.slane %v2827_v30, 4  ;;  %v5950_v30 = vld [vmem:[#allocation2 + $0x58] sm:$0xf]  ;;  %v1835_v59 = vrot.slane %v5952_v46, 5 }
 0x219   : > { %v3763_v28 = vsel %vm3676_vm11, %v3249_v9, %v3335_v38  ;;  %v2455_v7 = vsel %vm7004_vm14, %v5324_v48, %v2454_v42  ;;  %v2458_v45 = vsel %vm7004_vm14, %v2456_v6, %v2457_v50  ;;  %v1790_v11 = vrot.slane %v5950_v30, 5  ;;  %v5775_v48 = vld [vmem:[#allocation2 + $0x48] sm:$0xff]  ;;  %v5954_v6 = vld [vmem:[#allocation2 + $0x64] sm:$0xf] }
 0x21a   : > { %v3448_v55 = vpack.c.b16 %v3429_v53, %v3428_v29  ;;  %v2833_v39 = vsel %vm6527_vm8, %v2828_v34, %v2832_v43  ;;  %v5807_v43 = vld [vmem:[%s8337_s4 + $0xa0] sm:$0xff]  ;;  %v3434_v9 = vunpack.c.l.b16 %v2455_v7  ;;  %v3435_v1 = vunpack.c.l.b16 %v2458_v45 }
 0x21b   : > { %v3574_v60 = vunpack.c.l.b16 %v2833_v39  ;;  %4450 = vmatpush.bf16.msrb.mxu3 %v5807_v43  ;;  %v1792_v29 = vrot.slane %v1790_v11, 4  ;;  %v1836_v51 = vsel %vm7004_vm14, %v1834_v44, %v1835_v59  ;;  %v1797_v50 = vrot.slane %v5954_v6, 5  ;;  %v1680_v7 = vld [vmem:[#allocation2 + $0x60] sm:$0xe]  ;;  %v5961_v6 = vld [vmem:[#allocation2 + $0x74] sm:$0x1] }
 0x21c   : > { %3470 = vrot.lane.b32.xlu2 %v3445_v20, %s6225_s20  ;;  %v1678_v20 = vld [vmem:[#allocation2 + $0x48] sm:$0xe]  ;;  %v3451_v53 = vpack.c.b16 %v3435_v1, %v3434_v9  ;;  %v5301_v1 = vrot.slane %v1680_v7, 9 }
 0x21d   : > { %v5299_v5 = vrot.slane %v1678_v20, 9  ;;  %v3603_v8 = vpop.permute.xlu0 %3602  ;;  %v3593_v18 = vpack.c.b16 %v3575_v17, %v3574_v60  ;;  %v5747_v20 = vld [vmem:[#allocation2 + $0x60] sm:$0xff]  ;;  %v3339_v60 = vpop.permute.xlu1 %3338 }
 0x21e   : > { %v7464_v0 = vpop.permute.xlu2 %3352 }
 0x21f   : > { %v1784_v13 = vsel %vm7004_vm14, %v5299_v5, %v1783_v35  ;;  %v1685_v35 = vld [vmem:[#allocation2 + $0x9c] sm:$0xe]  ;;  %v3239_v5 = vunpack.c.l.b16 %v1836_v51 }
 0x220   : > { %4307 = vmatmul.bf16.gmra.mxu1 %v3703_v32  ;;  %v1787_v32 = vsel %vm7004_vm14, %v1785_v15, %v1786_v47  ;;  %v3224_v22 = vunpack.c.l.b16 %v1784_v13  ;;  %v5306_v34 = vrot.slane %v1685_v35, 9  ;;  %v5953_v15 = vld [vmem:[#allocation2 + $0x5c] sm:$0x1]  ;;  %v3711_v47 = vsel %vm3676_vm11, %v5747_v20, %v7248_v10 }
 0x221   : > { %v3225_v58 = vunpack.c.l.b16 %v1787_v32 }
 0x222   : > { %v1833_v39 = vsel %vm7004_vm14, %v5306_v34, %v1832_v37 }
 0x223   : > { %v3250_v38 = vpack.c.b16 %v3225_v58, %v3224_v22  ;;  %v3238_v3 = vunpack.c.l.b16 %v1833_v39  ;;  %v5804_v22 = vld [vmem:[%s8337_s4 + $0x88] sm:$0xff] }
 0x224   : > { %3616 = vrot.lane.b32.xlu2 %v3590_v41, %s6225_s20  ;;  %v5774_v41 = vld [vmem:[#allocation2 + $0x3c] sm:$0xff] }
 0x225   : > { %v3883_v54 = vsel %vm3676_vm11, %v5774_v41, %v3603_v8  ;;  %v3767_v49 = vsel %vm3676_vm11, %v3250_v38, %v3337_v63  ;;  %v3605_v17 = vpop.permute.xlu0 %3604  ;;  %v3257_v10 = vpack.c.b16 %v3239_v5, %v3238_v3  ;;  %v1799_v41 = vrot.slane %v1797_v50, 4  ;;  %v3341_v46 = vpop.permute.xlu1 %3340  ;;  %v1687_v5 = vld [vmem:[#allocation2 + $0xb4] sm:$0xe] }
 0x226   : > { %v7493_v25 = vpop.permute.xlu2 %3354  ;;  %v3887_v43 = vsel %vm3676_vm11, %v5775_v48, %v3605_v17  ;;  %v1841_v38 = vrot.slane %v1839_v21, 4  ;;  %v5308_v17 = vrot.slane %v1687_v5, 9  ;;  %v5960_v48 = vld [vmem:[#allocation2 + $0xbc] sm:$0x1]  ;;  %v1682_v5 = vld [vmem:[#allocation2 + $0x78] sm:$0xe] }
 0x227   : > { %4391 = vmatmul.bf16.gmra.mxu2 %v3763_v28  ;;  %4554 = vmatmul.bf16.gmra.mxu0 %v3879_v12  ;;  %v7497_v28 = vpop.f32.mrf.mxu1  ;;  %v5806_v12 = vld [vmem:[%s8337_s4 + $0x98] sm:$0xff]  ;;  %v3795_v8 = vsel %vm3676_vm11, %v3257_v10, %v7450_v14  ;;  %v5748_v14 = vld [vmem:[#allocation2 + $0x6c] sm:$0xff]  ;;  %v1849_v10 = vrot.slane %v5960_v48, 5  ;;  %v5750_v48 = vld [vmem:[#allocation2 + $0x84] sm:$0xff] }
 0x228   : > { %4352 = vmatmul.bf16.gmra.mxu3 %v3739_v27  ;;  %v1679_v27 = vld [vmem:[#allocation2 + $0x54] sm:$0xe] }
 0x229   : > { %4451 = vmatpush.bf16.msrb.mxu3 %v5806_v12  ;;  %v5300_v33 = vrot.slane %v1679_v27, 9  ;;  %v3715_v12 = vsel %vm3676_vm11, %v5748_v14, %v7366_v52  ;;  %v5803_v27 = vld [vmem:[%s8337_s4 + $0x80] sm:$0xff] }
 0x22b   : > { %v1791_v42 = vsel %vm7004_vm14, %v5300_v33, %v1790_v11  ;;  %v5957_v11 = vld [vmem:[#allocation2 + $0x68] sm:$0x1]  ;;  %v5776_v33 = vld [vmem:[#allocation2 + $0x54] sm:$0xff] }
 0x22c   : > { %3476 = vrot.lane.b32.xlu2 %v3448_v55, %s6225_s20  ;;  %v1793_v55 = vrot.slane %v5953_v15, 5 }
 0x22d   : > { %4452 = vmatpush.bf16.msrb.mxu3 %v5805_v57  ;;  %v3607_v15 = vpop.permute.xlu0 %3606 }
 0x22e   : > { %v7510_v24 = vpop.permute.xlu2 %3452 }
 0x22f   : > { %v7519_v32 = vpop.f32.mrf.mxu1 }
 0x230   : > { %4312 = vmatmul.bf16.gmra.mxu1 %v3707_v19  ;;  %v3226_v19 = vunpack.c.l.b16 %v1791_v42  ;;  %v5959_v42 = vld [vmem:[#allocation2 + $0xb8] sm:$0xf] }
 0x231   : > { %4453 = vmatpush.bf16.msrb.mxu3 %v5804_v22 }
 0x234   : > { %3622 = vrot.lane.b32.xlu2 %v3593_v18, %s6225_s20  ;;  %v1686_v18 = vld [vmem:[#allocation2 + $0xa8] sm:$0xe] }
 0x235   : > { %v5307_v45 = vrot.slane %v1686_v18, 9  ;;  %4454 = vmatpush.bf16.msrb.mxu3 %v5803_v27  ;;  %v1851_v18 = vld [vmem:[#allocation2 + $0xc] sm:$0xf]  ;;  %v5777_v27 = vld [vmem:[#allocation2 + $0x60] sm:$0xff] }
 0x236   : > { %v7528_v63 = vpop.permute.xlu2 %3454 }
 0x237   : > { %4396 = vmatmul.bf16.gmra.mxu2 %v3767_v49  ;;  %4559 = vmatmul.bf16.gmra.mxu0 %v3883_v54  ;;  %v5956_v54 = vld [vmem:[#allocation2 + $0xb0] sm:$0x1]  ;;  %v1800_v49 = vrot.slane %v5957_v11, 5  ;;  %v7530_v9 = vpop.f32.mrf.mxu1  ;;  %v1840_v37 = vsel %vm7004_vm14, %v5307_v45, %v1839_v21 }
 0x238   : > { %4426 = vmatmul.bf16.vlgmr.msra.gmra.mxu3 %v7158_v40  ;;  %v1794_v40 = vsel %vm7004_vm14, %v1792_v29, %v1793_v55  ;;  %v1842_v30 = vrot.slane %v5956_v54, 5  ;;  %v1798_v29 = vsel %vm7004_vm14, %v5301_v1, %v1797_v50  ;;  %v3240_v34 = vunpack.c.l.b16 %v1840_v37 }
 0x239   : > { %v3227_v56 = vunpack.c.l.b16 %v1794_v40  ;;  %v1801_v36 = vsel %vm7004_vm14, %v1799_v41, %v1800_v49  ;;  %v3228_v59 = vunpack.c.l.b16 %v1798_v29  ;;  %v5958_v40 = vld [vmem:[#allocation2 + $0x70] sm:$0xf]  ;;  %v1807_v50 = vrot.slane %v5961_v6, 5  ;;  %v3609_v29 = vpop.permute.xlu0 %3608 }
 0x23a   : > { %v1843_v35 = vsel %vm7004_vm14, %v1841_v38, %v1842_v30  ;;  %v1804_v39 = vrot.slane %v5958_v40, 5  ;;  %v5825_v30 = vld [vmem:[%s8340_s7 + $0x10] sm:$0xff]  ;;  %v1900_v49 = vshrl.u32 %v1851_v18, 16 }
 0x23b   : > { %v3251_v13 = vpack.c.b16 %v3227_v56, %v3226_v19  ;;  %v3241_v44 = vunpack.c.l.b16 %v1843_v35  ;;  %v1846_v56 = vrot.slane %v5959_v42, 5  ;;  %4919 = vmatpush.bf16.msrb.mxu2 %v5825_v30 }
 0x23c   : > { %3482 = vrot.lane.b32.xlu2 %v3451_v53, %s6225_s20  ;;  %v3229_v53 = vunpack.c.l.b16 %v1801_v36  ;;  %v1806_v19 = vrot.slane %v1804_v39, 4  ;;  %v1903_v36 = vshll.u32 %v1851_v18, 16 }
 0x23d   : > { %v3771_v58 = vsel %vm3676_vm11, %v3251_v13, %v3339_v60  ;;  %v3258_v52 = vpack.c.b16 %v3241_v44, %v3240_v34  ;;  %v1681_v60 = vld [vmem:[#allocation2 + $0x6c] sm:$0xe]  ;;  %v1848_v13 = vrot.slane %v1846_v56, 4  ;;  %v1847_v41 = vsel %vm7004_vm14, %v5308_v17, %v1846_v56 }
 0x23e   : > { %v7545_v55 = vpop.permute.xlu2 %3456  ;;  %v3252_v20 = vpack.c.b16 %v3229_v53, %v3228_v59  ;;  %v5302_v4 = vrot.slane %v1681_v60, 9  ;;  %v1808_v21 = vsel %vm7004_vm14, %v1806_v19, %v1807_v50  ;;  %v3242_v14 = vunpack.c.l.b16 %v1847_v41  ;;  %v5965_v60 = vld [vmem:[#allocation2 + $0x80] sm:$0x1]  ;;  %v5966_v50 = vld [vmem:[#allocation2 + $0x1c] sm:$0xf] }
 0x23f   : > { %v7549_v57 = vpop.f32.mrf.mxu1  ;;  %v3799_v3 = vsel %vm3676_vm11, %v3258_v52, %v7464_v0  ;;  %v1850_v7 = vsel %vm7004_vm14, %v1848_v13, %v1849_v10  ;;  %v3231_v54 = vunpack.c.l.b16 %v1808_v21  ;;  %v1902_v34 = vrot.slane %v1900_v49, 4  ;;  %v1853_v21 = vld [vmem:[#allocation2 + $0x18] sm:$0xf] }
 0x240   : > { %4317 = vmatmul.bf16.gmra.mxu1 %v3711_v47  ;;  %v3775_v51 = vsel %vm3676_vm11, %v3252_v20, %v3341_v46  ;;  %v3891_v47 = vsel %vm3676_vm11, %v5776_v33, %v3607_v15  ;;  %v1805_v38 = vsel %vm7004_vm14, %v5302_v4, %v1804_v39  ;;  %v3243_v1 = vunpack.c.l.b16 %v1850_v7  ;;  %v5963_v46 = vld [vmem:[#allocation2 + $0x7c] sm:$0xf] }
 0x241   : > { %v1811_v59 = vrot.slane %v5963_v46, 5  ;;  %v1905_v15 = vrot.slane %v1903_v36, 5  ;;  %v3895_v52 = vsel %vm3676_vm11, %v5777_v27, %v3609_v29  ;;  %v1814_v17 = vrot.slane %v5965_v60, 5  ;;  %v5970_v60 = vld [vmem:[#allocation2 + $0x40] sm:$0xf] }
 0x242   : > { %v3259_v44 = vpack.c.b16 %v3243_v1, %v3242_v14  ;;  %v5303_v10 = vrot.slane %v1682_v5, 9 }
 0x243   : > { %v1813_v42 = vrot.slane %v1811_v59, 4  ;;  %v1906_v56 = vor.u32 %v1905_v15, %v1902_v34 }
 0x244   : > { %v3803_v39 = vsel %vm3676_vm11, %v3259_v44, %v7493_v25  ;;  %v1937_v25 = vshrl.u32 %v5966_v50, 16  ;;  %v1812_v18 = vsel %vm7004_vm14, %v5303_v10, %v1811_v59 }
 0x245   : > { %v1815_v6 = vsel %vm7004_vm14, %v1813_v42, %v1814_v17  ;;  %v3232_v30 = vunpack.c.l.b16 %v1812_v18  ;;  %v2009_v17 = vshrl.u32 %v5970_v60, 16  ;;  %v1855_v18 = vld [vmem:[#allocation2 + $0x24] sm:$0xf] }
 0x246   : > { %v3233_v41 = vunpack.c.l.b16 %v1815_v6  ;;  %v1939_v14 = vrot.slane %v1937_v25, 4 }
 0x247   : > { %4401 = vmatmul.bf16.gmra.mxu2 %v3771_v58  ;;  %4564 = vmatmul.bf16.gmra.mxu0 %v3887_v43  ;;  %v7553_v58 = vpop.permute.xlu2 %3458  ;;  %v5749_v43 = vld [vmem:[#allocation2 + $0x78] sm:$0xff]  ;;  %v7568_v11 = vpop.f32.mrf.mxu1 }
 0x248   : > { %4431 = vmatmul.bf16.gmra.mxu3 %v3795_v8  ;;  %v5962_v8 = vld [vmem:[#allocation2 + $0x10] sm:$0xf]  ;;  %v3719_v45 = vsel %vm3676_vm11, %v5749_v43, %v7378_v26  ;;  %v3343_v26 = vpop.permute.xlu1 %3342  ;;  %v1907_v43 = vrot.slane %v1906_v56, 4 }
 0x249   : > { %v1913_v0 = vshrl.u32 %v5962_v8, 16  ;;  %v1909_v22 = vshll.u32 %v5962_v8, 16  ;;  %v1933_v8 = vshll.u32 %v5966_v50, 16 }
 0x24b   : > { %v1911_v37 = vrot.slane %v1909_v22, 5  ;;  %v1915_v35 = vrot.slane %v1913_v0, 4  ;;  %v3723_v0 = vsel %vm3676_vm11, %v5750_v48, %v7387_v2  ;;  %v7590_v49 = vrot.slane %v1933_v8, 5  ;;  %v3611_v2 = vpop.permute.xlu0 %3610  ;;  %v1859_v48 = vld [vmem:[#allocation2 + $0x3c] sm:$0xf] }
 0x24d   : > { %v1916_v20 = vor.u32 %v1915_v35, %v1911_v37  ;;  %v1912_v22 = vsel %vm6527_vm8, %v1907_v43, %v1911_v37  ;;  %v3254_v35 = vpack.c.b16 %v3233_v41, %v3232_v30  ;;  %v5967_v37 = vld [vmem:[#allocation2 + $0x88] sm:$0xf]  ;;  %v1940_v59 = vor.u32 %v1939_v14, %v7590_v49 }
 0x24e   : > { %v3356_v36 = vunpack.c.l.b16 %v1912_v22  ;;  %v5971_v43 = vld [vmem:[#allocation2 + $0x28] sm:$0xf]  ;;  %v1999_v30 = vshll.u32 %v1859_v48, 16 }
 0x24f   : > { %v7572_v40 = vpop.permute.xlu2 %3460  ;;  %v7576_v19 = vpop.f32.mrf.mxu1 }
 0x250   : > { %4322 = vmatmul.bf16.gmra.mxu1 %v3715_v12  ;;  %v3230_v12 = vunpack.c.l.b16 %v1805_v38  ;;  %v1924_v38 = vshrl.u32 %v1853_v21, 16  ;;  %v3345_v1 = vpop.permute.xlu1 %3344 }
 0x251   : > { %v3783_v44 = vsel %vm3676_vm11, %v3254_v35, %v3345_v1  ;;  %v2011_v1 = vrot.slane %v2009_v17, 4  ;;  %v1948_v35 = vshrl.u32 %v1855_v18, 16 }
 0x252   : > { %v3253_v53 = vpack.c.b16 %v3231_v54, %v3230_v12  ;;  %v1927_v54 = vshll.u32 %v1853_v21, 16  ;;  %v5778_v12 = vld [vmem:[#allocation2 + $0x6c] sm:$0xff]  ;;  %v1926_v27 = vrot.slane %v1924_v38, 4  ;;  %v5972_v21 = vld [vmem:[#allocation2 + $0x28] sm:$0xf]  ;;  %v1996_v38 = vshrl.u32 %v1859_v48, 16 }
 0x253   : > { %v3899_v46 = vsel %vm3676_vm11, %v5778_v12, %v3611_v2  ;;  %v1961_v8 = vshrl.u32 %v5972_v21, 16  ;;  %v1957_v22 = vshll.u32 %v5972_v21, 16 }
 0x254   : > { %v3779_v33 = vsel %vm3676_vm11, %v3253_v53, %v3343_v26  ;;  %v1818_v53 = vrot.slane %v5967_v37, 5  ;;  %v1929_v34 = vrot.slane %v1927_v54, 5  ;;  %v2893_v37 = vld [vmem:[#allocation2 + $0x24] sm:$0xe] }
 0x257   : > { %4406 = vmatmul.bf16.gmra.mxu2 %v3775_v51  ;;  %4569 = vmatmul.bf16.gmra.mxu0 %v3891_v47  ;;  %v5964_v51 = vld [vmem:[#allocation2 + $0x14] sm:$0x1]  ;;  %v7592_v26 = vpop.f32.mrf.mxu1 }
 0x258   : > { %4436 = vmatmul.bf16.gmra.mxu3 %v3799_v3  ;;  %v1919_v47 = vshll.u32 %v5964_v51, 16  ;;  %v1917_v3 = vrot.slane %v1916_v20, 4  ;;  %v5968_v20 = vld [vmem:[#allocation2 + $0x20] sm:$0x1]  ;;  %v1683_v51 = vld [vmem:[#allocation2 + $0x84] sm:$0xe]  ;;  %v3347_v12 = vpop.permute.xlu1 %3346 }
 0x259   : > { %v5304_v6 = vrot.slane %v1683_v51, 9 }
 0x25a   : > { %v1921_v13 = vrot.slane %v1919_v47, 5  ;;  %v1941_v47 = vrot.slane %v1940_v59, 4 }
 0x25b   : > { %v1819_v41 = vsel %vm7004_vm14, %v5304_v6, %v1818_v53 }
 0x25c   : > { %v1922_v4 = vsel %vm6527_vm8, %v1917_v3, %v1921_v13  ;;  %v5969_v3 = vld [vmem:[#allocation2 + $0x8c] sm:$0x1] }
 0x25d   : > { %v3357_v7 = vunpack.c.l.b16 %v1922_v4  ;;  %v1821_v5 = vrot.slane %v5969_v3, 5  ;;  %v2965_v4 = vrot.slane %v5971_v43, 5 }
 0x25f   : > { %v3388_v29 = vpack.c.b16 %v3357_v7, %v3356_v36  ;;  %v2967_v2 = vrot.slane %v2965_v4, 4 }
 0x260   : > { %4327 = vmatmul.bf16.gmra.mxu1 %v3719_v45  ;;  %v7588_v45 = vpop.permute.xlu2 %3462 }
 0x261   : > { %v3807_v15 = vsel %vm3676_vm11, %v3388_v29, %v7510_v24  ;;  %v2005_v24 = vshll.u32 %v5970_v60, 16  ;;  %v3234_v29 = vunpack.c.l.b16 %v1819_v41  ;;  %v5326_v60 = vrot.slane %v2893_v37, 9 }
 0x263   : > { %v7616_v14 = vrot.slane %v2005_v24, 5  ;;  %v2966_v21 = vsel %vm7004_vm14, %v5326_v60, %v2965_v4 }
 0x265   : > { %v2012_v51 = vor.u32 %v2011_v1, %v7616_v14 }
 0x267   : > { %4411 = vmatmul.bf16.gmra.mxu2 %v3779_v33  ;;  %4574 = vmatmul.bf16.gmra.mxu0 %v3895_v52  ;;  %v1943_v33 = vshll.u32 %v5968_v20, 16  ;;  %v1820_v52 = vrot.slane %v1818_v53, 4  ;;  %v1951_v53 = vshll.u32 %v1855_v18, 16 }
 0x268   : > { %4441 = vmatmul.bf16.gmra.mxu3 %v3803_v39  ;;  %v1930_v39 = vor.u32 %v1929_v34, %v1926_v27  ;;  %v7599_v42 = vpop.permute.xlu2 %3464  ;;  %v7618_v27 = vrot.slane %v1957_v22, 5  ;;  %v1963_v34 = vrot.slane %v1961_v8, 4 }
 0x269   : > { %v1945_v13 = vrot.slane %v1943_v33, 5  ;;  %v1822_v50 = vsel %vm7004_vm14, %v1820_v52, %v1821_v5  ;;  %v5779_v33 = vld [vmem:[#allocation2 + $0x78] sm:$0xff]  ;;  %v1998_v52 = vrot.slane %v1996_v38, 4  ;;  %v1953_v24 = vrot.slane %v1951_v53, 5 }
 0x26a   : > { %v1931_v25 = vrot.slane %v1930_v39, 4  ;;  %v3235_v54 = vunpack.c.l.b16 %v1822_v50  ;;  %v2001_v39 = vrot.slane %v1999_v30, 5  ;;  %v1964_v6 = vor.u32 %v1963_v34, %v7618_v27 }
 0x26c   : > { %v1936_v7 = vsel %vm6527_vm8, %v1931_v25, %v7590_v49  ;;  %v5973_v49 = vld [vmem:[#allocation2 + $0x2c] sm:$0x1]  ;;  %v3255_v20 = vpack.c.b16 %v3235_v54, %v3234_v29  ;;  %v2002_v8 = vor.u32 %v2001_v39, %v1998_v52  ;;  %v1965_v41 = vrot.slane %v1964_v6, 4  ;;  %v2894_v6 = vld [vmem:[#allocation2 + $0x30] sm:$0xe] }
 0x26d   : > { %v5974_v25 = vld [vmem:[#allocation2 + $0x2c] sm:$0x1]  ;;  %v3630_v54 = vunpack.c.l.b16 %v2966_v21 }
 0x26e   : > { %v1967_v43 = vshll.u32 %v5974_v25, 16  ;;  %v2003_v1 = vrot.slane %v2002_v8, 4 }
 0x270   : > { %4332 = vmatmul.bf16.gmra.mxu1 %v3723_v0  ;;  %v1946_v0 = vsel %vm6527_vm8, %v1941_v47, %v1945_v13  ;;  %v7624_v47 = vpop.permute.xlu2 %3466  ;;  %v3787_v13 = vsel %vm3676_vm11, %v3255_v20, %v3347_v12  ;;  %v1969_v30 = vrot.slane %v1967_v43, 5  ;;  %v2008_v53 = vsel %vm6527_vm8, %v2003_v1, %v7616_v14  ;;  %v5824_v20 = vld [vmem:[%s8340_s7 + $0x8] sm:$0xff] }
 0x271   : > { %v3359_v36 = vunpack.c.l.b16 %v1946_v0  ;;  %v2013_v0 = vrot.slane %v2012_v51, 4  ;;  %v3364_v52 = vunpack.c.l.b16 %v2008_v53  ;;  %4920 = vmatpush.bf16.msrb.mxu2 %v5824_v20 }
 0x272   : > { %v1970_v29 = vsel %vm6527_vm8, %v1965_v41, %v1969_v30  ;;  %v5978_v30 = vld [vmem:[#allocation2 + $0x38] sm:$0x1] }
 0x273   : > { %v1991_v1 = vshll.u32 %v5978_v30, 16 }
 0x277   : > { %4416 = vmatmul.bf16.gmra.mxu2 %v3783_v44  ;;  %4579 = vmatmul.bf16.gmra.mxu0 %v3899_v46  ;;  %v2968_v44 = vrot.slane %v5973_v49, 5  ;;  %v2015_v46 = vshll.u32 %v7344_v31, 16  ;;  %v1950_v31 = vrot.slane %v1948_v35, 4  ;;  %v5976_v49 = vld [vmem:[#allocation2 + $0x34] sm:$0xf] }
 0x278   : > { %4455 = vmatmul.bf16.vlgmr.msrb.gmra.mxu3 %v3807_v15  ;;  %v3358_v15 = vunpack.c.l.b16 %v1936_v7  ;;  %v7648_v34 = vpop.permute.xlu2 %3468 }
 0x279   : > { %v2969_v17 = vsel %vm7004_vm14, %v2967_v2, %v2968_v44  ;;  %v1954_v22 = vor.u32 %v1953_v24, %v1950_v31  ;;  %v2017_v7 = vrot.slane %v2015_v46, 5  ;;  %v2972_v44 = vrot.slane %v5976_v49, 5  ;;  %v1857_v46 = vld [vmem:[#allocation2 + $0x30] sm:$0xf]  ;;  %v5780_v24 = vld [vmem:[#allocation2 + $0x84] sm:$0xff] }
 0x27a   : > { %v3389_v5 = vpack.c.b16 %v3359_v36, %v3358_v15  ;;  %v3631_v18 = vunpack.c.l.b16 %v2969_v17  ;;  %v5975_v36 = vld [vmem:[#allocation2 + $0x34] sm:$0xf]  ;;  %v1972_v39 = vshrl.u32 %v1857_v46, 16  ;;  %v1975_v14 = vshll.u32 %v1857_v46, 16 }
 0x27b   : > { %v7601_v56 = vpop.f32.mrf.mxu3  ;;  %v1985_v2 = vshrl.u32 %v5975_v36, 16  ;;  %v1955_v4 = vrot.slane %v1954_v22, 4  ;;  %v1981_v37 = vshll.u32 %v5975_v36, 16 }
 0x27c   : > { %v3811_v50 = vsel %vm3676_vm11, %v3389_v5, %v7528_v63  ;;  %v2018_v63 = vsel %vm6527_vm8, %v2013_v0, %v2017_v7  ;;  %v3661_v12 = vpack.c.b16 %v3631_v18, %v3630_v54  ;;  %v1974_v0 = vrot.slane %v1972_v39, 4 }
 0x27d   : > { %v7603_v10 = vpop.f32.mrf.mxu1  ;;  %v1960_v15 = vsel %vm6527_vm8, %v1955_v4, %v7618_v27  ;;  %v1983_v51 = vrot.slane %v1981_v37, 5  ;;  %v1987_v5 = vrot.slane %v1985_v2, 4  ;;  %v5977_v27 = vld [vmem:[#allocation2 + $0x38] sm:$0x1]  ;;  %v1977_v18 = vrot.slane %v1975_v14, 5 }
 0x27e   : > { %v3360_v31 = vunpack.c.l.b16 %v1960_v15  ;;  %v5327_v7 = vrot.slane %v2894_v6, 9 }
 0x27f   : > { %v1988_v22 = vor.u32 %v1987_v5, %v1983_v51  ;;  %v1978_v2 = vor.u32 %v1977_v18, %v1974_v0  ;;  %v5781_v5 = vld [vmem:[#allocation2 + $0x90] sm:$0xff] }
 0x280   : > { %5677 = vmatmul.msk.bf16.vlgmr.msrb.gmra.mxu1 %vm3676_vm11, %v7372_v62  ;;  %v3613_v62 = vpop.permute.xlu0 %3612 }
 0x281   : > { %v3903_v48 = vsel %vm3676_vm11, %v5779_v33, %v3613_v62  ;;  %v3365_v62 = vunpack.c.l.b16 %v2018_v63  ;;  %v3361_v33 = vunpack.c.l.b16 %v1970_v29  ;;  %v7670_v63 = vpop.permute.xlu2 %3470  ;;  %v1979_v49 = vrot.slane %v1978_v2, 4  ;;  %v1861_v2 = vld [vmem:[#allocation2 + $0x48] sm:$0xf] }
 0x283   : > { %v7621_v59 = vpop.f32.mrf.mxu3  ;;  %v3390_v43 = vpack.c.b16 %v3361_v33, %v3360_v31  ;;  %v5980_v31 = vld [vmem:[#allocation2 + $0x44] sm:$0x1] }
 0x285   : > { %v7626_v3 = vpop.f32.mrf.mxu1  ;;  %v3815_v41 = vsel %vm3676_vm11, %v3390_v43, %v7545_v55  ;;  %v1993_v55 = vrot.slane %v1991_v1, 5 }
 0x287   : > { %4421 = vmatmul.bf16.gmra.mxu2 %v3787_v13  ;;  %4584 = vmatmul.bf16.gmra.mxu0 %v3903_v48  ;;  %v2974_v13 = vrot.slane %v2972_v44, 4  ;;  %v3392_v48 = vpack.c.b16 %v3365_v62, %v3364_v52  ;;  %v5979_v62 = vld [vmem:[#allocation2 + $0x40] sm:$0xf] }
 0x288   : > { %4460 = vmatmul.bf16.gmra.mxu3 %v3811_v50  ;;  %v3615_v60 = vpop.permute.xlu0 %3614  ;;  %v2975_v50 = vrot.slane %v5977_v27, 5  ;;  %v2979_v15 = vrot.slane %v5979_v62, 5  ;;  %v7688_v27 = vpop.f32.mrf.mxu2 }
 0x289   : > { %v7663_v21 = vsel %vm3676_vm11, %v3392_v48, %v7572_v40  ;;  %v3907_v8 = vsel %vm3676_vm11, %v5780_v24, %v3615_v60  ;;  %v2973_v40 = vsel %vm7004_vm14, %v5327_v7, %v2972_v44  ;;  %v1984_v44 = vsel %vm6527_vm8, %v1979_v49, %v1983_v51  ;;  %v3617_v33 = vpop.permute.xlu2 %3616  ;;  %v2895_v60 = vld [vmem:[#allocation2 + $0x3c] sm:$0xe] }
 0x28a   : > { %v2976_v54 = vsel %vm7004_vm14, %v2974_v13, %v2975_v50  ;;  %v3632_v29 = vunpack.c.l.b16 %v2973_v40  ;;  %v3362_v39 = vunpack.c.l.b16 %v1984_v44  ;;  %v2981_v14 = vrot.slane %v2979_v15, 4  ;;  %v5982_v40 = vld [vmem:[#allocation2 + $0x4c] sm:$0xf]  ;;  %v5782_v44 = vld [vmem:[#allocation2 + $0x9c] sm:$0xff] }
 0x28b   : > { %v7637_v38 = vpop.f32.mrf.mxu3  ;;  %v3633_v36 = vunpack.c.l.b16 %v2976_v54  ;;  %v2982_v13 = vrot.slane %v5980_v31, 5  ;;  %v3911_v6 = vsel %vm3676_vm11, %v5781_v5, %v3617_v33  ;;  %v5328_v50 = vrot.slane %v2895_v60, 9  ;;  %v5981_v54 = vld [vmem:[#allocation2 + $0x4c] sm:$0xf]  ;;  %v5983_v33 = vld [vmem:[#allocation2 + $0x50] sm:$0x1] }
 0x28c   : > { %v2033_v30 = vshrl.u32 %v5981_v54, 16  ;;  %v2029_v1 = vshll.u32 %v5981_v54, 16 }
 0x28d   : > { %v7641_v35 = vpop.f32.mrf.mxu1  ;;  %v3662_v53 = vpack.c.b16 %v3633_v36, %v3632_v29  ;;  %v2983_v43 = vsel %vm7004_vm14, %v2981_v14, %v2982_v13  ;;  %v2980_v0 = vsel %vm7004_vm14, %v5328_v50, %v2979_v15  ;;  %v2986_v36 = vrot.slane %v5982_v40, 5  ;;  %v7707_v14 = vpop.f32.mrf.mxu0  ;;  %v5984_v50 = vld [vmem:[#allocation2 + $0x50] sm:$0x1] }
 0x28e   : > { %v3635_v18 = vunpack.c.l.b16 %v2983_v43  ;;  %v2020_v29 = vshrl.u32 %v1861_v2, 16  ;;  %v2035_v49 = vrot.slane %v2033_v30, 4  ;;  %v2039_v43 = vshll.u32 %v5984_v50, 16 }
 0x28f   : > { %v2988_v15 = vrot.slane %v2986_v36, 4 }
 0x290   : > { %5678 = vmatmul.msk.bf16.gmra.mxu1 %vm3676_vm11, %v3661_v12  ;;  %v1989_v12 = vrot.slane %v1988_v22, 4  ;;  %v2022_v31 = vrot.slane %v2020_v29, 4  ;;  %v2041_v29 = vrot.slane %v2039_v43, 5 }
 0x292   : > { %v1994_v46 = vsel %vm6527_vm8, %v1989_v12, %v1993_v55  ;;  %v7703_v12 = vpop.f32.mrf.mxu2  ;;  %v2023_v55 = vshll.u32 %v1861_v2, 16 }
 0x293   : > { %v7657_v17 = vpop.f32.mrf.mxu3  ;;  %v3363_v20 = vunpack.c.l.b16 %v1994_v46 }
 0x294   : > { %v2025_v13 = vrot.slane %v2023_v55, 5  ;;  %v5985_v55 = vld [vmem:[#allocation2 + $0x58] sm:$0xf] }
 0x295   : > { %v7659_v25 = vpop.f32.mrf.mxu1  ;;  %v3391_v24 = vpack.c.b16 %v3363_v20, %v3362_v39  ;;  %v2896_v20 = vld [vmem:[#allocation2 + $0x48] sm:$0xe]  ;;  %v2989_v39 = vrot.slane %v5983_v33, 5  ;;  %v7728_v33 = vpop.f32.mrf.mxu0 }
 0x296   : > { %v2026_v54 = vor.u32 %v2025_v13, %v2022_v31  ;;  %v5823_v13 = vld [vmem:[%s8340_s7] sm:$0xff] }
 0x297   : > { %4589 = vmatmul.bf16.gmra.mxu0 %v3907_v8  ;;  %v3819_v51 = vsel %vm3676_vm11, %v3391_v24, %v7553_v58  ;;  %v7694_v8 = vpop.permute.xlu1 %3472  ;;  %4921 = vmatpush.bf16.msrb.mxu2 %v5823_v13 }
 0x298   : > { %4465 = vmatmul.bf16.gmra.mxu3 %v3815_v41  ;;  %v3634_v41 = vunpack.c.l.b16 %v2980_v0  ;;  %v7715_v0 = vpop.permute.xlu0 %3474 }
 0x29a   : > { %v3663_v58 = vpack.c.b16 %v3635_v18, %v3634_v41 }
 0x29b   : > { %v7674_v4 = vpop.f32.mrf.mxu3 }
 0x29d   : > { %v7676_v37 = vpop.f32.mrf.mxu1 }
 0x29e   : > { %8362 = vst [vmem:[#allocation14_spill] sm:$0xff] %v7676_v37 }
 0x29f   : > { %v3619_v46 = vpop.permute.xlu1 %3618 }
 0x2a0   : > { %5679 = vmatmul.msk.bf16.gmra.mxu1 %vm3676_vm11, %v3662_v53  ;;  %v2031_v53 = vrot.slane %v2029_v1, 5  ;;  %v3915_v60 = vsel %vm3676_vm11, %v5782_v44, %v3619_v46  ;;  %v3621_v43 = vpop.permute.xlu0 %3620 }
 0x2a2   : > { %v2036_v24 = vor.u32 %v2035_v49, %v2031_v53  ;;  %v2057_v49 = vshrl.u32 %v5985_v55, 16 }
 0x2a3   : > { %v7683_v52 = vpop.f32.mrf.mxu3 }
 0x2a4   : > { %v2037_v30 = vrot.slane %v2036_v24, 4  ;;  %v2059_v50 = vrot.slane %v2057_v49, 4 }
 0x2a5   : > { %v7685_v48 = vpop.f32.mrf.mxu1 }
 0x2a6   : > { %8363 = vst [vmem:[#allocation15_spill] sm:$0xff] %v7685_v48 }
 0x2a7   : > { %4594 = vmatmul.bf16.gmra.mxu0 %v3911_v6  ;;  %v5329_v6 = vrot.slane %v2896_v20, 9  ;;  %v2027_v20 = vrot.slane %v2026_v54, 4 }
 0x2a8   : > { %4470 = vmatmul.bf16.gmra.mxu3 %v3819_v51  ;;  %v2990_v51 = vsel %vm7004_vm14, %v2988_v15, %v2989_v39  ;;  %v2053_v15 = vshll.u32 %v5985_v55, 16  ;;  %v5986_v39 = vld [vmem:[#allocation2 + $0x58] sm:$0xf] }
 0x2a9   : > { %v2987_v18 = vsel %vm7004_vm14, %v5329_v6, %v2986_v36  ;;  %v3637_v41 = vunpack.c.l.b16 %v2990_v51  ;;  %v2042_v36 = vsel %vm6527_vm8, %v2037_v30, %v2041_v29  ;;  %v5987_v30 = vld [vmem:[#allocation2 + $0x5c] sm:$0x1]  ;;  %v2897_v29 = vld [vmem:[#allocation2 + $0x54] sm:$0xe] }
 0x2aa   : > { %v3636_v2 = vunpack.c.l.b16 %v2987_v18  ;;  %v3367_v24 = vunpack.c.l.b16 %v2042_v36  ;;  %v2055_v51 = vrot.slane %v2053_v15, 5 }
 0x2ab   : > { %v7698_v22 = vpop.f32.mrf.mxu3 }
 0x2ac   : > { %v3664_v44 = vpack.c.b16 %v3637_v41, %v3636_v2  ;;  %v2060_v49 = vor.u32 %v2059_v50, %v2055_v51 }
 0x2ad   : > { %v7700_v7 = vpop.f32.mrf.mxu1 }
 0x2ae   : > { %8364 = vst [vmem:[#allocation16_spill] sm:$0xff] %v7700_v7 }
 0x2b0   : > { %5680 = vmatmul.msk.bf16.gmra.mxu1 %vm3676_vm11, %v3663_v58  ;;  %v7719_v58 = vpop.f32.mrf.mxu2 }
 0x2b3   : > { %v7705_v62 = vpop.f32.mrf.mxu3 }
 0x2b5   : > { %v7709_v5 = vpop.f32.mrf.mxu1 }
 0x2b6   : > { %8365 = vst [vmem:[#allocation17_spill] sm:$0xff] %v7709_v5  ;;  %v7788_v5 = vpop.permute.xlu1 %3478 }
 0x2b7   : > { %4599 = vmatmul.bf16.gmra.mxu0 %v3915_v60  ;;  %v2993_v60 = vrot.slane %v5986_v39, 5  ;;  %v5988_v39 = vld [vmem:[#allocation2 + $0x5c] sm:$0x1] }
 0x2b8   : > { %4475 = vmatmul.bf16.gmra.mxu3 %v7663_v21  ;;  %v1863_v21 = vld [vmem:[#allocation2 + $0x54] sm:$0xf]  ;;  %v7739_v55 = vpop.f32.mrf.mxu2 }
 0x2b9   : > { %v2044_v31 = vshrl.u32 %v1863_v21, 16  ;;  %v2047_v6 = vshll.u32 %v1863_v21, 16  ;;  %v2995_v54 = vrot.slane %v2993_v60, 4 }
 0x2bb   : > { %v4427_v1 = vpop.f32.mrf.mxu3  ;;  %v2046_v21 = vrot.slane %v2044_v31, 4  ;;  %v2049_v15 = vrot.slane %v2047_v6, 5  ;;  %v2061_v6 = vrot.slane %v2060_v49, 4 }
 0x2bc   : > { %v7722_v40 = vadd.f32 %v4427_v1, %v7601_v56  ;;  %v2032_v56 = vsel %vm6527_vm8, %v2027_v20, %v2031_v53  ;;  %v2996_v1 = vrot.slane %v5987_v30, 5  ;;  %v5783_v53 = vld [vmem:[#allocation2 + $0xa8] sm:$0xff]  ;;  %v7748_v30 = vpop.permute.xlu2 %3476 }
 0x2bd   : > { %v7724_v46 = vpop.f32.mrf.mxu1  ;;  %v3366_v41 = vunpack.c.l.b16 %v2032_v56  ;;  %v3919_v36 = vsel %vm3676_vm11, %v5783_v53, %v3621_v43  ;;  %v2063_v56 = vshll.u32 %v5988_v39, 16 }
 0x2be   : > { %8366 = vst [vmem:[#allocation18_spill] sm:$0xff] %v7722_v40  ;;  %v5784_v40 = vld [vmem:[#allocation2 + $0xb4] sm:$0xff] }
 0x2bf   : > { %8367 = vst [vmem:[#allocation19_spill] sm:$0xff] %v7724_v46  ;;  %v3393_v20 = vpack.c.b16 %v3367_v24, %v3366_v41  ;;  %v2050_v24 = vor.u32 %v2049_v15, %v2046_v21  ;;  %v2065_v41 = vrot.slane %v2063_v56, 5 }
 0x2c0   : > { %5681 = vmatmul.msk.bf16.gmra.mxu1 %vm3676_vm11, %v3664_v44  ;;  %v7761_v49 = vpop.f32.mrf.mxu2 }
 0x2c1   : > { %v3827_v13 = vsel %vm3676_vm11, %v3393_v20, %v7588_v45  ;;  %v2066_v39 = vsel %vm6527_vm8, %v2061_v6, %v2065_v41 }
 0x2c3   : > { %v4429_v18 = vpop.f32.mrf.mxu3 }
 0x2c4   : > { %v7737_v2 = vadd.f32 %v4429_v18, %v7621_v59  ;;  %v5330_v59 = vrot.slane %v2897_v29, 9  ;;  %v2997_v18 = vsel %vm7004_vm14, %v2995_v54, %v2996_v1  ;;  %v5989_v29 = vld [vmem:[#allocation2 + $0x64] sm:$0xf]  ;;  %v1865_v54 = vld [vmem:[#allocation2 + $0x60] sm:$0xf] }
 0x2c5   : > { %v7741_v44 = vpop.f32.mrf.mxu1  ;;  %v3639_v50 = vunpack.c.l.b16 %v2997_v18  ;;  %v3000_v20 = vrot.slane %v5989_v29, 5  ;;  %v2068_v56 = vshrl.u32 %v1865_v54, 16  ;;  %v3369_v18 = vunpack.c.l.b16 %v2066_v39 }
 0x2c6   : > { %8368 = vst [vmem:[#allocation20_spill] sm:$0xff] %v7737_v2  ;;  %v7750_v2 = vpop.f32.mrf.mxu0  ;;  %v2994_v31 = vsel %vm7004_vm14, %v5330_v59, %v2993_v60  ;;  %v2071_v59 = vshll.u32 %v1865_v54, 16 }
 0x2c7   : > { %8369 = vst [vmem:[#allocation21_spill] sm:$0xff] %v7741_v44  ;;  %4604 = vmatmul.bf16.gmra.mxu0 %v3919_v36  ;;  %v3638_v53 = vunpack.c.l.b16 %v2994_v31  ;;  %v2051_v36 = vrot.slane %v2050_v24, 4  ;;  %v2898_v31 = vld [vmem:[#allocation2 + $0x60] sm:$0xe]  ;;  %v5991_v24 = vld [vmem:[#allocation2 + $0x68] sm:$0x1] }
 0x2c8   : > { %4480 = vmatmul.bf16.gmra.mxu3 %v3827_v13  ;;  %v5990_v13 = vld [vmem:[#allocation2 + $0x64] sm:$0xf]  ;;  %v3003_v29 = vrot.slane %v5991_v24, 5  ;;  %v2490_v24 = vld [vmem:[#allocation2 + $0xcc] sm:$0xf] }
 0x2c9   : > { %v2081_v60 = vshrl.u32 %v5990_v13, 16  ;;  %v3665_v21 = vpack.c.b16 %v3639_v50, %v3638_v53  ;;  %v2077_v15 = vshll.u32 %v5990_v13, 16  ;;  %v7775_v44 = vld [vmem:[#allocation2 + $0xd0] sm:$0xf]  ;;  %v2872_v46 = vshll.u32 %v2490_v24, 16 }
 0x2ca   : > { %8373 = vst [vmem:[#allocation25_spill] sm:$0xff] %v7775_v44 }
 0x2cb   : > { %v4432_v43 = vpop.f32.mrf.mxu3  ;;  %v7766_v41 = vrot.slane %v2077_v15, 5  ;;  %v2083_v50 = vrot.slane %v2081_v60, 4  ;;  %v7777_v15 = vld [vmem:[#allocation2 + $0xd4] sm:$0x1] }
 0x2cc   : > { %v7755_v45 = vadd.f32 %v4432_v43, %v7637_v38  ;;  %v2056_v38 = vsel %vm6527_vm8, %v2051_v36, %v2055_v51  ;;  %v3002_v43 = vrot.slane %v3000_v20, 4  ;;  %v2070_v51 = vrot.slane %v2068_v56, 4  ;;  %8374 = vst [vmem:[#allocation26_spill] sm:$0xff] %v7777_v15 }
 0x2cd   : > { %v7757_v1 = vpop.f32.mrf.mxu1  ;;  %v3368_v6 = vunpack.c.l.b16 %v2056_v38  ;;  %v2073_v36 = vrot.slane %v2071_v59, 5  ;;  %v2869_v38 = vshrl.u32 %v2490_v24, 16  ;;  %v2882_v56 = vshrl.u32 %v7775_v44, 16 }
 0x2ce   : > { %8370 = vst [vmem:[#allocation22_spill] sm:$0xff] %v7755_v45  ;;  %v3623_v45 = vpop.permute.xlu2 %3622  ;;  %v7768_v53 = vpop.f32.mrf.mxu0 }
 0x2cf   : > { %8371 = vst [vmem:[#allocation23_spill] sm:$0xff] %v7757_v1  ;;  %v5331_v1 = vrot.slane %v2898_v31, 9  ;;  %v3394_v39 = vpack.c.b16 %v3369_v18, %v3368_v6  ;;  %v2878_v31 = vshll.u32 %v7775_v44, 16  ;;  %v3923_v59 = vsel %vm3676_vm11, %v5784_v40, %v3623_v45 }
 0x2d0   : > { %5682 = vmatmul.msk.bf16.gmra.mxu1 %vm3676_vm11, %v3665_v21  ;;  %v3004_v21 = vsel %vm7004_vm14, %v3002_v43, %v3003_v29  ;;  %v2084_v18 = vor.u32 %v2083_v50, %v7766_v41  ;;  %v2888_v43 = vshll.u32 %v7777_v15, 16  ;;  %v2871_v29 = vrot.slane %v2869_v38, 4  ;;  %v5993_v15 = vld [vmem:[#allocation2 + $0x70] sm:$0xf] }
 0x2d1   : > { %v2874_v6 = vrot.slane %v2872_v46, 5  ;;  %v3001_v7 = vsel %vm7004_vm14, %v5331_v1, %v3000_v20  ;;  %v3641_v40 = vunpack.c.l.b16 %v3004_v21 }
 0x2d2   : > { %v2890_v48 = vrot.slane %v2888_v43, 5  ;;  %v3640_v46 = vunpack.c.l.b16 %v3001_v7  ;;  %v5994_v43 = vld [vmem:[#allocation2 + $0x70] sm:$0xf] }
 0x2d3   : > { %v4434_v13 = vpop.f32.mrf.mxu3  ;;  %v2875_v45 = vor.u32 %v2874_v6, %v2871_v29  ;;  %v3007_v29 = vrot.slane %v5994_v43, 5  ;;  %v1867_v6 = vld [vmem:[#allocation2 + $0x6c] sm:$0xf] }
 0x2d4   : > { %v7771_v54 = vadd.f32 %v4434_v13, %v7657_v17  ;;  %v3831_v17 = vsel %vm3676_vm11, %v3394_v39, %v7599_v42  ;;  %v2880_v13 = vrot.slane %v2878_v31, 5  ;;  %v2074_v42 = vor.u32 %v2073_v36, %v2070_v51  ;;  %v7792_v39 = vpop.f32.mrf.mxu2 }
 0x2d5   : > { %v7779_v60 = vpop.f32.mrf.mxu1  ;;  %v2876_v31 = vrot.slane %v2875_v45, 4  ;;  %v3666_v1 = vpack.c.b16 %v3641_v40, %v3640_v46  ;;  %v3625_v40 = vpop.permute.xlu1 %3624  ;;  %v2095_v45 = vshll.u32 %v1867_v6, 16 }
 0x2d6   : > { %8372 = vst [vmem:[#allocation24_spill] sm:$0xff] %v7771_v54  ;;  %v2884_v54 = vrot.slane %v2882_v56, 4  ;;  %v7797_v37 = vpop.f32.mrf.mxu0  ;;  %v2075_v51 = vrot.slane %v2074_v42, 4  ;;  %v3483_v23 = vpop.permute.xlu2 %3482 }
 0x2d7   : > { %8375 = vst [vmem:[#allocation27_spill] sm:$0xff] %v7779_v60  ;;  %4609 = vmatmul.bf16.gmra.mxu0 %v3923_v59  ;;  %v5992_v60 = vld [vmem:[#allocation2 + $0x68] sm:$0x1]  ;;  %v2085_v59 = vrot.slane %v2084_v18, 4  ;;  %v2881_v36 = vsel %vm6527_vm8, %v2876_v31, %v2880_v13  ;;  %v3009_v31 = vrot.slane %v3007_v29, 4 }
 0x2d8   : > { %v2087_v24 = vshll.u32 %v5992_v60, 16  ;;  %4485 = vmatmul.bf16.gmra.mxu3 %v3831_v17  ;;  %v2885_v50 = vor.u32 %v2884_v54, %v2880_v13  ;;  %v2105_v60 = vshrl.u32 %v5993_v15, 16  ;;  %v3578_v21 = vunpack.c.l.b16 %v2881_v36 }
 0x2da   : > { %v2886_v56 = vrot.slane %v2885_v50, 4  ;;  %v2089_v17 = vrot.slane %v2087_v24, 5  ;;  %v2080_v24 = vsel %vm6527_vm8, %v2075_v51, %v7766_v41  ;;  %v5995_v41 = vld [vmem:[#allocation2 + $0x74] sm:$0x1] }
 0x2db   : > { %v4437_v38 = vpop.f32.mrf.mxu3  ;;  %v3370_v46 = vunpack.c.l.b16 %v2080_v24  ;;  %v3010_v51 = vrot.slane %v5995_v41, 5  ;;  %v5996_v24 = vld [vmem:[#allocation2 + $0x74] sm:$0x1] }
 0x2dc   : > { %v7795_v44 = vadd.f32 %v4437_v38, %v7674_v4  ;;  %v2891_v7 = vsel %vm6527_vm8, %v2886_v56, %v2890_v48  ;;  %v2090_v54 = vsel %vm6527_vm8, %v2085_v59, %v2089_v17  ;;  %v2101_v4 = vshll.u32 %v5993_v15, 16  ;;  %v7812_v38 = vpop.f32.mrf.mxu2  ;;  %v5785_v17 = vld [vmem:[#allocation2 + $0xc0] sm:$0xff] }
 0x2dd   : > { %v7799_v20 = vpop.f32.mrf.mxu1  ;;  %v3579_v18 = vunpack.c.l.b16 %v2891_v7  ;;  %v3371_v13 = vunpack.c.l.b16 %v2090_v54  ;;  %v2092_v48 = vshrl.u32 %v1867_v6, 16  ;;  %v2107_v59 = vrot.slane %v2105_v60, 4 }
 0x2de   : > { %v2103_v50 = vrot.slane %v2101_v4, 5  ;;  %v3927_v54 = vsel %vm3676_vm11, %v5785_v17, %v3625_v40  ;;  %v7820_v4 = vpop.f32.mrf.mxu0  ;;  %v3011_v6 = vsel %vm7004_vm14, %v3009_v31, %v3010_v51  ;;  %v5997_v17 = vld [vmem:[#allocation2 + $0x7c] sm:$0xf] }
 0x2df   : > { %v3595_v42 = vpack.c.b16 %v3579_v18, %v3578_v21  ;;  %v3395_v7 = vpack.c.b16 %v3371_v13, %v3370_v46  ;;  %v2094_v21 = vrot.slane %v2092_v48, 4  ;;  %v2097_v18 = vrot.slane %v2095_v45, 5 }
 0x2e0   : > { %5683 = vmatmul.msk.bf16.gmra.mxu1 %vm3676_vm11, %v3666_v1  ;;  %v2899_v1 = vld [vmem:[#allocation2 + $0x6c] sm:$0xe]  ;;  %v2108_v60 = vor.u32 %v2107_v59, %v2103_v50  ;;  %v3643_v40 = vunpack.c.l.b16 %v3011_v6 }
 0x2e1   : > { %3626 = vrot.lane.b32.xlu0 %v3595_v42, %s6225_s20  ;;  %v3835_v43 = vsel %vm3676_vm11, %v3395_v7, %v7624_v47  ;;  %v2111_v42 = vshll.u32 %v5996_v24, 16  ;;  %v2098_v48 = vor.u32 %v2097_v18, %v2094_v21  ;;  %v2125_v21 = vshll.u32 %v5997_v17, 16  ;;  %v5998_v18 = vld [vmem:[#allocation2 + $0x7c] sm:$0xf] }
 0x2e2   : > { %v2109_v45 = vrot.slane %v2108_v60, 4  ;;  %v3014_v60 = vrot.slane %v5998_v18, 5 }
 0x2e3   : > { %v4439_v15 = vpop.f32.mrf.mxu3  ;;  %v2113_v47 = vrot.slane %v2111_v42, 5  ;;  %v2099_v7 = vrot.slane %v2098_v48, 4  ;;  %v2127_v24 = vrot.slane %v2125_v21, 5 }
 0x2e4   : > { %v7815_v56 = vadd.f32 %v4439_v15, %v7683_v52  ;;  %v5332_v52 = vrot.slane %v2899_v1, 9  ;;  %v2129_v1 = vshrl.u32 %v5997_v17, 16  ;;  %v7831_v41 = vpop.f32.mrf.mxu2  ;;  %v3016_v48 = vrot.slane %v3014_v60, 4 }
 0x2e5   : > { %v7817_v36 = vpop.f32.mrf.mxu1 }
 0x2e6   : > { %v3008_v13 = vsel %vm7004_vm14, %v5332_v52, %v3007_v29  ;;  %v2114_v29 = vsel %vm6527_vm8, %v2109_v45, %v2113_v47  ;;  %v2131_v42 = vrot.slane %v2129_v1, 4  ;;  %v2900_v45 = vld [vmem:[#allocation2 + $0x78] sm:$0xe] }
 0x2e7   : > { %4614 = vmatmul.bf16.gmra.mxu0 %v3927_v54  ;;  %v3642_v46 = vunpack.c.l.b16 %v3008_v13  ;;  %v1869_v54 = vld [vmem:[#allocation2 + $0x78] sm:$0xf] }
 0x2e8   : > { %4490 = vmatmul.bf16.gmra.mxu3 %v3835_v43  ;;  %v3373_v43 = vunpack.c.l.b16 %v2114_v29  ;;  %v2116_v52 = vshrl.u32 %v1869_v54, 16  ;;  %v2119_v6 = vshll.u32 %v1869_v54, 16  ;;  %v5333_v29 = vrot.slane %v2900_v45, 9 }
 0x2e9   : > { %v3667_v51 = vpack.c.b16 %v3643_v40, %v3642_v46  ;;  %v5999_v46 = vld [vmem:[#allocation2 + $0x80] sm:$0x1] }
 0x2ea   : > { %v3017_v47 = vrot.slane %v5999_v46, 5  ;;  %v2118_v18 = vrot.slane %v2116_v52, 4 }
 0x2eb   : > { %v4442_v59 = vpop.f32.mrf.mxu3 }
 0x2ec   : > { %v7829_v15 = vadd.f32 %v4442_v59, %v7698_v22  ;;  %v2104_v22 = vsel %vm6527_vm8, %v2099_v7, %v2103_v50  ;;  %v2132_v50 = vor.u32 %v2131_v42, %v2127_v24  ;;  %v7845_v7 = vpop.f32.mrf.mxu2  ;;  %v3018_v54 = vsel %vm7004_vm14, %v3016_v48, %v3017_v47 }
 0x2ed   : > { %v7833_v31 = vpop.f32.mrf.mxu1  ;;  %v3372_v40 = vunpack.c.l.b16 %v2104_v22  ;;  %v3015_v22 = vsel %vm7004_vm14, %v5333_v29, %v3014_v60  ;;  %v3645_v52 = vunpack.c.l.b16 %v3018_v54 }
 0x2ee   : > { %8376 = vst [vmem:[#allocation28_spill] sm:$0xff] %v7829_v15  ;;  %v2121_v15 = vrot.slane %v2119_v6, 5  ;;  %v2133_v6 = vrot.slane %v2132_v50, 4  ;;  %v3644_v45 = vunpack.c.l.b16 %v3015_v22 }
 0x2f0   : > { %5684 = vmatmul.msk.bf16.gmra.mxu1 %vm3676_vm11, %v3667_v51  ;;  %v3396_v51 = vpack.c.b16 %v3373_v43, %v3372_v40  ;;  %v4368_v43 = vadd.f32 %v7688_v27, %v7473_v16  ;;  %v7855_v40 = vpop.f32.mrf.mxu0  ;;  %v6002_v27 = vld [vmem:[#allocation2 + $0x88] sm:$0xf] }
 0x2f2   : > { %v3839_v1 = vsel %vm3676_vm11, %v3396_v51, %v7648_v34  ;;  %v6001_v51 = vld [vmem:[#allocation2 + $0x88] sm:$0xf] }
 0x2f3   : > { %v4444_v13 = vpop.f32.mrf.mxu3  ;;  %v2153_v48 = vshrl.u32 %v6001_v51, 16 }
 0x2f4   : > { %v7841_v59 = vadd.f32 %v4444_v13, %v7705_v62  ;;  %v6000_v62 = vld [vmem:[#allocation2 + $0x80] sm:$0x1]  ;;  %v2122_v13 = vor.u32 %v2121_v15, %v2118_v18  ;;  %v3668_v15 = vpack.c.b16 %v3645_v52, %v3644_v45  ;;  %v3021_v18 = vrot.slane %v6002_v27, 5  ;;  %v7863_v54 = vpop.f32.mrf.mxu2 }
 0x2f5   : > { %v7843_v17 = vpop.f32.mrf.mxu1  ;;  %v2135_v21 = vshll.u32 %v6000_v62, 16 }
 0x2f6   : > { %8377 = vst [vmem:[#allocation29_spill] sm:$0xff] %v7841_v59  ;;  %v2123_v62 = vrot.slane %v2122_v13, 4  ;;  %v2149_v59 = vshll.u32 %v6001_v51, 16  ;;  %v6003_v51 = vld [vmem:[#allocation2 + $0x8c] sm:$0x1] }
 0x2f7   : > { %v2137_v46 = vrot.slane %v2135_v21, 5 }
 0x2f8   : > { %4495 = vmatmul.bf16.gmra.mxu3 %v3839_v1  ;;  %v1871_v1 = vld [vmem:[#allocation2 + $0x84] sm:$0xf]  ;;  %v2128_v50 = vsel %vm6527_vm8, %v2123_v62, %v2127_v24  ;;  %v7865_v13 = vrot.slane %v2149_v59, 5  ;;  %v3024_v24 = vrot.slane %v6003_v51, 5 }
 0x2f9   : > { %v2138_v16 = vsel %vm6527_vm8, %v2133_v6, %v2137_v46  ;;  %v2140_v29 = vshrl.u32 %v1871_v1, 16  ;;  %v2143_v22 = vshll.u32 %v1871_v1, 16  ;;  %v7869_v6 = vld [vmem:[#allocation8] ss:$0 sm:$0xff]  ;;  %v3374_v45 = vunpack.c.l.b16 %v2128_v50  ;;  %v2901_v46 = vld [vmem:[#allocation2 + $0x84] sm:$0xe] }
 0x2fa   : > { %v3375_v21 = vunpack.c.l.b16 %v2138_v16 }
 0x2fb   : > { %v4456_v42 = vpop.f32.mrf.mxu3  ;;  %v2142_v16 = vrot.slane %v2140_v29, 4  ;;  %v2145_v1 = vrot.slane %v2143_v22, 5 }
 0x2fc   : > { %v4457_v34 = vadd.f32 %v4456_v42, %v4368_v43  ;;  %v2155_v43 = vrot.slane %v2153_v48, 4  ;;  %v3023_v42 = vrot.slane %v3021_v18, 4  ;;  %v3397_v27 = vpack.c.b16 %v3375_v21, %v3374_v45  ;;  %v7872_v48 = vpop.f32.mrf.mxu0  ;;  %v6004_v21 = vld [vmem:[#allocation2 + $0x8c] sm:$0x1]  ;;  %v7891_v51 = vpop.f32.mrf.mxu2 }
 0x2fd   : > { %v4634_v47 = vpop.f32.mrf.mxu1  ;;  %v2159_v29 = vshll.u32 %v6004_v21, 16 }
 0x2fe   : > { %v4546_v60 = vadd.f32 %v7707_v14, %v4457_v34  ;;  %v4370_v14 = vadd.f32 %v7703_v12, %v7497_v28  ;;  %v2156_v59 = vor.u32 %v2155_v43, %v7865_v13  ;;  %v7878_v12 = vld [vmem:[%s8339_s6] ss:$0 sm:$0xff]  ;;  %v3025_v50 = vsel %vm7004_vm14, %v3023_v42, %v3024_v24 }
 0x2ff   : > { %v3843_v22 = vsel %vm3676_vm11, %v3397_v27, %v7670_v63  ;;  %v2161_v63 = vrot.slane %v2159_v29, 5 }
 0x300   : > { %5685 = vmatmul.msk.bf16.gmra.mxu1 %vm3676_vm11, %v3668_v15  ;;  %v4635_v52 = vadd.f32 %v4634_v47, %v4546_v60  ;;  %v5334_v60 = vrot.slane %v2901_v46, 9  ;;  %v2157_v45 = vrot.slane %v2156_v59, 4 }
 0x302   : > { %v4718_v28 = vmul.f32 %v7869_v6, %v4635_v52  ;;  %v3647_v52 = vunpack.c.l.b16 %v3025_v50 }
 0x303   : > { %v4458_v34 = vpop.f32.mrf.mxu3 }
 0x304   : > { %v4459_v62 = vadd.f32 %v4458_v34, %v4370_v14  ;;  %v3022_v14 = vsel %vm7004_vm14, %v5334_v60, %v3021_v18  ;;  %v2146_v34 = vor.u32 %v2145_v1, %v2142_v16  ;;  %v4754_v46 = vadd.f32 %v7878_v12, %v4718_v28  ;;  %v7897_v29 = vpop.f32.mrf.mxu0 }
 0x305   : > { %v4636_v15 = vpop.f32.mrf.mxu1 }
 0x306   : > { %v4548_v47 = vadd.f32 %v7728_v33, %v4459_v62  ;;  %v4373_v33 = vadd.f32 %v7719_v58, %v7519_v32  ;;  %v3646_v62 = vunpack.c.l.b16 %v3022_v14  ;;  %v2147_v1 = vrot.slane %v2146_v34, 4  ;;  %v6006_v58 = vld [vmem:[#allocation2 + $0x94] sm:$0xf] }
 0x307   : > { %v2162_v32 = vsel %vm6527_vm8, %v2157_v45, %v2161_v63  ;;  %v3028_v59 = vrot.slane %v6006_v58, 5  ;;  %v4786_v28 = vmax.f32 %v4754_v46, 0.0  ;;  %v4375_v34 = vadd.f32 %v7739_v55, %v7530_v9 }
 0x308   : > { %v4637_v43 = vadd.f32 %v4636_v15, %v4548_v47  ;;  %4500 = vmatmul.bf16.gmra.mxu3 %v3843_v22  ;;  %v6005_v15 = vld [vmem:[#allocation2 + $0x94] sm:$0xf]  ;;  %v3669_v16 = vpack.c.b16 %v3647_v52, %v3646_v62  ;;  %v1873_v22 = vld [vmem:[#allocation2 + $0x90] sm:$0xf]  ;;  %v2152_v52 = vsel %vm6527_vm8, %v2147_v1, %v7865_v13  ;;  %v3377_v45 = vunpack.c.l.b16 %v2162_v32  ;;  %v7908_v13 = vpop.f32.mrf.mxu2 }
 0x309   : > { %v2177_v27 = vshrl.u32 %v6005_v15, 16  ;;  %v2167_v46 = vshll.u32 %v1873_v22, 16 }
 0x30a   : > { %v4719_v42 = vmul.f32 %v7869_v6, %v4637_v43  ;;  %v2173_v43 = vshll.u32 %v6005_v15, 16 }
 0x30b   : > { %v4461_v24 = vpop.f32.mrf.mxu3  ;;  %v2179_v63 = vrot.slane %v2177_v27, 4 }
 0x30c   : > { %v4755_v47 = vadd.f32 %v7878_v12, %v4719_v42  ;;  %v4462_v18 = vadd.f32 %v4461_v24, %v4373_v33  ;;  %v2164_v33 = vshrl.u32 %v1873_v22, 16  ;;  %v3030_v24 = vrot.slane %v3028_v59, 4 }
 0x30d   : > { %v4639_v60 = vpop.f32.mrf.mxu1  ;;  %v7906_v62 = vrot.slane %v2173_v43, 5  ;;  %v6008_v43 = vld [vmem:[#allocation2 + $0x98] sm:$0x1] }
 0x30e   : > { %v4787_v50 = vmax.f32 %v4755_v47, 0.0  ;;  %v4551_v21 = vadd.f32 %v7750_v2, %v4462_v18  ;;  %v2902_v2 = vld [vmem:[#allocation2 + $0x90] sm:$0xe]  ;;  %v3376_v47 = vunpack.c.l.b16 %v2152_v52  ;;  %v6007_v18 = vld [vmem:[#allocation2 + $0x98] sm:$0x1]  ;;  %v2166_v32 = vrot.slane %v2164_v33, 4 }
 0x30f   : > { %v5335_v55 = vrot.slane %v2902_v2, 9  ;;  %v2180_v27 = vor.u32 %v2179_v63, %v7906_v62  ;;  %v6009_v63 = vld [vmem:[#allocation2 + $0xa0] sm:$0xf] }
 0x310   : > { %v4818_v14 = vpack.c.bf16 %v4787_v50, %v4786_v28  ;;  %5686 = vmatmul.msk.bf16.gmra.mxu1 %vm3676_vm11, %v3669_v16  ;;  %v4640_v42 = vadd.f32 %v4639_v60, %v4551_v21  ;;  %v3031_v16 = vrot.slane %v6007_v18, 5  ;;  %v3398_v9 = vpack.c.b16 %v3377_v45, %v3376_v47  ;;  %v1875_v45 = vld [vmem:[#allocation2 + $0x9c] sm:$0xf] }
 0x311   : > { %v2169_v28 = vrot.slane %v2167_v46, 5 }
 0x312   : > { %5709 = vmatmul.msk.bf16.vlgmr.msrb.gmra.mxu2 %vm3676_vm11, %v4818_v14  ;;  %v4720_v60 = vmul.f32 %v7869_v6, %v4640_v42  ;;  %v3032_v21 = vsel %vm7004_vm14, %v3030_v24, %v3031_v16  ;;  %v3847_v22 = vsel %vm3676_vm11, %v3398_v9, %v7694_v8  ;;  %v2183_v14 = vshll.u32 %v6008_v43, 16  ;;  %v7921_v42 = vpop.f32.mrf.mxu0  ;;  %v6010_v9 = vld [vmem:[#allocation2 + $0xa0] sm:$0xf]  ;;  %v7929_v43 = vpop.f32.mrf.mxu2 }
 0x313   : > { %v4463_v15 = vpop.f32.mrf.mxu3  ;;  %v3649_v33 = vunpack.c.l.b16 %v3032_v21  ;;  %v2170_v46 = vor.u32 %v2169_v28, %v2166_v32  ;;  %v2181_v8 = vrot.slane %v2180_v27, 4  ;;  %v2188_v16 = vshrl.u32 %v1875_v45, 16 }
 0x314   : > { %v4464_v58 = vadd.f32 %v4463_v15, %v4375_v34  ;;  %v3029_v34 = vsel %vm7004_vm14, %v5335_v55, %v3028_v59  ;;  %v4756_v2 = vadd.f32 %v7878_v12, %v4720_v60  ;;  %v2201_v15 = vshrl.u32 %v6009_v63, 16 }
 0x315   : > { %v4641_v1 = vpop.f32.mrf.mxu1  ;;  %v3648_v18 = vunpack.c.l.b16 %v3029_v34  ;;  %v3035_v55 = vrot.slane %v6010_v9, 5  ;;  %v2191_v28 = vshll.u32 %v1875_v45, 16  ;;  %v6011_v34 = vld [vmem:[#allocation2 + $0xa4] sm:$0x1] }
 0x316   : > { %v4553_v50 = vadd.f32 %v7768_v53, %v4464_v58  ;;  %v4378_v53 = vadd.f32 %v7761_v49, %v7549_v57  ;;  %v2171_v49 = vrot.slane %v2170_v46, 4  ;;  %v4788_v60 = vmax.f32 %v4756_v2, 0.0 }
 0x317   : > { %v3670_v57 = vpack.c.b16 %v3649_v33, %v3648_v18  ;;  %v2190_v33 = vrot.slane %v2188_v16, 4  ;;  %v2193_v2 = vrot.slane %v2191_v28, 5  ;;  %v3037_v18 = vrot.slane %v3035_v55, 4 }
 0x318   : > { %v4642_v52 = vadd.f32 %v4641_v1, %v4553_v50  ;;  %4505 = vmatmul.bf16.gmra.mxu3 %v3847_v22  ;;  %v2185_v1 = vrot.slane %v2183_v14, 5  ;;  %v2197_v50 = vshll.u32 %v6009_v63, 16  ;;  %v2176_v45 = vsel %vm6527_vm8, %v2171_v49, %v7906_v62 }
 0x319   : > { %v2194_v28 = vor.u32 %v2193_v2, %v2190_v33 }
 0x31a   : > { %v4721_v24 = vmul.f32 %v7869_v6, %v4642_v52  ;;  %v2186_v22 = vsel %vm6527_vm8, %v2181_v8, %v2185_v1  ;;  %v2903_v52 = vld [vmem:[#allocation2 + $0x9c] sm:$0xe]  ;;  %v4380_v8 = vadd.f32 %v7792_v39, %v7568_v11  ;;  %v7938_v1 = vpop.f32.mrf.mxu0 }
 0x31b   : > { %v4466_v47 = vpop.f32.mrf.mxu3  ;;  %v3379_v46 = vunpack.c.l.b16 %v2186_v22  ;;  %v7948_v22 = vpop.f32.mrf.mxu2 }
 0x31c   : > { %v4757_v59 = vadd.f32 %v7878_v12, %v4721_v24  ;;  %v4467_v58 = vadd.f32 %v4466_v47, %v4378_v53  ;;  %v3038_v53 = vrot.slane %v6011_v34, 5  ;;  %v2199_v24 = vrot.slane %v2197_v50, 5 }
 0x31d   : > { %v4644_v32 = vpop.f32.mrf.mxu1  ;;  %v5336_v47 = vrot.slane %v2903_v52, 9 }
 0x31e   : > { %v4789_v21 = vmax.f32 %v4757_v59, 0.0  ;;  %v4556_v27 = vadd.f32 %v7797_v37, %v4467_v58  ;;  %v2203_v37 = vrot.slane %v2201_v15, 4  ;;  %v3378_v58 = vunpack.c.l.b16 %v2176_v45 }
 0x31f   : > { %v3036_v39 = vsel %vm7004_vm14, %v5336_v47, %v3035_v55 }
 0x320   : > { %5687 = vmatmul.msk.bf16.gmra.mxu1 %vm3676_vm11, %v3670_v57  ;;  %v4819_v14 = vpack.c.bf16 %v4789_v21, %v4788_v60  ;;  %v4645_v63 = vadd.f32 %v4644_v32, %v4556_v27  ;;  %v6012_v57 = vld [vmem:[#allocation2 + $0xa4] sm:$0x1]  ;;  %v3399_v49 = vpack.c.b16 %v3379_v46, %v3378_v58  ;;  %v2204_v50 = vor.u32 %v2203_v37, %v2199_v24  ;;  %v1877_v27 = vld [vmem:[#allocation2 + $0xa8] sm:$0xf] }
 0x321   : > { %v2207_v62 = vshll.u32 %v6012_v57, 16  ;;  %v3039_v32 = vsel %vm7004_vm14, %v3037_v18, %v3038_v53  ;;  %v3650_v52 = vunpack.c.l.b16 %v3036_v39  ;;  %v2212_v2 = vshrl.u32 %v1877_v27, 16 }
 0x322   : > { %5710 = vmatmul.msk.bf16.gmra.mxu2 %vm3676_vm11, %v4819_v14  ;;  %v4722_v15 = vmul.f32 %v7869_v6, %v4645_v63  ;;  %v3851_v60 = vsel %vm3676_vm11, %v3399_v49, %v7715_v0  ;;  %v3651_v34 = vunpack.c.l.b16 %v3039_v32  ;;  %v2195_v14 = vrot.slane %v2194_v28, 4  ;;  %v6013_v63 = vld [vmem:[#allocation2 + $0xac] sm:$0xf]  ;;  %v2904_v49 = vld [vmem:[#allocation2 + $0xa8] sm:$0xe] }
 0x323   : > { %v4468_v59 = vpop.f32.mrf.mxu3  ;;  %v2205_v45 = vrot.slane %v2204_v50, 4  ;;  %v2209_v53 = vrot.slane %v2207_v62, 5  ;;  %v2215_v0 = vshll.u32 %v1877_v27, 16  ;;  %v2225_v47 = vshrl.u32 %v6013_v63, 16  ;;  %v6014_v28 = vld [vmem:[#allocation2 + $0xac] sm:$0xf] }
 0x324   : > { %v4469_v9 = vadd.f32 %v4468_v59, %v4380_v8  ;;  %v4758_v55 = vadd.f32 %v7878_v12, %v4722_v15  ;;  %v3671_v59 = vpack.c.b16 %v3651_v34, %v3650_v52  ;;  %v2200_v58 = vsel %vm6527_vm8, %v2195_v14, %v2199_v24  ;;  %v6015_v34 = vld [vmem:[#allocation2 + $0xb0] sm:$0x1] }
 0x325   : > { %v4646_v16 = vpop.f32.mrf.mxu1  ;;  %v3042_v50 = vrot.slane %v6014_v28, 5  ;;  %v2214_v15 = vrot.slane %v2212_v2, 4  ;;  %v3380_v32 = vunpack.c.l.b16 %v2200_v58  ;;  %v4385_v27 = vadd.f32 %v7831_v41, %v7592_v26 }
 0x326   : > { %v4558_v11 = vadd.f32 %v7820_v4, %v4469_v9  ;;  %v4383_v4 = vadd.f32 %v7812_v38, %v7576_v19  ;;  %v2221_v9 = vshll.u32 %v6013_v63, 16  ;;  %v7957_v19 = vpop.f32.mrf.mxu0  ;;  %v4790_v38 = vmax.f32 %v4758_v55, 0.0 }
 0x327   : > { %v3045_v14 = vrot.slane %v6015_v34, 5  ;;  %v3044_v55 = vrot.slane %v3042_v50, 4 }
 0x328   : > { %v4647_v21 = vadd.f32 %v4646_v16, %v4558_v11  ;;  %4510 = vmatmul.bf16.gmra.mxu3 %v3851_v60  ;;  %v2210_v16 = vsel %vm6527_vm8, %v2205_v45, %v2209_v53  ;;  %v2217_v11 = vrot.slane %v2215_v0, 5  ;;  %v2223_v60 = vrot.slane %v2221_v9, 5  ;;  %v7966_v45 = vpop.f32.mrf.mxu2 }
 0x329   : > { %v3381_v24 = vunpack.c.l.b16 %v2210_v16  ;;  %v1879_v16 = vld [vmem:[#allocation2 + $0xb4] sm:$0xf] }
 0x32a   : > { %v4723_v33 = vmul.f32 %v7869_v6, %v4647_v21  ;;  %v2227_v21 = vrot.slane %v2225_v47, 4 }
 0x32b   : > { %v4471_v46 = vpop.f32.mrf.mxu3 }
 0x32c   : > { %v4759_v37 = vadd.f32 %v7878_v12, %v4723_v33  ;;  %v4472_v8 = vadd.f32 %v4471_v46, %v4383_v4  ;;  %v2218_v33 = vor.u32 %v2217_v11, %v2214_v15  ;;  %v6016_v46 = vld [vmem:[#allocation2 + $0xb0] sm:$0x1] }
 0x32d   : > { %v4649_v18 = vpop.f32.mrf.mxu1  ;;  %v2231_v2 = vshll.u32 %v6016_v46, 16  ;;  %v6019_v46 = vld [vmem:[#allocation2 + $0xbc] sm:$0x1] }
 0x32e   : > { %v4791_v57 = vmax.f32 %v4759_v37, 0.0  ;;  %v4561_v62 = vadd.f32 %v7855_v40, %v4472_v8  ;;  %v5337_v40 = vrot.slane %v2904_v49, 9  ;;  %v3400_v37 = vpack.c.b16 %v3381_v24, %v3380_v32  ;;  %v7976_v58 = vpop.f32.mrf.mxu0 }
 0x32f   : > { %v2228_v8 = vor.u32 %v2227_v21, %v2223_v60  ;;  %v2236_v32 = vshrl.u32 %v1879_v16, 16  ;;  %v2239_v24 = vshll.u32 %v1879_v16, 16  ;;  %v6017_v21 = vld [vmem:[#allocation2 + $0xb8] sm:$0xf] }
 0x330   : > { %5688 = vmatmul.msk.bf16.gmra.mxu1 %vm3676_vm11, %v3671_v59  ;;  %v4820_v39 = vpack.c.bf16 %v4791_v57, %v4790_v38  ;;  %v4650_v52 = vadd.f32 %v4649_v18, %v4561_v62  ;;  %v3043_v41 = vsel %vm7004_vm14, %v5337_v40, %v3042_v50  ;;  %v3855_v47 = vsel %vm3676_vm11, %v3400_v37, %v7748_v30 }
 0x331   : > { %v3046_v18 = vsel %vm7004_vm14, %v3044_v55, %v3045_v14  ;;  %v2219_v59 = vrot.slane %v2218_v33, 4  ;;  %v3652_v38 = vunpack.c.l.b16 %v3043_v41  ;;  %v2229_v57 = vrot.slane %v2228_v8, 4 }
 0x332   : > { %5711 = vmatmul.msk.bf16.gmra.mxu2 %vm3676_vm11, %v4820_v39  ;;  %v4724_v63 = vmul.f32 %v7869_v6, %v4650_v52  ;;  %v2233_v62 = vrot.slane %v2231_v2, 5  ;;  %v3653_v30 = vunpack.c.l.b16 %v3046_v18  ;;  %v7985_v52 = vpop.f32.mrf.mxu2  ;;  %v2245_v14 = vshll.u32 %v6017_v21, 16 }
 0x333   : > { %v4473_v4 = vpop.f32.mrf.mxu3  ;;  %v2224_v15 = vsel %vm6527_vm8, %v2219_v59, %v2223_v60  ;;  %v3052_v2 = vrot.slane %v6019_v46, 5 }
 0x334   : > { %v4474_v53 = vadd.f32 %v4473_v4, %v4385_v27  ;;  %v4760_v49 = vadd.f32 %v7878_v12, %v4724_v63  ;;  %v2249_v27 = vshrl.u32 %v6017_v21, 16  ;;  %v3672_v33 = vpack.c.b16 %v3653_v30, %v3652_v38 }
 0x335   : > { %v4651_v0 = vpop.f32.mrf.mxu1  ;;  %v2238_v63 = vrot.slane %v2236_v32, 4  ;;  %v2247_v18 = vrot.slane %v2245_v14, 5 }
 0x336   : > { %v4563_v26 = vadd.f32 %v7872_v48, %v4474_v53  ;;  %v4388_v48 = vadd.f32 %v7845_v7, %v7603_v10  ;;  %v2234_v10 = vsel %vm6527_vm8, %v2229_v57, %v2233_v62  ;;  %v6018_v7 = vld [vmem:[#allocation2 + $0xb8] sm:$0xf]  ;;  %v4792_v4 = vmax.f32 %v4760_v49, 0.0  ;;  %v2905_v53 = vld [vmem:[#allocation2 + $0xb4] sm:$0xe]  ;;  %v7993_v57 = vpop.f32.mrf.mxu0 }
 0x337   : > { %v3049_v34 = vrot.slane %v6018_v7, 5  ;;  %v3383_v8 = vunpack.c.l.b16 %v2234_v10  ;;  %v5338_v41 = vrot.slane %v2905_v53, 9  ;;  %v2251_v59 = vrot.slane %v2249_v27, 4  ;;  %v6020_v62 = vld [vmem:[#allocation2 + $0xbc] sm:$0x1]  ;;  %v3481_v53 = vpop.permute.xlu0 %3480 }
 0x338   : > { %v4652_v9 = vadd.f32 %v4651_v0, %v4563_v26  ;;  %4515 = vmatmul.bf16.gmra.mxu3 %v3855_v47  ;;  %v3382_v0 = vunpack.c.l.b16 %v2224_v15  ;;  %v2241_v26 = vrot.slane %v2239_v24, 5  ;;  %v2255_v16 = vshll.u32 %v6020_v62, 16  ;;  %v6023_v62 = vld [vmem:[#allocation2 + $0xc8] sm:$0x1] }
 0x339   : > { %v3051_v47 = vrot.slane %v3049_v34, 4 }
 0x33a   : > { %v4725_v28 = vmul.f32 %v7869_v6, %v4652_v9  ;;  %v4390_v9 = vadd.f32 %v7863_v54, %v7626_v3  ;;  %v2242_v49 = vor.u32 %v2241_v26, %v2238_v63  ;;  %v3401_v30 = vpack.c.b16 %v3383_v8, %v3382_v0 }
 0x33b   : > { %v4476_v50 = vpop.f32.mrf.mxu3  ;;  %v3053_v15 = vsel %vm7004_vm14, %v3051_v47, %v3052_v2  ;;  %v2257_v7 = vrot.slane %v2255_v16, 5  ;;  %v3059_v16 = vrot.slane %v6023_v62, 5 }
 0x33c   : > { %v4761_v11 = vadd.f32 %v7878_v12, %v4725_v28  ;;  %v4477_v39 = vadd.f32 %v4476_v50, %v4388_v48  ;;  %v3050_v50 = vsel %vm7004_vm14, %v5338_v41, %v3049_v34  ;;  %v3859_v32 = vsel %vm3676_vm11, %v3401_v30, %v7788_v5 }
 0x33d   : > { %v4654_v40 = vpop.f32.mrf.mxu1  ;;  %v3654_v21 = vunpack.c.l.b16 %v3050_v50  ;;  %v3655_v27 = vunpack.c.l.b16 %v3053_v15  ;;  %v4393_v34 = vadd.f32 %v7891_v51, %v7641_v35 }
 0x33e   : > { %v4793_v55 = vmax.f32 %v4761_v11, 0.0  ;;  %v4566_v60 = vadd.f32 %v7897_v29, %v4477_v39  ;;  %v2252_v11 = vor.u32 %v2251_v59, %v2247_v18  ;;  %v8002_v39 = vpop.f32.mrf.mxu2  ;;  %v8010_v5 = vpop.f32.mrf.mxu0 }
 0x33f   : > { %v3673_v0 = vpack.c.b16 %v3655_v27, %v3654_v21  ;;  %v6024_v27 = vld [vmem:[#allocation2 + $0xc8] sm:$0x1] }
 0x340   : > { %5689 = vmatmul.msk.bf16.gmra.mxu1 %vm3676_vm11, %v3672_v33  ;;  %v4821_v37 = vpack.c.bf16 %v4793_v55, %v4792_v4  ;;  %v4655_v29 = vadd.f32 %v4654_v40, %v4566_v60  ;;  %v2243_v40 = vrot.slane %v2242_v49, 4  ;;  %v2253_v10 = vrot.slane %v2252_v11, 4  ;;  %v6021_v55 = vld [vmem:[#allocation2 + $0xc4] sm:$0xf] }
 0x341   : > { %v2273_v60 = vshrl.u32 %v6021_v55, 16  ;;  %v2269_v26 = vshll.u32 %v6021_v55, 16 }
 0x342   : > { %5712 = vmatmul.msk.bf16.gmra.mxu2 %vm3676_vm11, %v4821_v37  ;;  %v4726_v3 = vmul.f32 %v7869_v6, %v4655_v29  ;;  %v2248_v37 = vsel %vm6527_vm8, %v2243_v40, %v2247_v18  ;;  %v2258_v35 = vsel %vm6527_vm8, %v2253_v10, %v2257_v7  ;;  %v2279_v40 = vshll.u32 %v6024_v27, 16 }
 0x343   : > { %v4478_v38 = vpop.f32.mrf.mxu3  ;;  %v3384_v18 = vunpack.c.l.b16 %v2248_v37  ;;  %v3385_v49 = vunpack.c.l.b16 %v2258_v35  ;;  %v2271_v15 = vrot.slane %v2269_v26, 5  ;;  %v2275_v11 = vrot.slane %v2273_v60, 4  ;;  %v8378_v37 = vld [vmem:[#allocation14_spill] sm:$0xff] }
 0x344   : > { %v4479_v48 = vadd.f32 %v4478_v38, %v4390_v9  ;;  %v4762_v14 = vadd.f32 %v7878_v12, %v4726_v3  ;;  %v6022_v9 = vld [vmem:[#allocation2 + $0xc4] sm:$0xf]  ;;  %v2906_v38 = vld [vmem:[#allocation2 + $0xc0] sm:$0xe]  ;;  %v5786_v3 = vld [vmem:[#allocation2 + $0xcc] sm:$0xff] }
 0x345   : > { %v4656_v28 = vpop.f32.mrf.mxu1  ;;  %v3056_v29 = vrot.slane %v6022_v9, 5 }
 0x346   : > { %v4568_v54 = vadd.f32 %v7921_v42, %v4479_v48  ;;  %v1881_v42 = vld [vmem:[#allocation2 + $0xc0] sm:$0xf]  ;;  %v4794_v41 = vmax.f32 %v4762_v14, 0.0  ;;  %v3402_v14 = vpack.c.b16 %v3385_v49, %v3384_v18  ;;  %v8025_v60 = vpop.f32.mrf.mxu0 }
 0x347   : > { %v2260_v51 = vshrl.u32 %v1881_v42, 16  ;;  %v2263_v63 = vshll.u32 %v1881_v42, 16  ;;  %v2276_v42 = vor.u32 %v2275_v11, %v2271_v15  ;;  %v2907_v11 = vld [vmem:[#allocation2 + $0xcc] sm:$0xe] }
 0x348   : > { %v4657_v24 = vadd.f32 %v4656_v28, %v4568_v54  ;;  %4520 = vmatmul.bf16.gmra.mxu3 %v3859_v32  ;;  %v8019_v28 = vpop.f32.mrf.mxu2  ;;  %v5339_v32 = vrot.slane %v2906_v38, 9  ;;  %v5340_v27 = vrot.slane %v2907_v11, 9 }
 0x349   : > { %v2262_v30 = vrot.slane %v2260_v51, 4  ;;  %v2265_v50 = vrot.slane %v2263_v63, 5 }
 0x34a   : > { %v4727_v4 = vmul.f32 %v7869_v6, %v4657_v24  ;;  %v3058_v24 = vrot.slane %v3056_v29, 4 }
 0x34b   : > { %v4481_v33 = vpop.f32.mrf.mxu3 }
 0x34c   : > { %v4763_v46 = vadd.f32 %v7878_v12, %v4727_v4  ;;  %v4482_v2 = vadd.f32 %v4481_v33, %v4393_v34  ;;  %v2266_v4 = vor.u32 %v2265_v50, %v2262_v30  ;;  %v3057_v33 = vsel %vm7004_vm14, %v5339_v32, %v3056_v29 }
 0x34d   : > { %v4659_v8 = vpop.f32.mrf.mxu1  ;;  %v3656_v35 = vunpack.c.l.b16 %v3057_v33 }
 0x34e   : > { %v4795_v47 = vmax.f32 %v4763_v46, 0.0  ;;  %v4571_v59 = vadd.f32 %v7938_v1, %v4482_v2  ;;  %v4395_v1 = vadd.f32 %v7908_v13, %v7659_v25  ;;  %v3060_v46 = vsel %vm7004_vm14, %v3058_v24, %v3059_v16  ;;  %v8379_v16 = vld [vmem:[#allocation25_spill] sm:$0xff] }
 0x34f   : > { %v3863_v2 = vsel %vm3676_vm11, %v3402_v14, %v3481_v53  ;;  %v3657_v51 = vunpack.c.l.b16 %v3060_v46  ;;  %v2267_v63 = vrot.slane %v2266_v4, 4 }
 0x350   : > { %v4822_v48 = vpack.c.bf16 %v4795_v47, %v4794_v41  ;;  %5690 = vmatmul.msk.bf16.gmra.mxu1 %vm3676_vm11, %v3673_v0  ;;  %v4660_v54 = vadd.f32 %v4659_v8, %v4571_v59  ;;  %v4398_v8 = vadd.f32 %v7929_v43, %v8378_v37  ;;  %v2277_v41 = vrot.slane %v2276_v42, 4  ;;  %v8038_v59 = vpop.f32.mrf.mxu2  ;;  %v8382_v37 = vld [vmem:[#allocation16_spill] sm:$0xff] }
 0x351   : > { %v2281_v47 = vrot.slane %v2279_v40, 5  ;;  %v3674_v62 = vpack.c.b16 %v3657_v51, %v3656_v35  ;;  %v2272_v43 = vsel %vm6527_vm8, %v2267_v63, %v2271_v15  ;;  %v8381_v40 = vld [vmem:[#allocation15_spill] sm:$0xff] }
 0x352   : > { %5713 = vmatmul.msk.bf16.gmra.mxu2 %vm3676_vm11, %v4822_v48  ;;  %v4728_v25 = vmul.f32 %v7869_v6, %v4660_v54  ;;  %v3063_v48 = vrot.slane %v8379_v16, 5  ;;  %v4585_v54 = vpop.f32.mrf.mxu0  ;;  %v3386_v24 = vunpack.c.l.b16 %v2272_v43 }
 0x353   : > { %v4483_v21 = vpop.f32.mrf.mxu3  ;;  %v3627_v7 = vpop.permute.xlu0 %3626  ;;  %v2282_v50 = vsel %vm6527_vm8, %v2277_v41, %v2281_v47 }
 0x354   : > { %v4484_v10 = vadd.f32 %v4483_v21, %v4395_v1  ;;  %v3931_v55 = vsel %vm3676_vm11, %v5786_v3, %v3627_v7  ;;  %v4764_v26 = vadd.f32 %v7878_v12, %v4728_v25  ;;  %v8380_v3 = vld [vmem:[#allocation26_spill] sm:$0xff]  ;;  %v3387_v21 = vunpack.c.l.b16 %v2282_v50 }
 0x355   : > { %v4661_v34 = vpop.f32.mrf.mxu1  ;;  %4619 = vmatmul.bf16.gmra.mxu0 %v3931_v55  ;;  %v3066_v1 = vrot.slane %v8380_v3, 5  ;;  %v3065_v15 = vrot.slane %v3063_v48, 4  ;;  %v3064_v55 = vsel %vm7004_vm14, %v5340_v27, %v3063_v48  ;;  %v8384_v3 = vld [vmem:[#allocation19_spill] sm:$0xff] }
 0x356   : > { %v4573_v13 = vadd.f32 %v7957_v19, %v4484_v10  ;;  %v4796_v18 = vmax.f32 %v4764_v26, 0.0  ;;  %v4400_v10 = vadd.f32 %v7948_v22, %v8381_v40  ;;  %v3403_v42 = vpack.c.b16 %v3387_v21, %v3386_v24 }
 0x357   : > { %v3067_v25 = vsel %vm7004_vm14, %v3065_v15, %v3066_v1  ;;  %v4408_v1 = vadd.f32 %v8002_v39, %v8384_v3 }
 0x358   : > { %v4662_v0 = vadd.f32 %v4661_v34, %v4573_v13  ;;  %4525 = vmatmul.bf16.gmra.mxu3 %v3863_v2  ;;  %v8052_v14 = vpop.f32.mrf.mxu2  ;;  %v3867_v33 = vsel %vm3676_vm11, %v3403_v42, %v3483_v23  ;;  %v3658_v2 = vunpack.c.l.b16 %v3064_v55  ;;  %v8385_v23 = vld [vmem:[#allocation21_spill] sm:$0xff] }
 0x35a   : > { %v4729_v19 = vmul.f32 %v7869_v6, %v4662_v0  ;;  %v3659_v0 = vunpack.c.l.b16 %v3067_v25  ;;  %v4587_v35 = vpop.f32.mrf.mxu0 }
 0x35b   : > { %v4486_v9 = vpop.f32.mrf.mxu3 }
 0x35c   : > { %v4765_v29 = vadd.f32 %v7878_v12, %v4729_v19  ;;  %v4487_v53 = vadd.f32 %v4486_v9, %v4398_v8  ;;  %v4403_v8 = vadd.f32 %v7966_v45, %v8382_v37  ;;  %v3675_v41 = vpack.c.b16 %v3659_v0, %v3658_v2  ;;  %v8383_v45 = vld [vmem:[#allocation17_spill] sm:$0xff]  ;;  %v8386_v2 = vld [vmem:[#allocation23_spill] sm:$0xff] }
 0x35d   : > { %v4664_v38 = vpop.f32.mrf.mxu1 }
 0x35e   : > { %v4797_v49 = vmax.f32 %v4765_v29, 0.0  ;;  %v4576_v30 = vadd.f32 %v7976_v58, %v4487_v53 }
 0x360   : > { %v4823_v32 = vpack.c.bf16 %v4797_v49, %v4796_v18  ;;  %5691 = vmatmul.msk.bf16.gmra.mxu1 %vm3676_vm11, %v3674_v62  ;;  %v4665_v7 = vadd.f32 %v4664_v38, %v4576_v30  ;;  %v8067_v53 = vpop.f32.mrf.mxu2  ;;  %v4405_v62 = vadd.f32 %v7985_v52, %v8383_v45 }
 0x362   : > { %5714 = vmatmul.msk.bf16.gmra.mxu2 %vm3676_vm11, %v4823_v32  ;;  %v4730_v13 = vmul.f32 %v7869_v6, %v4665_v7  ;;  %v4590_v48 = vpop.f32.mrf.mxu0 }
 0x363   : > { %v4488_v58 = vpop.f32.mrf.mxu3 }
 0x364   : > { %v4489_v34 = vadd.f32 %v4488_v58, %v4400_v10  ;;  %v4766_v51 = vadd.f32 %v7878_v12, %v4730_v13 }
 0x365   : > { %v4666_v4 = vpop.f32.mrf.mxu1 }
 0x366   : > { %v4578_v22 = vadd.f32 %v7993_v57, %v4489_v34  ;;  %v4798_v47 = vmax.f32 %v4766_v51, 0.0  ;;  %v4410_v34 = vadd.f32 %v8019_v28, %v8385_v23 }
 0x368   : > { %v4667_v46 = vadd.f32 %v4666_v4, %v4578_v22  ;;  %4530 = vmatmul.bf16.gmra.mxu3 %v3867_v33  ;;  %v8075_v11 = vpop.f32.mrf.mxu2 }
 0x369   : > { %v4420_v23 = vadd.f32 %v8075_v11, %v7817_v36 }
 0x36a   : > { %v4731_v63 = vmul.f32 %v7869_v6, %v4667_v46  ;;  %v4592_v40 = vpop.f32.mrf.mxu0 }
 0x36b   : > { %v4491_v61 = vpop.f32.mrf.mxu3 }
 0x36c   : > { %v4767_v26 = vadd.f32 %v7878_v12, %v4731_v63  ;;  %v4492_v19 = vadd.f32 %v4491_v61, %v4403_v8 }
 0x36d   : > { %v4669_v57 = vpop.f32.mrf.mxu1 }
 0x36e   : > { %v4799_v9 = vmax.f32 %v4767_v26, 0.0  ;;  %v4581_v29 = vadd.f32 %v8010_v5, %v4492_v19 }
 0x370   : > { %v4824_v38 = vpack.c.bf16 %v4799_v9, %v4798_v47  ;;  %5692 = vmatmul.msk.bf16.gmra.mxu1 %vm3676_vm11, %v3675_v41  ;;  %v4670_v43 = vadd.f32 %v4669_v57, %v4581_v29  ;;  %v8085_v39 = vpop.f32.mrf.mxu2  ;;  %v8387_v57 = vld [vmem:[#allocation27_spill] sm:$0xff]  ;;  %v8101_v29 = vld [vmem:[%s8341_s8] ss:$0 sm:$0xff] }
 0x371   : > { %v4423_v11 = vadd.f32 %v8085_v39, %v7833_v31 }
 0x372   : > { %5715 = vmatmul.msk.bf16.gmra.mxu2 %vm3676_vm11, %v4824_v38  ;;  %v4732_v30 = vmul.f32 %v7869_v6, %v4670_v43  ;;  %v4595_v33 = vpop.f32.mrf.mxu0 }
 0x373   : > { %v4493_v16 = vpop.f32.mrf.mxu3 }
 0x374   : > { %v4494_v18 = vadd.f32 %v4493_v16, %v4405_v62  ;;  %v4768_v32 = vadd.f32 %v7878_v12, %v4732_v30  ;;  %v8107_v62 = vld [vmem:[%s8342_s9] ss:$0 sm:$0xff] }
 0x375   : > { %v4671_v49 = vpop.f32.mrf.mxu1 }
 0x376   : > { %v4583_v50 = vadd.f32 %v8025_v60, %v4494_v18  ;;  %v4800_v10 = vmax.f32 %v4768_v32, 0.0 }
 0x378   : > { %v4672_v5 = vadd.f32 %v4671_v49, %v4583_v50  ;;  %v8093_v63 = vpop.f32.mrf.mxu2  ;;  %v4418_v50 = vadd.f32 %v8067_v53, %v7799_v20 }
 0x37a   : > { %v4733_v52 = vmul.f32 %v7869_v6, %v4672_v5  ;;  %v4597_v47 = vpop.f32.mrf.mxu0 }
 0x37b   : > { %v4496_v24 = vpop.f32.mrf.mxu3 }
 0x37c   : > { %v4769_v21 = vadd.f32 %v7878_v12, %v4733_v52  ;;  %v4497_v27 = vadd.f32 %v4496_v24, %v4408_v1  ;;  %v6025_v1 = vld [vmem:[%s6385_s11] sm:$0xff] }
 0x37d   : > { %v4674_v15 = vpop.f32.mrf.mxu1 }
 0x37e   : > { %v4801_v7 = vmax.f32 %v4769_v21, 0.0  ;;  %v4586_v58 = vadd.f32 %v4585_v54, %v4497_v27  ;;  %v4413_v54 = vadd.f32 %v8038_v59, %v8386_v2  ;;  %v4415_v59 = vadd.f32 %v8052_v14, %v8387_v57 }
 0x380   : > { %v4825_v60 = vpack.c.bf16 %v4801_v7, %v4800_v10  ;;  %v4675_v4 = vadd.f32 %v4674_v15, %v4586_v58 }
 0x382   : > { %5716 = vmatmul.msk.bf16.gmra.mxu2 %vm3676_vm11, %v4825_v60  ;;  %v4734_v13 = vmul.f32 %v7869_v6, %v4675_v4  ;;  %v4600_v24 = vpop.f32.mrf.mxu0  ;;  %v6026_v4 = vld [vmem:[%s6385_s11 + $0x8] sm:$0xff] }
 0x383   : > { %v4498_v42 = vpop.f32.mrf.mxu3 }
 0x384   : > { %v4499_v55 = vadd.f32 %v4498_v42, %v4410_v34  ;;  %v4770_v0 = vadd.f32 %v7878_v12, %v4734_v13 }
 0x385   : > { %v4676_v25 = vpop.f32.mrf.mxu1 }
 0x386   : > { %v4588_v22 = vadd.f32 %v4587_v35, %v4499_v55  ;;  %v4802_v26 = vmax.f32 %v4770_v0, 0.0 }
 0x388   : > { %v4677_v46 = vadd.f32 %v4676_v25, %v4588_v22 }
 0x38a   : > { %v4735_v28 = vmul.f32 %v7869_v6, %v4677_v46 }
 0x38b   : > { %v4501_v37 = vpop.f32.mrf.mxu3 }
 0x38c   : > { %v4771_v8 = vadd.f32 %v7878_v12, %v4735_v28  ;;  %v4502_v51 = vadd.f32 %v4501_v37, %v4413_v54 }
 0x38d   : > { %v4679_v61 = vpop.f32.mrf.mxu1 }
 0x38e   : > { %v4803_v19 = vmax.f32 %v4771_v8, 0.0  ;;  %v4591_v35 = vadd.f32 %v4590_v48, %v4502_v51  ;;  %v6027_v8 = vld [vmem:[%s6385_s11 + $0x10] sm:$0xff] }
 0x390   : > { %v4826_v41 = vpack.c.bf16 %v4803_v19, %v4802_v26  ;;  %v4680_v9 = vadd.f32 %v4679_v61, %v4591_v35 }
 0x392   : > { %5717 = vmatmul.msk.bf16.gmra.mxu2 %vm3676_vm11, %v4826_v41  ;;  %v4736_v16 = vmul.f32 %v7869_v6, %v4680_v9 }
 0x393   : > { %v4503_v38 = vpop.f32.mrf.mxu3 }
 0x394   : > { %v4504_v45 = vadd.f32 %v4503_v38, %v4415_v59  ;;  %v4772_v5 = vadd.f32 %v7878_v12, %v4736_v16 }
 0x395   : > { %v4681_v43 = vpop.f32.mrf.mxu1  ;;  %v4923_v14 = vpop.f32.mrf.mxu2 }
 0x396   : > { %v4593_v48 = vadd.f32 %v4592_v40, %v4504_v45  ;;  %v5007_v18 = vmul.f32 %v8101_v29, %v4923_v14  ;;  %v4804_v20 = vmax.f32 %v4772_v5, 0.0  ;;  %v4425_v45 = vadd.f32 %v8093_v63, %v7843_v17  ;;  %v6028_v14 = vld [vmem:[%s6385_s11 + $0x18] sm:$0xff] }
 0x398   : > { %v4682_v49 = vadd.f32 %v4681_v43, %v4593_v48  ;;  %v5043_v30 = vadd.f32 %v8107_v62, %v5007_v18 }
 0x39a   : > { %v4737_v3 = vmul.f32 %v7869_v6, %v4682_v49  ;;  %v5075_v32 = vadd.f32 %v6025_v1, %v5043_v30 }
 0x39b   : > { %v4506_v52 = vpop.f32.mrf.mxu3 }
 0x39c   : > { %v4773_v21 = vadd.f32 %v7878_v12, %v4737_v3  ;;  %5107 = vst [vmem:[%s8120_s18] sm:$0xff] %v5075_v32  ;;  %v4507_v27 = vadd.f32 %v4506_v52, %v4418_v50 }
 0x39d   : > { %v4684_v15 = vpop.f32.mrf.mxu1  ;;  %v4925_v40 = vpop.f32.mrf.mxu2 }
 0x39e   : > { %v4805_v53 = vmax.f32 %v4773_v21, 0.0  ;;  %v4596_v10 = vadd.f32 %v4595_v33, %v4507_v27  ;;  %v5008_v7 = vmul.f32 %v8101_v29, %v4925_v40  ;;  %v4602_v33 = vpop.f32.mrf.mxu0  ;;  %v8388_v40 = vld [vmem:[#allocation18_spill] sm:$0xff] }
 0x3a0   : > { %v4827_v58 = vpack.c.bf16 %v4805_v53, %v4804_v20  ;;  %v5044_v60 = vadd.f32 %v8107_v62, %v5008_v7  ;;  %v4685_v34 = vadd.f32 %v4684_v15, %v4596_v10 }
 0x3a2   : > { %v5076_v42 = vadd.f32 %v6026_v4, %v5044_v60  ;;  %5718 = vmatmul.msk.bf16.gmra.mxu2 %vm3676_vm11, %v4827_v58  ;;  %v4738_v46 = vmul.f32 %v7869_v6, %v4685_v34 }
 0x3a3   : > { %v4508_v55 = vpop.f32.mrf.mxu3 }
 0x3a4   : > { %5108 = vst [vmem:[%s8120_s18 + $0x8] sm:$0xff] %v5076_v42  ;;  %v4509_v25 = vadd.f32 %v4508_v55, %v4420_v23  ;;  %v4774_v28 = vadd.f32 %v7878_v12, %v4738_v46  ;;  %v6030_v42 = vld [vmem:[%s6385_s11 + $0x28] sm:$0xff] }
 0x3a5   : > { %v4686_v13 = vpop.f32.mrf.mxu1  ;;  %v4928_v22 = vpop.f32.mrf.mxu2 }
 0x3a6   : > { %v4598_v2 = vadd.f32 %v4597_v47, %v4509_v25  ;;  %v5009_v54 = vmul.f32 %v8101_v29, %v4928_v22  ;;  %v4806_v57 = vmax.f32 %v4774_v28, 0.0  ;;  %v4605_v39 = vpop.f32.mrf.mxu0 }
 0x3a8   : > { %v4687_v0 = vadd.f32 %v4686_v13, %v4598_v2  ;;  %v5045_v36 = vadd.f32 %v8107_v62, %v5009_v54  ;;  %v8389_v13 = vld [vmem:[#allocation20_spill] sm:$0xff]  ;;  %v8162_v2 = vld [vmem:[#allocation8] ss:$0 sm:$0xff] }
 0x3aa   : > { %v4739_v37 = vmul.f32 %v7869_v6, %v4687_v0  ;;  %v5077_v51 = vadd.f32 %v6027_v8, %v5045_v36 }
 0x3ab   : > { %v4511_v61 = vpop.f32.mrf.mxu3 }
 0x3ac   : > { %v4775_v26 = vadd.f32 %v7878_v12, %v4739_v37  ;;  %5109 = vst [vmem:[%s8120_s18 + $0x10] sm:$0xff] %v5077_v51  ;;  %v4512_v19 = vadd.f32 %v4511_v61, %v4423_v11  ;;  %v8170_v37 = vld [vmem:[%s8339_s6] ss:$0 sm:$0xff]  ;;  %v6033_v61 = vld [vmem:[%s6385_s11 + $0x30] sm:$0xff] }
 0x3ad   : > { %v4689_v35 = vpop.f32.mrf.mxu1  ;;  %v4930_v41 = vpop.f32.mrf.mxu2 }
 0x3ae   : > { %v4807_v59 = vmax.f32 %v4775_v26, 0.0  ;;  %v4601_v47 = vadd.f32 %v4600_v24, %v4512_v19  ;;  %v5010_v31 = vmul.f32 %v8101_v29, %v4930_v41  ;;  %v4607_v63 = vpop.f32.mrf.mxu0  ;;  %v6029_v24 = vld [vmem:[%s6385_s11 + $0x20] sm:$0xff] }
 0x3af   : > { %v8390_v41 = vld [vmem:[#allocation22_spill] sm:$0xff] }
 0x3b0   : > { %v4828_v9 = vpack.c.bf16 %v4807_v59, %v4806_v57  ;;  %v5046_v38 = vadd.f32 %v8107_v62, %v5010_v31  ;;  %v4690_v43 = vadd.f32 %v4689_v35, %v4601_v47 }
 0x3b2   : > { %v5078_v16 = vadd.f32 %v6028_v14, %v5046_v38  ;;  %5719 = vmatmul.msk.bf16.gmra.mxu2 %vm3676_vm11, %v4828_v9  ;;  %v4740_v50 = vmul.f32 %v7869_v6, %v4690_v43 }
 0x3b3   : > { %v4513_v48 = vpop.f32.mrf.mxu3 }
 0x3b4   : > { %5110 = vst [vmem:[%s8120_s18 + $0x18] sm:$0xff] %v5078_v16  ;;  %v4514_v18 = vadd.f32 %v4513_v48, %v4425_v45  ;;  %v4776_v32 = vadd.f32 %v7878_v12, %v4740_v50  ;;  %v6034_v48 = vld [vmem:[%s6385_s11 + $0x38] sm:$0xff] }
 0x3b5   : > { %v4691_v49 = vpop.f32.mrf.mxu1  ;;  %v4933_v30 = vpop.f32.mrf.mxu2 }
 0x3b6   : > { %v4603_v5 = vadd.f32 %v4602_v33, %v4514_v18  ;;  %v5011_v3 = vmul.f32 %v8101_v29, %v4933_v30  ;;  %v4808_v7 = vmax.f32 %v4776_v32, 0.0  ;;  %v4610_v25 = vpop.f32.mrf.mxu0  ;;  %v8391_v30 = vld [vmem:[#allocation24_spill] sm:$0xff] }
 0x3b8   : > { %v4692_v1 = vadd.f32 %v4691_v49, %v4603_v5  ;;  %v5047_v17 = vadd.f32 %v8107_v62, %v5011_v3 }
 0x3ba   : > { %v4741_v52 = vmul.f32 %v7869_v6, %v4692_v1  ;;  %v5079_v21 = vadd.f32 %v6029_v24, %v5047_v17 }
 0x3bb   : > { %v4516_v27 = vpop.f32.mrf.mxu3 }
 0x3bc   : > { %v4777_v15 = vadd.f32 %v7878_v12, %v4741_v52  ;;  %5111 = vst [vmem:[%s8120_s18 + $0x20] sm:$0xff] %v5079_v21  ;;  %v4517_v20 = vadd.f32 %v4516_v27, %v8388_v40 }
 0x3bd   : > { %v4694_v53 = vpop.f32.mrf.mxu1  ;;  %v4935_v10 = vpop.f32.mrf.mxu2 }
 0x3be   : > { %v4809_v58 = vmax.f32 %v4777_v15, 0.0  ;;  %v4606_v60 = vadd.f32 %v4605_v39, %v4517_v20  ;;  %v5012_v23 = vmul.f32 %v8101_v29, %v4935_v10  ;;  %v4612_v45 = vpop.f32.mrf.mxu0  ;;  %v6035_v15 = vld [vmem:[%s6385_s11 + $0x40] sm:$0xff] }
 0x3c0   : > { %v4829_v34 = vpack.c.bf16 %v4809_v58, %v4808_v7  ;;  %v5048_v6 = vadd.f32 %v8107_v62, %v5012_v23  ;;  %v4695_v4 = vadd.f32 %v4694_v53, %v4606_v60 }
 0x3c2   : > { %v5080_v55 = vadd.f32 %v6030_v42, %v5048_v6  ;;  %5720 = vmatmul.msk.bf16.gmra.mxu2 %vm3676_vm11, %v4829_v34  ;;  %v4742_v54 = vmul.f32 %v8162_v2, %v4695_v4 }
 0x3c3   : > { %v4518_v12 = vpop.f32.mrf.mxu3 }
 0x3c4   : > { %5112 = vst [vmem:[%s8120_s18 + $0x28] sm:$0xff] %v5080_v55  ;;  %v4519_v22 = vadd.f32 %v4518_v12, %v8389_v13  ;;  %v4778_v8 = vadd.f32 %v8170_v37, %v4742_v54  ;;  %v6036_v12 = vld [vmem:[%s6385_s11 + $0x48] sm:$0xff] }
 0x3c5   : > { %v4696_v33 = vpop.f32.mrf.mxu1  ;;  %v4938_v46 = vpop.f32.mrf.mxu2 }
 0x3c6   : > { %v4608_v0 = vadd.f32 %v4607_v63, %v4519_v22  ;;  %v5013_v36 = vmul.f32 %v8101_v29, %v4938_v46  ;;  %v4810_v31 = vmax.f32 %v4778_v8, 0.0  ;;  %v4615_v24 = vpop.f32.mrf.mxu0 }
 0x3c8   : > { %v4697_v11 = vadd.f32 %v4696_v33, %v4608_v0  ;;  %v5049_v28 = vadd.f32 %v8107_v62, %v5013_v36 }
 0x3ca   : > { %v4743_v51 = vmul.f32 %v8162_v2, %v4697_v11  ;;  %v5081_v26 = vadd.f32 %v6033_v61, %v5049_v28  ;;  %v6037_v61 = vld [vmem:[%s6385_s11 + $0x50] sm:$0xff] }
 0x3cb   : > { %v4521_v19 = vpop.f32.mrf.mxu3 }
 0x3cc   : > { %v4779_v35 = vadd.f32 %v8170_v37, %v4743_v51  ;;  %5113 = vst [vmem:[%s8120_s18 + $0x30] sm:$0xff] %v5081_v26  ;;  %v4522_v57 = vadd.f32 %v4521_v19, %v8390_v41  ;;  %v8392_v41 = vld [vmem:[#allocation28_spill] sm:$0xff] }
 0x3cd   : > { %v4699_v59 = vpop.f32.mrf.mxu1  ;;  %v4940_v47 = vpop.f32.mrf.mxu2 }
 0x3ce   : > { %v4811_v39 = vmax.f32 %v4779_v35, 0.0  ;;  %v4611_v9 = vadd.f32 %v4610_v25, %v4522_v57  ;;  %v5014_v38 = vmul.f32 %v8101_v29, %v4940_v47  ;;  %v4617_v13 = vpop.f32.mrf.mxu0 }
 0x3d0   : > { %v4830_v43 = vpack.c.bf16 %v4811_v39, %v4810_v31  ;;  %v5050_v14 = vadd.f32 %v8107_v62, %v5014_v38  ;;  %v4700_v16 = vadd.f32 %v4699_v59, %v4611_v9 }
 0x3d2   : > { %v5082_v18 = vadd.f32 %v6034_v48, %v5050_v14  ;;  %5721 = vmatmul.msk.bf16.gmra.mxu2 %vm3676_vm11, %v4830_v43  ;;  %v4744_v1 = vmul.f32 %v8162_v2, %v4700_v16  ;;  %v6038_v16 = vld [vmem:[%s6385_s11 + $0x58] sm:$0xff] }
 0x3d3   : > { %v4523_v49 = vpop.f32.mrf.mxu3 }
 0x3d4   : > { %5114 = vst [vmem:[%s8120_s18 + $0x38] sm:$0xff] %v5082_v18  ;;  %v4524_v50 = vadd.f32 %v4523_v49, %v8391_v30  ;;  %v4780_v21 = vadd.f32 %v8170_v37, %v4744_v1  ;;  %v8393_v49 = vld [vmem:[#allocation29_spill] sm:$0xff] }
 0x3d5   : > { %v4701_v5 = vpop.f32.mrf.mxu1  ;;  %v4943_v3 = vpop.f32.mrf.mxu2 }
 0x3d6   : > { %v4613_v17 = vadd.f32 %v4612_v45, %v4524_v50  ;;  %v5015_v63 = vmul.f32 %v8101_v29, %v4943_v3  ;;  %v4812_v60 = vmax.f32 %v4780_v21, 0.0  ;;  %v4620_v19 = vpop.f32.mrf.mxu0 }
 0x3d8   : > { %v4702_v32 = vadd.f32 %v4701_v5, %v4613_v17  ;;  %v5051_v52 = vadd.f32 %v8107_v62, %v5015_v63 }
 0x3da   : > { %v4745_v27 = vmul.f32 %v8162_v2, %v4702_v32  ;;  %v5083_v40 = vadd.f32 %v6035_v15, %v5051_v52 }
 0x3db   : > { %v4526_v20 = vpop.f32.mrf.mxu3 }
 0x3dc   : > { %v4781_v53 = vadd.f32 %v8170_v37, %v4745_v27  ;;  %5115 = vst [vmem:[%s8120_s18 + $0x40] sm:$0xff] %v5083_v40  ;;  %v4527_v10 = vadd.f32 %v4526_v20, %v7795_v44  ;;  %v6039_v27 = vld [vmem:[%s6385_s11 + $0x60] sm:$0xff] }
 0x3dd   : > { %v4704_v7 = vpop.f32.mrf.mxu1  ;;  %v4945_v58 = vpop.f32.mrf.mxu2 }
 0x3de   : > { %v4813_v23 = vmax.f32 %v4781_v53, 0.0  ;;  %v4616_v34 = vadd.f32 %v4615_v24, %v4527_v10  ;;  %v5016_v6 = vmul.f32 %v8101_v29, %v4945_v58  ;;  %v4622_v50 = vpop.f32.mrf.mxu0 }
 0x3e0   : > { %v4831_v4 = vpack.c.bf16 %v4813_v23, %v4812_v60  ;;  %v5052_v42 = vadd.f32 %v8107_v62, %v5016_v6  ;;  %v4705_v55 = vadd.f32 %v4704_v7, %v4616_v34  ;;  %v6040_v23 = vld [vmem:[%s6385_s11 + $0x68] sm:$0xff] }
 0x3e2   : > { %v5084_v25 = vadd.f32 %v6036_v12, %v5052_v42  ;;  %5722 = vmatmul.msk.bf16.gmra.mxu2 %vm3676_vm11, %v4831_v4  ;;  %v4746_v54 = vmul.f32 %v8162_v2, %v4705_v55  ;;  %v6041_v4 = vld [vmem:[%s6385_s11 + $0x70] sm:$0xff] }
 0x3e3   : > { %v4528_v22 = vpop.f32.mrf.mxu3 }
 0x3e4   : > { %5116 = vst [vmem:[%s8120_s18 + $0x48] sm:$0xff] %v5084_v25  ;;  %v4529_v44 = vadd.f32 %v4528_v22, %v7815_v56  ;;  %v4782_v8 = vadd.f32 %v8170_v37, %v4746_v54  ;;  %v6043_v54 = vld [vmem:[%s6385_s11 + $0x80] sm:$0xff] }
 0x3e5   : > { %v4706_v33 = vpop.f32.mrf.mxu1  ;;  %v4948_v46 = vpop.f32.mrf.mxu2 }
 0x3e6   : > { %v4618_v0 = vadd.f32 %v4617_v13, %v4529_v44  ;;  %v5017_v36 = vmul.f32 %v8101_v29, %v4948_v46  ;;  %v4814_v31 = vmax.f32 %v4782_v8, 0.0  ;;  %v6042_v13 = vld [vmem:[%s6385_s11 + $0x78] sm:$0xff]  ;;  %v6044_v8 = vld [vmem:[%s6385_s11 + $0x88] sm:$0xff] }
 0x3e8   : > { %v4707_v11 = vadd.f32 %v4706_v33, %v4618_v0  ;;  %v5053_v28 = vadd.f32 %v8107_v62, %v5017_v36 }
 0x3ea   : > { %v4747_v51 = vmul.f32 %v8162_v2, %v4707_v11  ;;  %v5085_v26 = vadd.f32 %v6037_v61, %v5053_v28 }
 0x3eb   : > { %v4531_v35 = vpop.f32.mrf.mxu3 }
 0x3ec   : > { %v4783_v56 = vadd.f32 %v8170_v37, %v4747_v51  ;;  %5117 = vst [vmem:[%s8120_s18 + $0x50] sm:$0xff] %v5085_v26  ;;  %v4532_v57 = vadd.f32 %v4531_v35, %v8392_v41  ;;  %v6045_v35 = vld [vmem:[%s6385_s11 + $0x90] sm:$0xff] }
 0x3ed   : > { %v4709_v59 = vpop.f32.mrf.mxu1  ;;  %v4950_v47 = vpop.f32.mrf.mxu2 }
 0x3ee   : > { %v4815_v39 = vmax.f32 %v4783_v56, 0.0  ;;  %v4621_v9 = vadd.f32 %v4620_v19, %v4532_v57  ;;  %v5018_v38 = vmul.f32 %v8101_v29, %v4950_v47  ;;  %v6046_v47 = vld [vmem:[%s6385_s11 + $0x98] sm:$0xff] }
 0x3f0   : > { %v4832_v45 = vpack.c.bf16 %v4815_v39, %v4814_v31  ;;  %v5054_v43 = vadd.f32 %v8107_v62, %v5018_v38  ;;  %v4710_v14 = vadd.f32 %v4709_v59, %v4621_v9 }
 0x3f2   : > { %v5086_v48 = vadd.f32 %v6038_v16, %v5054_v43  ;;  %5723 = vmatmul.msk.bf16.gmra.mxu2 %vm3676_vm11, %v4832_v45  ;;  %v4748_v3 = vmul.f32 %v8162_v2, %v4710_v14  ;;  %v6047_v45 = vld [vmem:[%s6385_s11 + $0xa0] sm:$0xff] }
 0x3f3   : > { %v4533_v18 = vpop.f32.mrf.mxu3 }
 0x3f4   : > { %5118 = vst [vmem:[%s8120_s18 + $0x58] sm:$0xff] %v5086_v48  ;;  %v4534_v30 = vadd.f32 %v4533_v18, %v8393_v49  ;;  %v4784_v24 = vadd.f32 %v8170_v37, %v4748_v3  ;;  %v6048_v18 = vld [vmem:[%s6385_s11 + $0xa8] sm:$0xff]  ;;  %v6049_v3 = vld [vmem:[%s6385_s11 + $0xb0] sm:$0xff] }
 0x3f5   : > { %v4953_v5 = vpop.f32.mrf.mxu2  ;;  %v4711_v63 = vpop.f32.mrf.mxu1 }
 0x3f6   : > { %v4623_v1 = vadd.f32 %v4622_v50, %v4534_v30  ;;  %v5019_v17 = vmul.f32 %v8101_v29, %v4953_v5  ;;  %v4816_v53 = vmax.f32 %v4784_v24, 0.0 }
 0x3f8   : > { %v4712_v32 = vadd.f32 %v4711_v63, %v4623_v1  ;;  %v5055_v52 = vadd.f32 %v8107_v62, %v5019_v17 }
 0x3fa   : > { %v4749_v21 = vmul.f32 %v8162_v2, %v4712_v32  ;;  %v5087_v15 = vadd.f32 %v6039_v27, %v5055_v52  ;;  %v6050_v52 = vld [vmem:[%s6385_s11 + $0xb8] sm:$0xff] }
 0x3fc   : > { %v4785_v40 = vadd.f32 %v8170_v37, %v4749_v21  ;;  %5119 = vst [vmem:[%s8120_s18 + $0x60] sm:$0xff] %v5087_v15 }
 0x3fd   : > { %v4955_v20 = vpop.f32.mrf.mxu2 }
 0x3fe   : > { %v4817_v10 = vmax.f32 %v4785_v40, 0.0  ;;  %v5020_v7 = vmul.f32 %v8101_v29, %v4955_v20  ;;  %v6051_v40 = vld [vmem:[%s6385_s11 + $0xc0] sm:$0xff] }
 0x400   : > { %v4833_v58 = vpack.c.bf16 %v4817_v10, %v4816_v53  ;;  %v5056_v60 = vadd.f32 %v8107_v62, %v5020_v7 }
 0x402   : > { %v5088_v34 = vadd.f32 %v6040_v23, %v5056_v60  ;;  %5724 = vmatmul.msk.bf16.gmra.mxu2 %vm3676_vm11, %v4833_v58  ;;  %v6052_v58 = vld [vmem:[%s6385_s11 + $0xc8] sm:$0xff] }
 0x404   : > { %5120 = vst [vmem:[%s8120_s18 + $0x68] sm:$0xff] %v5088_v34 }
 0x405   : > { %v4958_v2 = vpop.f32.mrf.mxu2 }
 0x406   : > { %v5021_v37 = vmul.f32 %v8101_v29, %v4958_v2 }
 0x408   : > { %v5057_v6 = vadd.f32 %v8107_v62, %v5021_v37  ;;  %v6053_v37 = vld [vmem:[%s6385_s11 + $0xd0] sm:$0xff] }
 0x40a   : > { %v5089_v42 = vadd.f32 %v6041_v4, %v5057_v6 }
 0x40c   : > { %5121 = vst [vmem:[%s8120_s18 + $0x70] sm:$0xff] %v5089_v42 }
 0x40d   : > { %v4960_v55 = vpop.f32.mrf.mxu2 }
 0x40e   : > { %v5022_v12 = vmul.f32 %v8101_v29, %v4960_v55 }
 0x410   : > { %v5058_v25 = vadd.f32 %v8107_v62, %v5022_v12  ;;  %v6054_v12 = vld [vmem:[%s6385_s11 + $0xd8] sm:$0xff] }
 0x412   : > { %v5090_v22 = vadd.f32 %v6042_v13, %v5058_v25 }
 0x414   : > { %5122 = vst [vmem:[%s8120_s18 + $0x78] sm:$0xff] %v5090_v22 }
 0x415   : > { %v4963_v44 = vpop.f32.mrf.mxu2 }
 0x416   : > { %v5023_v33 = vmul.f32 %v8101_v29, %v4963_v44 }
 0x418   : > { %v5059_v46 = vadd.f32 %v8107_v62, %v5023_v33  ;;  %v6055_v33 = vld [vmem:[%s6385_s11 + $0xe0] sm:$0xff] }
 0x41a   : > { %v5091_v0 = vadd.f32 %v6043_v54, %v5059_v46 }
 0x41c   : > { %5123 = vst [vmem:[%s8120_s18 + $0x80] sm:$0xff] %v5091_v0 }
 0x41d   : > { %v4965_v36 = vpop.f32.mrf.mxu2 }
 0x41e   : > { %v5024_v11 = vmul.f32 %v8101_v29, %v4965_v36 }
 0x420   : > { %v5060_v28 = vadd.f32 %v8107_v62, %v5024_v11  ;;  %v6056_v11 = vld [vmem:[%s6385_s11 + $0xe8] sm:$0xff] }
 0x422   : > { %v5092_v51 = vadd.f32 %v6044_v8, %v5060_v28 }
 0x424   : > { %5124 = vst [vmem:[%s8120_s18 + $0x88] sm:$0xff] %v5092_v51 }
 0x425   : > { %v4968_v61 = vpop.f32.mrf.mxu2 }
 0x426   : > { %v5025_v26 = vmul.f32 %v8101_v29, %v4968_v61 }
 0x428   : > { %v5061_v19 = vadd.f32 %v8107_v62, %v5025_v26  ;;  %v6057_v26 = vld [vmem:[%s6385_s11 + $0xf0] sm:$0xff] }
 0x42a   : > { %v5093_v56 = vadd.f32 %v6045_v35, %v5061_v19 }
 0x42c   : > { %5125 = vst [vmem:[%s8120_s18 + $0x90] sm:$0xff] %v5093_v56 }
 0x42d   : > { %v4970_v41 = vpop.f32.mrf.mxu2 }
 0x42e   : > { %v5026_v57 = vmul.f32 %v8101_v29, %v4970_v41 }
 0x430   : > { %v5062_v59 = vadd.f32 %v8107_v62, %v5026_v57  ;;  %v6058_v57 = vld [vmem:[%s6385_s11 + $0xf8] sm:$0xff] }
 0x432   : > { %v5094_v31 = vadd.f32 %v6046_v47, %v5062_v59 }
 0x434   : > { %5126 = vst [vmem:[%s8120_s18 + $0x98] sm:$0xff] %v5094_v31 }
 0x435   : > { %v4973_v39 = vpop.f32.mrf.mxu2 }
 0x436   : > { %v5027_v9 = vmul.f32 %v8101_v29, %v4973_v39 }
 0x438   : > { %v5063_v38 = vadd.f32 %v8107_v62, %v5027_v9 }
 0x43a   : > { %v5095_v43 = vadd.f32 %v6047_v45, %v5063_v38 }
 0x43c   : > { %5127 = vst [vmem:[%s8120_s18 + $0xa0] sm:$0xff] %v5095_v43 }
 0x43d   : > { %v4975_v14 = vpop.f32.mrf.mxu2 }
 0x43e   : > { %v5028_v16 = vmul.f32 %v8101_v29, %v4975_v14 }
 0x440   : > { %v5064_v48 = vadd.f32 %v8107_v62, %v5028_v16 }
 0x442   : > { %v5096_v49 = vadd.f32 %v6048_v18, %v5064_v48 }
 0x444   : > { %5128 = vst [vmem:[%s8120_s18 + $0xa8] sm:$0xff] %v5096_v49 }
 0x445   : > { %v4978_v30 = vpop.f32.mrf.mxu2 }
 0x446   : > { %v5029_v50 = vmul.f32 %v8101_v29, %v4978_v30 }
 0x448   : > { %v5065_v5 = vadd.f32 %v8107_v62, %v5029_v50 }
 0x44a   : > { %v5097_v1 = vadd.f32 %v6049_v3, %v5065_v5 }
 0x44c   : > { %5129 = vst [vmem:[%s8120_s18 + $0xb0] sm:$0xff] %v5097_v1 }
 0x44d   : > { %v4980_v17 = vpop.f32.mrf.mxu2 }
 0x44e   : > { %v5030_v63 = vmul.f32 %v8101_v29, %v4980_v17 }
 0x450   : > { %v5066_v32 = vadd.f32 %v8107_v62, %v5030_v63 }
 0x452   : > { %v5098_v24 = vadd.f32 %v6050_v52, %v5066_v32 }
 0x454   : > { %5130 = vst [vmem:[%s8120_s18 + $0xb8] sm:$0xff] %v5098_v24 }
 0x455   : > { %v4983_v21 = vpop.f32.mrf.mxu2 }
 0x456   : > { %v5031_v27 = vmul.f32 %v8101_v29, %v4983_v21 }
 0x458   : > { %v5067_v15 = vadd.f32 %v8107_v62, %v5031_v27 }
 0x45a   : > { %v5099_v20 = vadd.f32 %v6051_v40, %v5067_v15 }
 0x45c   : > { %5131 = vst [vmem:[%s8120_s18 + $0xc0] sm:$0xff] %v5099_v20 }
 0x45d   : > { %v4985_v53 = vpop.f32.mrf.mxu2 }
 0x45e   : > { %v5032_v10 = vmul.f32 %v8101_v29, %v4985_v53 }
 0x460   : > { %v5068_v7 = vadd.f32 %v8107_v62, %v5032_v10 }
 0x462   : > { %v5100_v60 = vadd.f32 %v6052_v58, %v5068_v7 }
 0x464   : > { %5132 = vst [vmem:[%s8120_s18 + $0xc8] sm:$0xff] %v5100_v60 }
 0x465   : > { %v4988_v23 = vpop.f32.mrf.mxu2 }
 0x466   : > { %v5033_v34 = vmul.f32 %v8101_v29, %v4988_v23 }
 0x468   : > { %v5069_v2 = vadd.f32 %v8107_v62, %v5033_v34 }
 0x46a   : > { %v5101_v6 = vadd.f32 %v6053_v37, %v5069_v2 }
 0x46c   : > { %5133 = vst [vmem:[%s8120_s18 + $0xd0] sm:$0xff] %v5101_v6 }
 0x46d   : > { %v4990_v4 = vpop.f32.mrf.mxu2 }
 0x46e   : > { %v5034_v42 = vmul.f32 %v8101_v29, %v4990_v4 }
 0x470   : > { %v5070_v55 = vadd.f32 %v8107_v62, %v5034_v42 }
 0x472   : > { %v5102_v25 = vadd.f32 %v6054_v12, %v5070_v55 }
 0x474   : > { %5134 = vst [vmem:[%s8120_s18 + $0xd8] sm:$0xff] %v5102_v25 }
 0x475   : > { %v4993_v13 = vpop.f32.mrf.mxu2 }
 0x476   : > { %v5035_v22 = vmul.f32 %v8101_v29, %v4993_v13 }
 0x478   : > { %v5071_v44 = vadd.f32 %v8107_v62, %v5035_v22 }
 0x47a   : > { %v5103_v46 = vadd.f32 %v6055_v33, %v5071_v44 }
 0x47c   : > { %5135 = vst [vmem:[%s8120_s18 + $0xe0] sm:$0xff] %v5103_v46 }
 0x47d   : > { %v4995_v54 = vpop.f32.mrf.mxu2 }
 0x47e   : > { %v5036_v0 = vmul.f32 %v8101_v29, %v4995_v54 }
 0x480   : > { %v5072_v36 = vadd.f32 %v8107_v62, %v5036_v0 }
 0x482   : > { %v5104_v28 = vadd.f32 %v6056_v11, %v5072_v36 }
 0x484   : > { %5136 = vst [vmem:[%s8120_s18 + $0xe8] sm:$0xff] %v5104_v28 }
 0x485   : > { %v4998_v8 = vpop.f32.mrf.mxu2 }
 0x486   : > { %v5037_v51 = vmul.f32 %v8101_v29, %v4998_v8 }
 0x488   : > { %v5073_v61 = vadd.f32 %v8107_v62, %v5037_v51 }
 0x48a   : > { %v5105_v19 = vadd.f32 %v6057_v26, %v5073_v61 }
 0x48c   : > { %5137 = vst [vmem:[%s8120_s18 + $0xf0] sm:$0xff] %v5105_v19 }
 0x48d   : > { %v5000_v35 = vpop.f32.mrf.mxu2 }
 0x48e   : > { %v5038_v56 = vmul.f32 %v8101_v29, %v5000_v35 }
 0x490   : > { %v5074_v41 = vadd.f32 %v8107_v62, %v5038_v56 }
 0x492   : > { %v5106_v59 = vadd.f32 %v6058_v57, %v5074_v41 }
 0x494   : > { %5138 = vst [vmem:[%s8120_s18 + $0xf8] sm:$0xff] %v5106_v59 }
 0x495   : > { %6176 = shalt.err (!%p6173_p8)
}
 0x496   : > { %s6226_s11 = smov 128   ;;  %s6227_s3 = smov 8  }
 0x497   : > { %5864 = dma.vmem_to_hbm [thread:$0]  (%p6321_p5), %s5153_s30, 4096, %s5155_s22, %s5140_s17, %s6226_s11, %s6226_s11, %s6227_s3  }
 0x498 PF: > { %p5886_p9 = scmp.ge.s32.totalorder %s6219_s16, 2  ;;  %s5169_s18 = sand.u32 1, %s6207_s13  }
 0x499   : > { %s5170_s28 = scalar_lea.sflag [#allocation5], %s5169_s18 }
 0x49a   : > { %p5877_p10 = pnand %p5886_p9, %p6325_p6 }
 0x49c   : > { %p5878_p11 = pneg %p5877_p10 }
 0x49e   : > { %6202 = dma.done.wait (%p5878_p11), %s5170_s28, 4096  }
 0x49f   : > { %6204 = vsyncadd (%p5878_p11), %s5170_s28, 4294963200  ;;  %s8394_s25 = sld [smem:[#allocation13_spill]]  ;;  %p22_p12 = scmp.ge.s32.totalorder %s6308_s19, 4  }
 0x4a0   : > { %s8395_s13 = smov %s6211_s14  ;;  %s8396_s14 = smov %s6215_s15 }
 0x4a1   : > { %s8398_s16 = smov %s6308_s19  ;;  %24 = sbr.rel (!%p22_p12) target bundleno = 7 (0x7), region = 110 }
 0x4a5   : > { %s8397_s15 = smov %s8394_s25 }
 0x4a6   :  { %5176 = vsyncpa [#allocation4], 1 }
 0x4a7   :  { %5178 = vsyncpa [#allocation4 + $0x1], 1 }
 0x4a8   :  { %5179 = vsyncpa [#allocation7], 1 }
 0x4a9   :  { %5180 = vsyncpa [#allocation5], 1 }
 0x4aa   :  { %5182 = vsyncpa [#allocation5 + $0x1], 1 }

</bundles_post_ra>
